<compile_context>
chip_gen: v7x
topology: tpu7x:2x2x1
jax: 0.10.0
libtpu: 0.0.40
codegen_flags: <defaults>
</compile_context>

<pallas_src>
import jax
import jax.numpy as jnp
from jax.experimental import pallas as pl
from jax.experimental.pallas import tpu as pltpu

C0 = 16        # base channel count `c` in the reference module
TM_MAX = 512   # max M-tile width (lane axis); multiple of 128

# bf16 operands/activations only where the hardware dot supports it.
_ON_TPU = jax.default_backend() == "tpu"
_CDT = jnp.bfloat16 if _ON_TPU else jnp.float32
_CDT_BYTES = jnp.dtype(_CDT).itemsize


def _round_up(x, m):
    return (x + m - 1) // m * m


# ----------------------------- Pallas kernel ------------------------------ #
def _conv_mm_kernel(w_ref, p_ref, b_ref, o_ref):
    # w_ref: (Cout, K) _CDT, p_ref: (K, tm) _CDT, b_ref: (Cout, 1) f32
    acc = jnp.dot(w_ref[...], p_ref[...], preferred_element_type=jnp.float32)
    acc = acc + b_ref[...]
    # LeakyReLU(negative_slope=0.2) in f32, cast at the store.
    acc = jnp.where(acc >= 0.0, acc, 0.2 * acc)
    o_ref[...] = acc.astype(o_ref.dtype)


def conv3x3_lrelu(x_cnhw, w, b, stride):
    """3x3 conv (padding=1, given stride) + bias + LeakyReLU(0.2) in CNHW.

    x_cnhw: (Cin, N, H, W);  w: (Cout, Cin, 3, 3) f32;  b: (Cout,) f32
    returns (Cout, N, Ho, Wo) in the compute dtype (bf16 on TPU).
    """
    Cin, N, H, W = x_cnhw.shape
    Cout = w.shape[0]
    Ho = (H + 2 - 3) // stride + 1
    Wo = (W + 2 - 3) // stride + 1
    K = 9 * Cin
    M = N * Ho * Wo

    # TODO(synk): replace this HBM-side im2col with in-kernel tap assembly from
    # halo'd input blocks (manual DMA) and fuse conv1+conv2 per level; kept as
    # an all-bf16 interim so the 9x-expanded tensor costs half the HBM bytes.
    xp = jnp.pad(x_cnhw.astype(_CDT), ((0, 0), (0, 0), (1, 1), (1, 1)))
    taps = []
    for ki in range(3):
        for kj in range(3):
            taps.append(xp[:, :,
                           ki:ki + stride * (Ho - 1) + 1:stride,
                           kj:kj + stride * (Wo - 1) + 1:stride])
    # (9, Cin, N, Ho, Wo) -> (K, M); k = (ki*3+kj)*Cin + cin, m = (n, ho, wo)
    patches = jnp.stack(taps, axis=0).reshape(K, M)

    # w_t[cout, (ki*3+kj)*Cin + cin] = w[cout, cin, ki, kj]
    w_t = jnp.transpose(w, (2, 3, 1, 0)).reshape(K, Cout).T.astype(_CDT)
    b_mat = b.reshape(Cout, 1).astype(jnp.float32)

    # Lane-dense tiling over M: tiles are multiples of 128, and when M allows
    # it the grid has >= 2 steps so the parallel axis can shard across cores.
    M128 = _round_up(M, 128)
    if M128 >= 256:
        tm = min(TM_MAX, _round_up(M128 // 2, 128))
    else:
        tm = 128
    m_pad = _round_up(M, tm)
    if m_pad != M:
        patches = jnp.pad(patches, ((0, 0), (0, m_pad - M)))
    grid = (m_pad // tm,)

    # Double-buffered patch/output tiles + resident weights/bias + headroom.
    vmem_need = (2 * (K * tm * _CDT_BYTES + Cout * tm * _CDT_BYTES)
                 + 2 * (Cout * K * _CDT_BYTES + Cout * 4)
                 + (4 << 20))
    vmem_limit = int(min(max(vmem_need, 16 << 20), 32 << 20))

    cost = pl.CostEstimate(
        flops=2 * m_pad * K * Cout,
        transcendentals=0,
        bytes_accessed=(K * m_pad + Cout * K + Cout * m_pad) * _CDT_BYTES)

    out = pl.pallas_call(
        _conv_mm_kernel,
        out_shape=jax.ShapeDtypeStruct((Cout, m_pad), _CDT),
        grid=grid,
        in_specs=[
            pl.BlockSpec((Cout, K), lambda i: (0, 0)),   # weights (resident)
            pl.BlockSpec((K, tm), lambda i: (0, i)),     # patch tile (pipelined)
            pl.BlockSpec((Cout, 1), lambda i: (0, 0)),   # bias
        ],
        out_specs=pl.BlockSpec((Cout, tm), lambda i: (0, i)),
        compiler_params=pltpu.CompilerParams(
            dimension_semantics=("parallel",),
            vmem_limit_bytes=vmem_limit),
        cost_estimate=cost,
    )(w_t, patches, b_mat)

    if m_pad != M:
        # TODO(synk): a fused conv1+conv2 pallas_call would carry the padded M
        # through the level and remove this per-layer slice copy.
        out = out[:, :M]
    return out.reshape(Cout, N, Ho, Wo)


def conv2_block(x_cnhw, params, stride=2):
    # TODO(synk): fuse the two convs into a single pallas_call keeping the
    # conv1 tile in VMEM scratch (halves HBM round-trips of the intermediate).
    w1, b1, w2, b2 = params
    x_cnhw = conv3x3_lrelu(x_cnhw, w1, b1, stride)
    x_cnhw = conv3x3_lrelu(x_cnhw, w2, b2, 1)
    return x_cnhw


# ------------------------------- JAX glue --------------------------------- #
def halve_flow(flow):
    # F.interpolate(scale_factor=0.5, mode='bilinear', align_corners=False)
    # is exactly a 2x2 average pool for even H, W; then * 0.5.
    N, C, H, W = flow.shape
    assert H % 2 == 0 and W % 2 == 0, "bilinear 0.5x == 2x2 avg-pool only for even H, W"
    f = flow.reshape(N, C, H // 2, 2, W // 2, 2).mean(axis=(3, 5))
    return f * 0.5


def warp(x, flow):
    """RIFE backwarp: grid_sample(bilinear, padding_mode='border', align_corners=True)."""
    # TODO(synk): data-dependent bilinear gather kept in plain JAX (XLA gather);
    # a scalar-prefetch / manual-DMA Pallas gather is the next wall-clock item.
    N, C, H, W = x.shape
    gx = jnp.broadcast_to(jnp.linspace(-1.0, 1.0, W)[None, None, :], (N, H, W))
    gy = jnp.broadcast_to(jnp.linspace(-1.0, 1.0, H)[None, :, None], (N, H, W))
    gx = gx + flow[:, 0] / ((W - 1.0) / 2.0)
    gy = gy + flow[:, 1] / ((H - 1.0) / 2.0)
    # un-normalize (align_corners=True)
    ix = (gx + 1.0) * (W - 1.0) / 2.0
    iy = (gy + 1.0) * (H - 1.0) / 2.0
    ix0 = jnp.floor(ix)
    iy0 = jnp.floor(iy)
    wx1 = ix - ix0
    wy1 = iy - iy0
    wx0 = 1.0 - wx1
    wy0 = 1.0 - wy1
    ix0c = jnp.clip(ix0, 0, W - 1).astype(jnp.int32)
    ix1c = jnp.clip(ix0 + 1.0, 0, W - 1).astype(jnp.int32)
    iy0c = jnp.clip(iy0, 0, H - 1).astype(jnp.int32)
    iy1c = jnp.clip(iy0 + 1.0, 0, H - 1).astype(jnp.int32)
    bidx = jnp.arange(N)[:, None, None]

    def gather(iy_, ix_):
        v = x[bidx, :, iy_, ix_]          # (N, H, W, C)
        return jnp.transpose(v, (0, 3, 1, 2))

    return (gather(iy0c, ix0c) * (wy0 * wx0)[:, None]
            + gather(iy0c, ix1c) * (wy0 * wx1)[:, None]
            + gather(iy1c, ix0c) * (wy1 * wx0)[:, None]
            + gather(iy1c, ix1c) * (wy1 * wx1)[:, None])


def contextnet_forward(params, x, flow):
    # x: (N, 3, H, W) NCHW f32; flow: (N, 2, H, W) f32
    x_c = jnp.transpose(x, (1, 0, 2, 3)).astype(_CDT)   # boundary NCHW -> CNHW
    feats = []
    for p in params:
        x_c = conv2_block(x_c, p, stride=2)
        flow = halve_flow(flow)
        # warp consumes/produces NCHW f32 (matches the PyTorch reference output)
        feat = jnp.transpose(x_c, (1, 0, 2, 3)).astype(jnp.float32)
        feats.append(warp(feat, flow))
    return feats


def init_params(key):
    dims = [(3, C0), (C0, 2 * C0), (2 * C0, 4 * C0), (4 * C0, 8 * C0)]
    params = []
    for cin, cout in dims:
        key, k1, k2, k3, k4 = jax.random.split(key, 5)
        w1 = 0.1 * jax.random.normal(k1, (cout, cin, 3, 3), jnp.float32)
        b1 = 0.05 * jax.random.normal(k2, (cout,), jnp.float32)
        w2 = 0.1 * jax.random.normal(k3, (cout, cout, 3, 3), jnp.float32)
        b2 = 0.05 * jax.random.normal(k4, (cout,), jnp.float32)
        params.append((w1, b1, w2, b2))
    return params


if __name__ == "__main__":
    key = jax.random.PRNGKey(0)
    kp, kx, kf = jax.random.split(key, 3)
    params = init_params(kp)

    # Small shapes consistent with the module: NCHW 3-channel image, 2-channel flow.
    x = jax.random.normal(kx, (2, 3, 32, 32), jnp.float32)
    flow = 2.0 * jax.random.normal(kf, (2, 2, 32, 32), jnp.float32)

    fwd = jax.jit(contextnet_forward)
    f1, f2, f3, f4 = fwd(params, x, flow)
    for f in (f1, f2, f3, f4):
        jax.block_until_ready(f)

    assert f1.shape == (2, C0, 16, 16)
    assert f2.shape == (2, 2 * C0, 8, 8)
    assert f3.shape == (2, 4 * C0, 4, 4)
    assert f4.shape == (2, 8 * C0, 2, 2)
    print("KERNEL_OK")
</pallas_src>

<mosaic_0001>
module attributes {stable_mosaic.version = 11 : i64} {
  func.func @_conv_mm_kernel(%arg0: i32, %arg1: memref<16x27xf32, #tpu.memory_space<vmem>>, %arg2: memref<27x256xf32, #tpu.memory_space<vmem>>, %arg3: memref<16x1xf32, #tpu.memory_space<vmem>>, %arg4: memref<16x256xf32, #tpu.memory_space<vmem>>) attributes {dimension_semantics = [#tpu.dimension_semantics<parallel>], iteration_bounds = array<i64: 2>, scalar_prefetch = 0 : i64, scratch_operands = 0 : i64, tpu.core_type = #tpu.core_type<tc>, window_params = [{pipeline_mode = #tpu.pipeline_mode<synchronous>, transform_indices = @transform_0, window_bounds = array<i64: 16, 27>}, {transform_indices = @transform_1, window_bounds = array<i64: 27, 256>}, {pipeline_mode = #tpu.pipeline_mode<synchronous>, transform_indices = @transform_2, window_bounds = array<i64: 16, 1>}, {transform_indices = @transform_3, window_bounds = array<i64: 16, 256>}]} {
    %c0 = arith.constant 0 : index
    %c0_0 = arith.constant 0 : index
    %0 = vector.load %arg1[%c0, %c0_0] : memref<16x27xf32, #tpu.memory_space<vmem>>, vector<16x27xf32>
    %c0_1 = arith.constant 0 : index
    %c0_2 = arith.constant 0 : index
    %1 = vector.load %arg2[%c0_1, %c0_2] : memref<27x256xf32, #tpu.memory_space<vmem>>, vector<27x256xf32>
    %cst = arith.constant dense<0.000000e+00> : vector<16x256xf32>
    %2 = tpu.matmul %0, %1, %cst {dimension_numbers = #tpu.dot_dimension_numbers<[1], [0], [0], [1], [0, 0, 1, 1], [], []>} : vector<16x27xf32>, vector<27x256xf32>, vector<16x256xf32> -> vector<16x256xf32>
    %c0_3 = arith.constant 0 : index
    %c0_4 = arith.constant 0 : index
    %3 = vector.load %arg3[%c0_3, %c0_4] : memref<16x1xf32, #tpu.memory_space<vmem>>, vector<16x1xf32>
    %4 = vector.broadcast %3 : vector<16x1xf32> to vector<16x256xf32>
    %5 = arith.addf %2, %4 : vector<16x256xf32>
    %cst_5 = arith.constant 0.000000e+00 : f32
    %6 = vector.broadcast %cst_5 : f32 to vector<16x256xf32>
    %7 = arith.cmpf oge, %5, %6 : vector<16x256xf32>
    %cst_6 = arith.constant 2.000000e-01 : f32
    %8 = vector.broadcast %cst_6 : f32 to vector<16x256xf32>
    %9 = arith.mulf %8, %5 : vector<16x256xf32>
    %10 = arith.select %7, %5, %9 : vector<16x256xi1>, vector<16x256xf32>
    %c0_7 = arith.constant 0 : index
    %c0_8 = arith.constant 0 : index
    %11 = vector.load %arg4[%c0_7, %c0_8] : memref<16x256xf32, #tpu.memory_space<vmem>>, vector<16x256xf32>
    tpu.vector_store %arg4[%c0_7, %c0_8], %10 {strides = array<i32>} : memref<16x256xf32, #tpu.memory_space<vmem>>, vector<16x256xf32>,
    return
  }
  func.func @transform_0(%arg0: i32) -> (i32, i32) {
    %c0_i32 = arith.constant 0 : i32
    %c0_i32_0 = arith.constant 0 : i32
    %c0_i32_1 = arith.constant 0 : i32
    return %c0_i32, %c0_i32_0 : i32, i32
  }
  func.func @transform_1(%arg0: i32) -> (i32, i32) {
    %c0_i32 = arith.constant 0 : i32
    %c0_i32_0 = arith.constant 0 : i32
    return %c0_i32, %arg0 : i32, i32
  }
  func.func @transform_2(%arg0: i32) -> (i32, i32) {
    %c0_i32 = arith.constant 0 : i32
    %c0_i32_0 = arith.constant 0 : i32
    %c0_i32_1 = arith.constant 0 : i32
    return %c0_i32, %c0_i32_0 : i32, i32
  }
  func.func @transform_3(%arg0: i32) -> (i32, i32) {
    %c0_i32 = arith.constant 0 : i32
    %c0_i32_0 = arith.constant 0 : i32
    return %c0_i32, %arg0 : i32, i32
  }
}

module attributes {stable_mosaic.version = 11 : i64} {
  func.func @_conv_mm_kernel(%arg0: i32, %arg1: memref<16x144xf32, #tpu.memory_space<vmem>>, %arg2: memref<144x256xf32, #tpu.memory_space<vmem>>, %arg3: memref<16x1xf32, #tpu.memory_space<vmem>>, %arg4: memref<16x256xf32, #tpu.memory_space<vmem>>) attributes {dimension_semantics = [#tpu.dimension_semantics<parallel>], iteration_bounds = array<i64: 2>, scalar_prefetch = 0 : i64, scratch_operands = 0 : i64, tpu.core_type = #tpu.core_type<tc>, window_params = [{pipeline_mode = #tpu.pipeline_mode<synchronous>, transform_indices = @transform_0, window_bounds = array<i64: 16, 144>}, {transform_indices = @transform_1, window_bounds = array<i64: 144, 256>}, {pipeline_mode = #tpu.pipeline_mode<synchronous>, transform_indices = @transform_2, window_bounds = array<i64: 16, 1>}, {transform_indices = @transform_3, window_bounds = array<i64: 16, 256>}]} {
    %c0 = arith.constant 0 : index
    %c0_0 = arith.constant 0 : index
    %0 = vector.load %arg1[%c0, %c0_0] : memref<16x144xf32, #tpu.memory_space<vmem>>, vector<16x144xf32>
    %c0_1 = arith.constant 0 : index
    %c0_2 = arith.constant 0 : index
    %1 = vector.load %arg2[%c0_1, %c0_2] : memref<144x256xf32, #tpu.memory_space<vmem>>, vector<144x256xf32>
    %cst = arith.constant dense<0.000000e+00> : vector<16x256xf32>
    %2 = tpu.matmul %0, %1, %cst {dimension_numbers = #tpu.dot_dimension_numbers<[1], [0], [0], [1], [0, 0, 1, 1], [], []>} : vector<16x144xf32>, vector<144x256xf32>, vector<16x256xf32> -> vector<16x256xf32>
    %c0_3 = arith.constant 0 : index
    %c0_4 = arith.constant 0 : index
    %3 = vector.load %arg3[%c0_3, %c0_4] : memref<16x1xf32, #tpu.memory_space<vmem>>, vector<16x1xf32>
    %4 = vector.broadcast %3 : vector<16x1xf32> to vector<16x256xf32>
    %5 = arith.addf %2, %4 : vector<16x256xf32>
    %cst_5 = arith.constant 0.000000e+00 : f32
    %6 = vector.broadcast %cst_5 : f32 to vector<16x256xf32>
    %7 = arith.cmpf oge, %5, %6 : vector<16x256xf32>
    %cst_6 = arith.constant 2.000000e-01 : f32
    %8 = vector.broadcast %cst_6 : f32 to vector<16x256xf32>
    %9 = arith.mulf %8, %5 : vector<16x256xf32>
    %10 = arith.select %7, %5, %9 : vector<16x256xi1>, vector<16x256xf32>
    %c0_7 = arith.constant 0 : index
    %c0_8 = arith.constant 0 : index
    %11 = vector.load %arg4[%c0_7, %c0_8] : memref<16x256xf32, #tpu.memory_space<vmem>>, vector<16x256xf32>
    tpu.vector_store %arg4[%c0_7, %c0_8], %10 {strides = array<i32>} : memref<16x256xf32, #tpu.memory_space<vmem>>, vector<16x256xf32>,
    return
  }
  func.func @transform_0(%arg0: i32) -> (i32, i32) {
    %c0_i32 = arith.constant 0 : i32
    %c0_i32_0 = arith.constant 0 : i32
    %c0_i32_1 = arith.constant 0 : i32
    return %c0_i32, %c0_i32_0 : i32, i32
  }
  func.func @transform_1(%arg0: i32) -> (i32, i32) {
    %c0_i32 = arith.constant 0 : i32
    %c0_i32_0 = arith.constant 0 : i32
    return %c0_i32, %arg0 : i32, i32
  }
  func.func @transform_2(%arg0: i32) -> (i32, i32) {
    %c0_i32 = arith.constant 0 : i32
    %c0_i32_0 = arith.constant 0 : i32
    %c0_i32_1 = arith.constant 0 : i32
    return %c0_i32, %c0_i32_0 : i32, i32
  }
  func.func @transform_3(%arg0: i32) -> (i32, i32) {
    %c0_i32 = arith.constant 0 : i32
    %c0_i32_0 = arith.constant 0 : i32
    return %c0_i32, %arg0 : i32, i32
  }
}

module attributes {stable_mosaic.version = 11 : i64} {
  func.func @_conv_mm_kernel(%arg0: i32, %arg1: memref<32x144xf32, #tpu.memory_space<vmem>>, %arg2: memref<144x128xf32, #tpu.memory_space<vmem>>, %arg3: memref<32x1xf32, #tpu.memory_space<vmem>>, %arg4: memref<32x128xf32, #tpu.memory_space<vmem>>) attributes {dimension_semantics = [#tpu.dimension_semantics<parallel>], iteration_bounds = array<i64: 1>, scalar_prefetch = 0 : i64, scratch_operands = 0 : i64, tpu.core_type = #tpu.core_type<tc>, window_params = [{pipeline_mode = #tpu.pipeline_mode<synchronous>, transform_indices = @transform_0, window_bounds = array<i64: 32, 144>}, {transform_indices = @transform_1, window_bounds = array<i64: 144, 128>}, {pipeline_mode = #tpu.pipeline_mode<synchronous>, transform_indices = @transform_2, window_bounds = array<i64: 32, 1>}, {transform_indices = @transform_3, window_bounds = array<i64: 32, 128>}]} {
    %c0 = arith.constant 0 : index
    %c0_0 = arith.constant 0 : index
    %0 = vector.load %arg1[%c0, %c0_0] : memref<32x144xf32, #tpu.memory_space<vmem>>, vector<32x144xf32>
    %c0_1 = arith.constant 0 : index
    %c0_2 = arith.constant 0 : index
    %1 = vector.load %arg2[%c0_1, %c0_2] : memref<144x128xf32, #tpu.memory_space<vmem>>, vector<144x128xf32>
    %cst = arith.constant dense<0.000000e+00> : vector<32x128xf32>
    %2 = tpu.matmul %0, %1, %cst {dimension_numbers = #tpu.dot_dimension_numbers<[1], [0], [0], [1], [0, 0, 1, 1], [], []>} : vector<32x144xf32>, vector<144x128xf32>, vector<32x128xf32> -> vector<32x128xf32>
    %c0_3 = arith.constant 0 : index
    %c0_4 = arith.constant 0 : index
    %3 = vector.load %arg3[%c0_3, %c0_4] : memref<32x1xf32, #tpu.memory_space<vmem>>, vector<32x1xf32>
    %4 = vector.broadcast %3 : vector<32x1xf32> to vector<32x128xf32>
    %5 = arith.addf %2, %4 : vector<32x128xf32>
    %cst_5 = arith.constant 0.000000e+00 : f32
    %6 = vector.broadcast %cst_5 : f32 to vector<32x128xf32>
    %7 = arith.cmpf oge, %5, %6 : vector<32x128xf32>
    %cst_6 = arith.constant 2.000000e-01 : f32
    %8 = vector.broadcast %cst_6 : f32 to vector<32x128xf32>
    %9 = arith.mulf %8, %5 : vector<32x128xf32>
    %10 = arith.select %7, %5, %9 : vector<32x128xi1>, vector<32x128xf32>
    %c0_7 = arith.constant 0 : index
    %c0_8 = arith.constant 0 : index
    %11 = vector.load %arg4[%c0_7, %c0_8] : memref<32x128xf32, #tpu.memory_space<vmem>>, vector<32x128xf32>
    tpu.vector_store %arg4[%c0_7, %c0_8], %10 {strides = array<i32>} : memref<32x128xf32, #tpu.memory_space<vmem>>, vector<32x128xf32>,
    return
  }
  func.func @transform_0(%arg0: i32) -> (i32, i32) {
    %c0_i32 = arith.constant 0 : i32
    %c0_i32_0 = arith.constant 0 : i32
    %c0_i32_1 = arith.constant 0 : i32
    return %c0_i32, %c0_i32_0 : i32, i32
  }
  func.func @transform_1(%arg0: i32) -> (i32, i32) {
    %c0_i32 = arith.constant 0 : i32
    %c0_i32_0 = arith.constant 0 : i32
    return %c0_i32, %arg0 : i32, i32
  }
  func.func @transform_2(%arg0: i32) -> (i32, i32) {
    %c0_i32 = arith.constant 0 : i32
    %c0_i32_0 = arith.constant 0 : i32
    %c0_i32_1 = arith.constant 0 : i32
    return %c0_i32, %c0_i32_0 : i32, i32
  }
  func.func @transform_3(%arg0: i32) -> (i32, i32) {
    %c0_i32 = arith.constant 0 : i32
    %c0_i32_0 = arith.constant 0 : i32
    return %c0_i32, %arg0 : i32, i32
  }
}

module attributes {stable_mosaic.version = 11 : i64} {
  func.func @_conv_mm_kernel(%arg0: i32, %arg1: memref<32x288xf32, #tpu.memory_space<vmem>>, %arg2: memref<288x128xf32, #tpu.memory_space<vmem>>, %arg3: memref<32x1xf32, #tpu.memory_space<vmem>>, %arg4: memref<32x128xf32, #tpu.memory_space<vmem>>) attributes {dimension_semantics = [#tpu.dimension_semantics<parallel>], iteration_bounds = array<i64: 1>, scalar_prefetch = 0 : i64, scratch_operands = 0 : i64, tpu.core_type = #tpu.core_type<tc>, window_params = [{pipeline_mode = #tpu.pipeline_mode<synchronous>, transform_indices = @transform_0, window_bounds = array<i64: 32, 288>}, {transform_indices = @transform_1, window_bounds = array<i64: 288, 128>}, {pipeline_mode = #tpu.pipeline_mode<synchronous>, transform_indices = @transform_2, window_bounds = array<i64: 32, 1>}, {transform_indices = @transform_3, window_bounds = array<i64: 32, 128>}]} {
    %c0 = arith.constant 0 : index
    %c0_0 = arith.constant 0 : index
    %0 = vector.load %arg1[%c0, %c0_0] : memref<32x288xf32, #tpu.memory_space<vmem>>, vector<32x288xf32>
    %c0_1 = arith.constant 0 : index
    %c0_2 = arith.constant 0 : index
    %1 = vector.load %arg2[%c0_1, %c0_2] : memref<288x128xf32, #tpu.memory_space<vmem>>, vector<288x128xf32>
    %cst = arith.constant dense<0.000000e+00> : vector<32x128xf32>
    %2 = tpu.matmul %0, %1, %cst {dimension_numbers = #tpu.dot_dimension_numbers<[1], [0], [0], [1], [0, 0, 1, 1], [], []>} : vector<32x288xf32>, vector<288x128xf32>, vector<32x128xf32> -> vector<32x128xf32>
    %c0_3 = arith.constant 0 : index
    %c0_4 = arith.constant 0 : index
    %3 = vector.load %arg3[%c0_3, %c0_4] : memref<32x1xf32, #tpu.memory_space<vmem>>, vector<32x1xf32>
    %4 = vector.broadcast %3 : vector<32x1xf32> to vector<32x128xf32>
    %5 = arith.addf %2, %4 : vector<32x128xf32>
    %cst_5 = arith.constant 0.000000e+00 : f32
    %6 = vector.broadcast %cst_5 : f32 to vector<32x128xf32>
    %7 = arith.cmpf oge, %5, %6 : vector<32x128xf32>
    %cst_6 = arith.constant 2.000000e-01 : f32
    %8 = vector.broadcast %cst_6 : f32 to vector<32x128xf32>
    %9 = arith.mulf %8, %5 : vector<32x128xf32>
    %10 = arith.select %7, %5, %9 : vector<32x128xi1>, vector<32x128xf32>
    %c0_7 = arith.constant 0 : index
    %c0_8 = arith.constant 0 : index
    %11 = vector.load %arg4[%c0_7, %c0_8] : memref<32x128xf32, #tpu.memory_space<vmem>>, vector<32x128xf32>
    tpu.vector_store %arg4[%c0_7, %c0_8], %10 {strides = array<i32>} : memref<32x128xf32, #tpu.memory_space<vmem>>, vector<32x128xf32>,
    return
  }
  func.func @transform_0(%arg0: i32) -> (i32, i32) {
    %c0_i32 = arith.constant 0 : i32
    %c0_i32_0 = arith.constant 0 : i32
    %c0_i32_1 = arith.constant 0 : i32
    return %c0_i32, %c0_i32_0 : i32, i32
  }
  func.func @transform_1(%arg0: i32) -> (i32, i32) {
    %c0_i32 = arith.constant 0 : i32
    %c0_i32_0 = arith.constant 0 : i32
    return %c0_i32, %arg0 : i32, i32
  }
  func.func @transform_2(%arg0: i32) -> (i32, i32) {
    %c0_i32 = arith.constant 0 : i32
    %c0_i32_0 = arith.constant 0 : i32
    %c0_i32_1 = arith.constant 0 : i32
    return %c0_i32, %c0_i32_0 : i32, i32
  }
  func.func @transform_3(%arg0: i32) -> (i32, i32) {
    %c0_i32 = arith.constant 0 : i32
    %c0_i32_0 = arith.constant 0 : i32
    return %c0_i32, %arg0 : i32, i32
  }
}

module attributes {stable_mosaic.version = 11 : i64} {
  func.func @_conv_mm_kernel(%arg0: i32, %arg1: memref<64x288xf32, #tpu.memory_space<vmem>>, %arg2: memref<288x128xf32, #tpu.memory_space<vmem>>, %arg3: memref<64x1xf32, #tpu.memory_space<vmem>>, %arg4: memref<64x128xf32, #tpu.memory_space<vmem>>) attributes {dimension_semantics = [#tpu.dimension_semantics<parallel>], iteration_bounds = array<i64: 1>, scalar_prefetch = 0 : i64, scratch_operands = 0 : i64, tpu.core_type = #tpu.core_type<tc>, window_params = [{pipeline_mode = #tpu.pipeline_mode<synchronous>, transform_indices = @transform_0, window_bounds = array<i64: 64, 288>}, {transform_indices = @transform_1, window_bounds = array<i64: 288, 128>}, {pipeline_mode = #tpu.pipeline_mode<synchronous>, transform_indices = @transform_2, window_bounds = array<i64: 64, 1>}, {transform_indices = @transform_3, window_bounds = array<i64: 64, 128>}]} {
    %c0 = arith.constant 0 : index
    %c0_0 = arith.constant 0 : index
    %0 = vector.load %arg1[%c0, %c0_0] : memref<64x288xf32, #tpu.memory_space<vmem>>, vector<64x288xf32>
    %c0_1 = arith.constant 0 : index
    %c0_2 = arith.constant 0 : index
    %1 = vector.load %arg2[%c0_1, %c0_2] : memref<288x128xf32, #tpu.memory_space<vmem>>, vector<288x128xf32>
    %cst = arith.constant dense<0.000000e+00> : vector<64x128xf32>
    %2 = tpu.matmul %0, %1, %cst {dimension_numbers = #tpu.dot_dimension_numbers<[1], [0], [0], [1], [0, 0, 1, 1], [], []>} : vector<64x288xf32>, vector<288x128xf32>, vector<64x128xf32> -> vector<64x128xf32>
    %c0_3 = arith.constant 0 : index
    %c0_4 = arith.constant 0 : index
    %3 = vector.load %arg3[%c0_3, %c0_4] : memref<64x1xf32, #tpu.memory_space<vmem>>, vector<64x1xf32>
    %4 = vector.broadcast %3 : vector<64x1xf32> to vector<64x128xf32>
    %5 = arith.addf %2, %4 : vector<64x128xf32>
    %cst_5 = arith.constant 0.000000e+00 : f32
    %6 = vector.broadcast %cst_5 : f32 to vector<64x128xf32>
    %7 = arith.cmpf oge, %5, %6 : vector<64x128xf32>
    %cst_6 = arith.constant 2.000000e-01 : f32
    %8 = vector.broadcast %cst_6 : f32 to vector<64x128xf32>
    %9 = arith.mulf %8, %5 : vector<64x128xf32>
    %10 = arith.select %7, %5, %9 : vector<64x128xi1>, vector<64x128xf32>
    %c0_7 = arith.constant 0 : index
    %c0_8 = arith.constant 0 : index
    %11 = vector.load %arg4[%c0_7, %c0_8] : memref<64x128xf32, #tpu.memory_space<vmem>>, vector<64x128xf32>
    tpu.vector_store %arg4[%c0_7, %c0_8], %10 {strides = array<i32>} : memref<64x128xf32, #tpu.memory_space<vmem>>, vector<64x128xf32>,
    return
  }
  func.func @transform_0(%arg0: i32) -> (i32, i32) {
    %c0_i32 = arith.constant 0 : i32
    %c0_i32_0 = arith.constant 0 : i32
    %c0_i32_1 = arith.constant 0 : i32
    return %c0_i32, %c0_i32_0 : i32, i32
  }
  func.func @transform_1(%arg0: i32) -> (i32, i32) {
    %c0_i32 = arith.constant 0 : i32
    %c0_i32_0 = arith.constant 0 : i32
    return %c0_i32, %arg0 : i32, i32
  }
  func.func @transform_2(%arg0: i32) -> (i32, i32) {
    %c0_i32 = arith.constant 0 : i32
    %c0_i32_0 = arith.constant 0 : i32
    %c0_i32_1 = arith.constant 0 : i32
    return %c0_i32, %c0_i32_0 : i32, i32
  }
  func.func @transform_3(%arg0: i32) -> (i32, i32) {
    %c0_i32 = arith.constant 0 : i32
    %c0_i32_0 = arith.constant 0 : i32
    return %c0_i32, %arg0 : i32, i32
  }
}

module attributes {stable_mosaic.version = 11 : i64} {
  func.func @_conv_mm_kernel(%arg0: i32, %arg1: memref<64x576xf32, #tpu.memory_space<vmem>>, %arg2: memref<576x128xf32, #tpu.memory_space<vmem>>, %arg3: memref<64x1xf32, #tpu.memory_space<vmem>>, %arg4: memref<64x128xf32, #tpu.memory_space<vmem>>) attributes {dimension_semantics = [#tpu.dimension_semantics<parallel>], iteration_bounds = array<i64: 1>, scalar_prefetch = 0 : i64, scratch_operands = 0 : i64, tpu.core_type = #tpu.core_type<tc>, window_params = [{pipeline_mode = #tpu.pipeline_mode<synchronous>, transform_indices = @transform_0, window_bounds = array<i64: 64, 576>}, {transform_indices = @transform_1, window_bounds = array<i64: 576, 128>}, {pipeline_mode = #tpu.pipeline_mode<synchronous>, transform_indices = @transform_2, window_bounds = array<i64: 64, 1>}, {transform_indices = @transform_3, window_bounds = array<i64: 64, 128>}]} {
    %c0 = arith.constant 0 : index
    %c0_0 = arith.constant 0 : index
    %0 = vector.load %arg1[%c0, %c0_0] : memref<64x576xf32, #tpu.memory_space<vmem>>, vector<64x576xf32>
    %c0_1 = arith.constant 0 : index
    %c0_2 = arith.constant 0 : index
    %1 = vector.load %arg2[%c0_1, %c0_2] : memref<576x128xf32, #tpu.memory_space<vmem>>, vector<576x128xf32>
    %cst = arith.constant dense<0.000000e+00> : vector<64x128xf32>
    %2 = tpu.matmul %0, %1, %cst {dimension_numbers = #tpu.dot_dimension_numbers<[1], [0], [0], [1], [0, 0, 1, 1], [], []>} : vector<64x576xf32>, vector<576x128xf32>, vector<64x128xf32> -> vector<64x128xf32>
    %c0_3 = arith.constant 0 : index
    %c0_4 = arith.constant 0 : index
    %3 = vector.load %arg3[%c0_3, %c0_4] : memref<64x1xf32, #tpu.memory_space<vmem>>, vector<64x1xf32>
    %4 = vector.broadcast %3 : vector<64x1xf32> to vector<64x128xf32>
    %5 = arith.addf %2, %4 : vector<64x128xf32>
    %cst_5 = arith.constant 0.000000e+00 : f32
    %6 = vector.broadcast %cst_5 : f32 to vector<64x128xf32>
    %7 = arith.cmpf oge, %5, %6 : vector<64x128xf32>
    %cst_6 = arith.constant 2.000000e-01 : f32
    %8 = vector.broadcast %cst_6 : f32 to vector<64x128xf32>
    %9 = arith.mulf %8, %5 : vector<64x128xf32>
    %10 = arith.select %7, %5, %9 : vector<64x128xi1>, vector<64x128xf32>
    %c0_7 = arith.constant 0 : index
    %c0_8 = arith.constant 0 : index
    %11 = vector.load %arg4[%c0_7, %c0_8] : memref<64x128xf32, #tpu.memory_space<vmem>>, vector<64x128xf32>
    tpu.vector_store %arg4[%c0_7, %c0_8], %10 {strides = array<i32>} : memref<64x128xf32, #tpu.memory_space<vmem>>, vector<64x128xf32>,
    return
  }
  func.func @transform_0(%arg0: i32) -> (i32, i32) {
    %c0_i32 = arith.constant 0 : i32
    %c0_i32_0 = arith.constant 0 : i32
    %c0_i32_1 = arith.constant 0 : i32
    return %c0_i32, %c0_i32_0 : i32, i32
  }
  func.func @transform_1(%arg0: i32) -> (i32, i32) {
    %c0_i32 = arith.constant 0 : i32
    %c0_i32_0 = arith.constant 0 : i32
    return %c0_i32, %arg0 : i32, i32
  }
  func.func @transform_2(%arg0: i32) -> (i32, i32) {
    %c0_i32 = arith.constant 0 : i32
    %c0_i32_0 = arith.constant 0 : i32
    %c0_i32_1 = arith.constant 0 : i32
    return %c0_i32, %c0_i32_0 : i32, i32
  }
  func.func @transform_3(%arg0: i32) -> (i32, i32) {
    %c0_i32 = arith.constant 0 : i32
    %c0_i32_0 = arith.constant 0 : i32
    return %c0_i32, %arg0 : i32, i32
  }
}

module attributes {stable_mosaic.version = 11 : i64} {
  func.func @_conv_mm_kernel(%arg0: i32, %arg1: memref<128x576xf32, #tpu.memory_space<vmem>>, %arg2: memref<576x128xf32, #tpu.memory_space<vmem>>, %arg3: memref<128x1xf32, #tpu.memory_space<vmem>>, %arg4: memref<128x128xf32, #tpu.memory_space<vmem>>) attributes {dimension_semantics = [#tpu.dimension_semantics<parallel>], iteration_bounds = array<i64: 1>, scalar_prefetch = 0 : i64, scratch_operands = 0 : i64, tpu.core_type = #tpu.core_type<tc>, window_params = [{pipeline_mode = #tpu.pipeline_mode<synchronous>, transform_indices = @transform_0, window_bounds = array<i64: 128, 576>}, {transform_indices = @transform_1, window_bounds = array<i64: 576, 128>}, {pipeline_mode = #tpu.pipeline_mode<synchronous>, transform_indices = @transform_2, window_bounds = array<i64: 128, 1>}, {transform_indices = @transform_3, window_bounds = array<i64: 128, 128>}]} {
    %c0 = arith.constant 0 : index
    %c0_0 = arith.constant 0 : index
    %0 = vector.load %arg1[%c0, %c0_0] : memref<128x576xf32, #tpu.memory_space<vmem>>, vector<128x576xf32>
    %c0_1 = arith.constant 0 : index
    %c0_2 = arith.constant 0 : index
    %1 = vector.load %arg2[%c0_1, %c0_2] : memref<576x128xf32, #tpu.memory_space<vmem>>, vector<576x128xf32>
    %cst = arith.constant dense<0.000000e+00> : vector<128x128xf32>
    %2 = tpu.matmul %0, %1, %cst {dimension_numbers = #tpu.dot_dimension_numbers<[1], [0], [0], [1], [0, 0, 1, 1], [], []>} : vector<128x576xf32>, vector<576x128xf32>, vector<128x128xf32> -> vector<128x128xf32>
    %c0_3 = arith.constant 0 : index
    %c0_4 = arith.constant 0 : index
    %3 = vector.load %arg3[%c0_3, %c0_4] : memref<128x1xf32, #tpu.memory_space<vmem>>, vector<128x1xf32>
    %4 = vector.broadcast %3 : vector<128x1xf32> to vector<128x128xf32>
    %5 = arith.addf %2, %4 : vector<128x128xf32>
    %cst_5 = arith.constant 0.000000e+00 : f32
    %6 = vector.broadcast %cst_5 : f32 to vector<128x128xf32>
    %7 = arith.cmpf oge, %5, %6 : vector<128x128xf32>
    %cst_6 = arith.constant 2.000000e-01 : f32
    %8 = vector.broadcast %cst_6 : f32 to vector<128x128xf32>
    %9 = arith.mulf %8, %5 : vector<128x128xf32>
    %10 = arith.select %7, %5, %9 : vector<128x128xi1>, vector<128x128xf32>
    %c0_7 = arith.constant 0 : index
    %c0_8 = arith.constant 0 : index
    %11 = vector.load %arg4[%c0_7, %c0_8] : memref<128x128xf32, #tpu.memory_space<vmem>>, vector<128x128xf32>
    tpu.vector_store %arg4[%c0_7, %c0_8], %10 {strides = array<i32>} : memref<128x128xf32, #tpu.memory_space<vmem>>, vector<128x128xf32>,
    return
  }
  func.func @transform_0(%arg0: i32) -> (i32, i32) {
    %c0_i32 = arith.constant 0 : i32
    %c0_i32_0 = arith.constant 0 : i32
    %c0_i32_1 = arith.constant 0 : i32
    return %c0_i32, %c0_i32_0 : i32, i32
  }
  func.func @transform_1(%arg0: i32) -> (i32, i32) {
    %c0_i32 = arith.constant 0 : i32
    %c0_i32_0 = arith.constant 0 : i32
    return %c0_i32, %arg0 : i32, i32
  }
  func.func @transform_2(%arg0: i32) -> (i32, i32) {
    %c0_i32 = arith.constant 0 : i32
    %c0_i32_0 = arith.constant 0 : i32
    %c0_i32_1 = arith.constant 0 : i32
    return %c0_i32, %c0_i32_0 : i32, i32
  }
  func.func @transform_3(%arg0: i32) -> (i32, i32) {
    %c0_i32 = arith.constant 0 : i32
    %c0_i32_0 = arith.constant 0 : i32
    return %c0_i32, %arg0 : i32, i32
  }
}

module attributes {stable_mosaic.version = 11 : i64} {
  func.func @_conv_mm_kernel(%arg0: i32, %arg1: memref<128x1152xf32, #tpu.memory_space<vmem>>, %arg2: memref<1152x128xf32, #tpu.memory_space<vmem>>, %arg3: memref<128x1xf32, #tpu.memory_space<vmem>>, %arg4: memref<128x128xf32, #tpu.memory_space<vmem>>) attributes {dimension_semantics = [#tpu.dimension_semantics<parallel>], iteration_bounds = array<i64: 1>, scalar_prefetch = 0 : i64, scratch_operands = 0 : i64, tpu.core_type = #tpu.core_type<tc>, window_params = [{pipeline_mode = #tpu.pipeline_mode<synchronous>, transform_indices = @transform_0, window_bounds = array<i64: 128, 1152>}, {transform_indices = @transform_1, window_bounds = array<i64: 1152, 128>}, {pipeline_mode = #tpu.pipeline_mode<synchronous>, transform_indices = @transform_2, window_bounds = array<i64: 128, 1>}, {transform_indices = @transform_3, window_bounds = array<i64: 128, 128>}]} {
    %c0 = arith.constant 0 : index
    %c0_0 = arith.constant 0 : index
    %0 = vector.load %arg1[%c0, %c0_0] : memref<128x1152xf32, #tpu.memory_space<vmem>>, vector<128x1152xf32>
    %c0_1 = arith.constant 0 : index
    %c0_2 = arith.constant 0 : index
    %1 = vector.load %arg2[%c0_1, %c0_2] : memref<1152x128xf32, #tpu.memory_space<vmem>>, vector<1152x128xf32>
    %cst = arith.constant dense<0.000000e+00> : vector<128x128xf32>
    %2 = tpu.matmul %0, %1, %cst {dimension_numbers = #tpu.dot_dimension_numbers<[1], [0], [0], [1], [0, 0, 1, 1], [], []>} : vector<128x1152xf32>, vector<1152x128xf32>, vector<128x128xf32> -> vector<128x128xf32>
    %c0_3 = arith.constant 0 : index
    %c0_4 = arith.constant 0 : index
    %3 = vector.load %arg3[%c0_3, %c0_4] : memref<128x1xf32, #tpu.memory_space<vmem>>, vector<128x1xf32>
    %4 = vector.broadcast %3 : vector<128x1xf32> to vector<128x128xf32>
    %5 = arith.addf %2, %4 : vector<128x128xf32>
    %cst_5 = arith.constant 0.000000e+00 : f32
    %6 = vector.broadcast %cst_5 : f32 to vector<128x128xf32>
    %7 = arith.cmpf oge, %5, %6 : vector<128x128xf32>
    %cst_6 = arith.constant 2.000000e-01 : f32
    %8 = vector.broadcast %cst_6 : f32 to vector<128x128xf32>
    %9 = arith.mulf %8, %5 : vector<128x128xf32>
    %10 = arith.select %7, %5, %9 : vector<128x128xi1>, vector<128x128xf32>
    %c0_7 = arith.constant 0 : index
    %c0_8 = arith.constant 0 : index
    %11 = vector.load %arg4[%c0_7, %c0_8] : memref<128x128xf32, #tpu.memory_space<vmem>>, vector<128x128xf32>
    tpu.vector_store %arg4[%c0_7, %c0_8], %10 {strides = array<i32>} : memref<128x128xf32, #tpu.memory_space<vmem>>, vector<128x128xf32>,
    return
  }
  func.func @transform_0(%arg0: i32) -> (i32, i32) {
    %c0_i32 = arith.constant 0 : i32
    %c0_i32_0 = arith.constant 0 : i32
    %c0_i32_1 = arith.constant 0 : i32
    return %c0_i32, %c0_i32_0 : i32, i32
  }
  func.func @transform_1(%arg0: i32) -> (i32, i32) {
    %c0_i32 = arith.constant 0 : i32
    %c0_i32_0 = arith.constant 0 : i32
    return %c0_i32, %arg0 : i32, i32
  }
  func.func @transform_2(%arg0: i32) -> (i32, i32) {
    %c0_i32 = arith.constant 0 : i32
    %c0_i32_0 = arith.constant 0 : i32
    %c0_i32_1 = arith.constant 0 : i32
    return %c0_i32, %c0_i32_0 : i32, i32
  }
  func.func @transform_3(%arg0: i32) -> (i32, i32) {
    %c0_i32 = arith.constant 0 : i32
    %c0_i32_0 = arith.constant 0 : i32
    return %c0_i32, %arg0 : i32, i32
  }
}

</mosaic_0001>

<bundles_post_ra>
// kernel: contextnet_forward.8
= control target key start
LH: loop header
LB: loop body
LE: loop exit
PB: predicated region body
PF: predicated region fallthrough
CT: control target
= control target key end

     0   :  { %s529_s12 = smov 0   ;;  %s531_s13 = smov 0   ;;  %s606_s0 = inlined_call_operand.vmem [shape: f32[16,27], index: 0, kind: input, shape index: {}]   ;;  %s607_s1 = inlined_call_operand.vmem [shape: f32[27,512], index: 1, kind: input, shape index: {}]   ;;  %s608_s2 = inlined_call_operand.vmem [shape: f32[16,1], index: 2, kind: input, shape index: {}]   ;;  %s609_s3 = inlined_call_operand.vmem [shape: f32[16,512], index: 3, kind: output, shape index: {}]  }
   0x1   :  { %s533_s14 = smov 0  }
   0x2 LB: > { %s419_s15 = sadd.s32 4294967295, %s504_s14   ;;  %s546_s16 = sadd.s32 1, %s504_s14   ;;  %s504_s14 = sphi %s533_s14, %s613_s14   ;;  %s500_s13 = sphi %s531_s13, %s612_s13   ;;  %s496_s12 = sphi %s529_s12, %s611_s12  }
   0x3   : > { %s38_s17 = ssub.s32 %s504_s14, %s546_s16  ;;  %s41_s18 = sadd.s32 1, %s500_s13 }
   0x4   : > { %p39_p0 = scmp.eq.s32.totalorder %s38_s17, 0  ;;  %p48_p1 = scmp.ne.s32.totalorder %s500_s13, %s496_s12 }
   0x5   : > { %p49_p2 = scmp.eq.s32.totalorder %s504_s14, 0  ;;  %p99_p3 = scmp.eq.s32.totalorder %s419_s15, 1 }
   0x6   : > { %s557_s19 = scalar_select %p39_p0, %s500_s13, %s41_s18  }
   0x7   : > { %p50_p4 = por %p49_p2, %p48_p1  ;;  %p559_p5 = por %p99_p3, %p48_p1 }
   0x8   : > { %p422_p6 = scmp.ge.s32.totalorder %s504_s14, 2 }
   0xa   : > { %127 = sbr.rel (%p422_p6) target bundleno = 25 (0x19), region = 24 }
  0x11   : > { %130 = sbr.rel (!%p50_p4) target bundleno = 25 (0x19), region = 28  ;;  %s132_s21 = sand.u32 (%p50_p4), 1, %s500_s13  }
  0x12   : > { %s438_s22 = sshll.u32 (%p50_p4), %s504_s14, 4  ;;  %s423_s23 = sshll.u32 (%p50_p4), %s132_s21, 6 }
  0x13   : > { %s137_s26 = scalar_lea.vmem (%p50_p4), %s607_s1, %s438_s22  ;;  %s134_s27 = scalar_lea.vmem (%p50_p4), [#allocation2], %s423_s23 }
  0x14   : > { %v150_v0 = vld [vmem:[%s137_s26] sm:$0xff] (%p50_p4)  ;;  %v152_v1 = vld [vmem:[%s137_s26 + $0x8] sm:$0xff] (%p50_p4) }
  0x15   : > { %v154_v2 = vld [vmem:[%s137_s26 + $0x20] sm:$0xff] (%p50_p4)  ;;  %151 = vst [vmem:[%s134_s27] sm:$0xff] (%p50_p4), %v150_v0  ;;  %153 = vst [vmem:[%s134_s27 + $0x8] sm:$0xff] (%p50_p4), %v152_v1  ;;  %v156_v3 = vld [vmem:[%s137_s26 + $0x28] sm:$0xff] (%p50_p4) }
  0x16   : > { %155 = vst [vmem:[%s134_s27 + $0x10] sm:$0xff] (%p50_p4), %v154_v2  ;;  %v158_v4 = vld [vmem:[%s137_s26 + $0x40] sm:$0xff] (%p50_p4)  ;;  %v160_v5 = vld [vmem:[%s137_s26 + $0x48] sm:$0xff] (%p50_p4)  ;;  %157 = vst [vmem:[%s134_s27 + $0x18] sm:$0xff] (%p50_p4), %v156_v3 }
  0x17   : > { %159 = vst [vmem:[%s134_s27 + $0x20] sm:$0xff] (%p50_p4), %v158_v4  ;;  %161 = vst [vmem:[%s134_s27 + $0x28] sm:$0xff] (%p50_p4), %v160_v5  ;;  %v162_v6 = vld [vmem:[%s137_s26 + $0x60] sm:$0xff] (%p50_p4)  ;;  %v164_v7 = vld [vmem:[%s137_s26 + $0x68] sm:$0xff] (%p50_p4) }
  0x18   : > { %163 = vst [vmem:[%s134_s27 + $0x30] sm:$0xff] %v162_v6  ;;  %165 = vst [vmem:[%s134_s27 + $0x38] sm:$0xff] %v164_v7 }
  0x19 PF: > { %p426_p7 = scmp.ge.s32.totalorder %s504_s14, 1  ;;  %p170_p8 = scmp.lt.s32.totalorder %s504_s14, 3 }
  0x1b   : > { %p171_p9 = pnand %p426_p7, %p170_p8 }
  0x1c   : > { %s177_s28 = sand.u32 (!%p171_p9), 1, %s496_s12   ;;  %v506_v8 = vmov (!%p171_p9), 0.0   ;;  %v211_v9 = vld [vmem:[%s608_s2] sm:$0xff] (!%p171_p9)  ;;  %vm230_vm0 = vcmask (!%p171_p9), 1042432   ;;  %v507_v10 = vmov (!%p171_p9), 0   ;;  %vm508_vm1 = vmmov (!%p171_p9), 1  }
  0x1d   : > { %174 = sbr.rel (%p171_p9) target bundleno = 269 (0x10d), region = 51  ;;  %s427_s29 = sshll.u32 (!%p171_p9), %s177_s28, 6  ;;  %301 = vmatprep.mubr.f32.mxu0 (!%p171_p9), %v506_v8  ;;  %307 = vmatprep.mubr.f32.mxu1 (!%p171_p9), %v506_v8  ;;  %vm445_vm2 = vmpackc.low (!%p171_p9), %vm230_vm0, %vm508_vm1  ;;  %v212_v22 = vld [vmem:[%s608_s2 + $0x8] sm:$0xff] (!%p171_p9)  ;;  %v201_v24 = vld [vmem:[%s606_s0] sm:$0xff] (!%p171_p9)  ;;  %vm223_vm3 = vcmask (!%p171_p9), 220160  }
  0x1e   : > { %481 = vset.pattern.permute.xlu0 (!%p171_p9), %v507_v10  ;;  %s179_s5 = scalar_lea.vmem (!%p171_p9), [#allocation2], %s427_s29  ;;  %v202_v25 = vld [vmem:[%s606_s0 + $0x8] sm:$0xff] (!%p171_p9)  ;;  %s428_s17 = sshll.u32 (!%p171_p9), %s177_s28, 5 }
  0x1f   : > { %v204_v11 = vld [vmem:[%s179_s5 + $0x8] sm:$0xff] (!%p171_p9)  ;;  %v206_v12 = vld [vmem:[%s179_s5 + $0x18] sm:$0xff] (!%p171_p9)  ;;  %v203_v13 = vld [vmem:[%s179_s5] sm:$0xff] (!%p171_p9)  ;;  %215 = vperm.xlu0 (!%p171_p9), %481, %v211_v9   ;;  %s198_s12 = scalar_lea.vmem (!%p171_p9), [#allocation3], %s428_s17 }
  0x20   : > { %v440_v14 = vpack.c.bf16 (!%p171_p9), %v206_v12, %v204_v11  ;;  %v205_v15 = vld [vmem:[%s179_s5 + $0x10] sm:$0xff] (!%p171_p9)  ;;  %v208_v16 = vld [vmem:[%s179_s5 + $0x28] sm:$0xff] (!%p171_p9)  ;;  %v210_v17 = vld [vmem:[%s179_s5 + $0x38] sm:$0x7] (!%p171_p9) }
  0x21   : > { %v442_v18 = vpack.c.bf16 (!%p171_p9), %v205_v15, %v203_v13  ;;  %v444_v19 = vpack.c.bf16 (!%p171_p9), %v210_v17, %v208_v16  ;;  %v207_v20 = vld [vmem:[%s179_s5 + $0x20] sm:$0xff] (!%p171_p9)  ;;  %v209_v21 = vld [vmem:[%s179_s5 + $0x30] sm:$0x7] (!%p171_p9) }
  0x22   : > { %441 = vmatprep.subr.bf16.mxu0 (!%p171_p9), %v440_v14  ;;  %450 = vmatprep.subr.bf16.mxu1 (!%p171_p9), %v440_v14  ;;  %v447_v23 = vpack.c.bf16 (!%p171_p9), %v209_v21, %v207_v20 }
  0x23   : > { %443 = vmatpush1.bf16.msra.mxu0 (!%p171_p9), %v442_v18  ;;  %452 = vmatpush1.bf16.msra.mxu1 (!%p171_p9), %v442_v18 }
  0x24   : > { %446 = vmatprep.subr.msk.bf16.mxu0 %vm445_vm2, %v444_v19  ;;  %451 = vmatprep.subr.msk.bf16.mxu1 %vm445_vm2, %v444_v19  ;;  %s439_s18 = sshll.u32 (%p559_p5), %s419_s15, 4 }
  0x25   : > { %220 = vperm.xlu0 %481, %v212_v22   ;;  %s339_s23 = scalar_lea.vmem (%p559_p5), %s609_s3, %s439_s18 }
  0x27   : > { %449 = vmatpush1.bf16.msk.msra.mxu0 %vm445_vm2, %v447_v23  ;;  %453 = vmatpush1.bf16.msk.msra.mxu1 %vm445_vm2, %v447_v23 }
  0x2a   : > { %431 = vmatmul.mubr.msk.f32.vlgmr.msra.gmra.mrb[0].mxu0 %vm223_vm3, %v201_v24  ;;  %432 = vmatmul.mubr.msk.f32.vlgmr.msra.gmra.mrb[0].mxu1 %vm223_vm3, %v202_v25 }
  0x9e   : > { %v216_v26 = vpop.permute.xlu0 %215 }
  0xa4   : > { %v221_v27 = vpop.permute.xlu0 %220 }
  0xfd   : > { %v303_v28 = vpop.f32.mrb[0].mxu0  ;;  %v309_v29 = vpop.f32.mrb[0].mxu1 }
  0xfe   : > { %v304_v30 = vadd.f32 %v303_v28, %v216_v26  ;;  %v310_v31 = vadd.f32 %v309_v29, %v221_v27  ;;  %v305_v32 = vpop.f32.mrb[1].mxu0  ;;  %v311_v33 = vpop.f32.mrb[1].mxu1  ;;  %336 = sbr.rel (!%p559_p5) target bundleno = 269 (0x10d), region = 59 }
  0xff   : > { %v306_v34 = vadd.f32 %v305_v32, %v216_v26  ;;  %v312_v35 = vadd.f32 %v311_v33, %v221_v27 }
 0x100   : > { %vm314_vm4 = vcmp.ge.f32.partialorder %v304_v30, 0.0  ;;  %v318_v36 = vmul.f32 0.2, %v304_v30  ;;  %vm316_vm5 = vcmp.ge.f32.partialorder %v310_v31, 0.0  ;;  %v320_v37 = vmul.f32 0.2, %v310_v31 }
 0x101   : > { %vm315_vm6 = vcmp.ge.f32.partialorder %v306_v34, 0.0  ;;  %v319_v38 = vmul.f32 0.2, %v306_v34  ;;  %vm317_vm7 = vcmp.ge.f32.partialorder %v312_v35, 0.0  ;;  %v321_v39 = vmul.f32 0.2, %v312_v35 }
 0x102   : > { %v322_v40 = vsel %vm314_vm4, %v304_v30, %v318_v36  ;;  %v324_v41 = vsel %vm316_vm5, %v310_v31, %v320_v37 }
 0x103   : > { %326 = vst [vmem:[%s198_s12] sm:$0xff] %v322_v40  ;;  %328 = vst [vmem:[%s198_s12 + $0x10] sm:$0xff] %v324_v41  ;;  %v323_v42 = vsel %vm315_vm6, %v306_v34, %v319_v38  ;;  %v325_v43 = vsel %vm317_vm7, %v312_v35, %v321_v39 }
 0x104   : > { %327 = vst [vmem:[%s198_s12 + $0x8] sm:$0xff] %v323_v42  ;;  %329 = vst [vmem:[%s198_s12 + $0x18] sm:$0xff] %v325_v43 }
 0x10a   : > { %v352_v44 = vld [vmem:[%s198_s12] sm:$0xff]  ;;  %v356_v46 = vld [vmem:[%s198_s12 + $0x10] sm:$0xff] }
 0x10b   : > { %v354_v45 = vld [vmem:[%s198_s12 + $0x8] sm:$0xff]  ;;  %v358_v47 = vld [vmem:[%s198_s12 + $0x18] sm:$0xff]  ;;  %353 = vst [vmem:[%s339_s23] sm:$0xff] %v352_v44  ;;  %357 = vst [vmem:[%s339_s23 + $0x20] sm:$0xff] %v356_v46 }
 0x10c   : > { %355 = vst [vmem:[%s339_s23 + $0x8] sm:$0xff] %v354_v45  ;;  %359 = vst [vmem:[%s339_s23 + $0x28] sm:$0xff] %v358_v47 }
 0x10d PF: > { %p10_p10 = scmp.ge.s32.totalorder %s546_s16, 4   ;;  %s611_s12 = smov %s500_s13 }
 0x10e   : > { %s612_s13 = smov %s557_s19  ;;  %s613_s14 = smov %s546_s16 }
 0x10f   :  { %12 = sbr.rel (!%p10_p10) target bundleno = 2 (0x2), region = 113 }

// kernel: contextnet_forward.9
= control target key start
LH: loop header
LB: loop body
LE: loop exit
PB: predicated region body
PF: predicated region fallthrough
CT: control target
= control target key end

     0   :  { %s642_s12 = smov 0   ;;  %s644_s13 = smov 0   ;;  %s838_s0 = inlined_call_operand.vmem [shape: f32[16,144], index: 0, kind: input, shape index: {}]   ;;  %s839_s1 = inlined_call_operand.vmem [shape: f32[144,512], index: 1, kind: input, shape index: {}]   ;;  %s840_s2 = inlined_call_operand.vmem [shape: f32[16,1], index: 2, kind: input, shape index: {}]   ;;  %s841_s3 = inlined_call_operand.vmem [shape: f32[16,512], index: 3, kind: output, shape index: {}]  }
   0x1   :  { %s646_s14 = smov 0  }
   0x2 LB: > { %s498_s15 = sadd.s32 4294967295, %s619_s14   ;;  %s659_s16 = sadd.s32 1, %s619_s14   ;;  %s619_s14 = sphi %s646_s14, %s845_s14   ;;  %s615_s13 = sphi %s644_s13, %s844_s13   ;;  %s611_s12 = sphi %s642_s12, %s843_s12  }
   0x3   : > { %s38_s17 = ssub.s32 %s619_s14, %s659_s16  ;;  %s41_s18 = sadd.s32 1, %s615_s13 }
   0x4   : > { %p39_p0 = scmp.eq.s32.totalorder %s38_s17, 0  ;;  %p48_p1 = scmp.ne.s32.totalorder %s615_s13, %s611_s12 }
   0x5   : > { %p49_p2 = scmp.eq.s32.totalorder %s619_s14, 0  ;;  %p99_p3 = scmp.eq.s32.totalorder %s498_s15, 1 }
   0x6   : > { %s670_s19 = scalar_select %p39_p0, %s615_s13, %s41_s18  }
   0x7   : > { %p50_p4 = por %p49_p2, %p48_p1  ;;  %p672_p5 = por %p99_p3, %p48_p1 }
   0x8   : > { %p501_p6 = scmp.ge.s32.totalorder %s619_s14, 2 }
   0xa   : > { %127 = sbr.rel (%p501_p6) target bundleno = 39 (0x27), region = 24 }
  0x11   : > { %130 = sbr.rel (!%p50_p4) target bundleno = 39 (0x27), region = 28  ;;  %s132_s21 = sand.u32 (%p50_p4), 1, %s615_s13  }
  0x12   : > { %s513_s22 = sshll.u32 (%p50_p4), %s619_s14, 4  ;;  %s569_s23 = smul.u32 (%p50_p4), 288, %s132_s21 }
  0x13   : > { %s682_s26 = scalar_lea.vmem (%p50_p4), %s839_s1, %s513_s22 }
  0x14   : > { %v150_v0 = vld [vmem:[%s682_s26] sm:$0xff] (%p50_p4)  ;;  %v152_v1 = vld [vmem:[%s682_s26 + $0x8] sm:$0xff] (%p50_p4)  ;;  %s690_s27 = scalar_lea.vmem (%p50_p4), [#allocation2], %s569_s23 }
  0x15   : > { %v154_v2 = vld [vmem:[%s682_s26 + $0x20] sm:$0xff] (%p50_p4)  ;;  %v156_v3 = vld [vmem:[%s682_s26 + $0x28] sm:$0xff] (%p50_p4)  ;;  %151 = vst [vmem:[%s690_s27] sm:$0xff] (%p50_p4), %v150_v0  ;;  %153 = vst [vmem:[%s690_s27 + $0x8] sm:$0xff] (%p50_p4), %v152_v1 }
  0x16   : > { %v158_v4 = vld [vmem:[%s682_s26 + $0x40] sm:$0xff] (%p50_p4)  ;;  %v160_v5 = vld [vmem:[%s682_s26 + $0x48] sm:$0xff] (%p50_p4)  ;;  %155 = vst [vmem:[%s690_s27 + $0x10] sm:$0xff] (%p50_p4), %v154_v2  ;;  %157 = vst [vmem:[%s690_s27 + $0x18] sm:$0xff] (%p50_p4), %v156_v3 }
  0x17   : > { %159 = vst [vmem:[%s690_s27 + $0x20] sm:$0xff] (%p50_p4), %v158_v4  ;;  %161 = vst [vmem:[%s690_s27 + $0x28] sm:$0xff] (%p50_p4), %v160_v5  ;;  %v162_v6 = vld [vmem:[%s682_s26 + $0x60] sm:$0xff] (%p50_p4)  ;;  %v164_v7 = vld [vmem:[%s682_s26 + $0x68] sm:$0xff] (%p50_p4) }
  0x18   : > { %v166_v8 = vld [vmem:[%s682_s26 + $0x80] sm:$0xff]  ;;  %163 = vst [vmem:[%s690_s27 + $0x30] sm:$0xff] %v162_v6  ;;  %165 = vst [vmem:[%s690_s27 + $0x38] sm:$0xff] %v164_v7  ;;  %v168_v9 = vld [vmem:[%s682_s26 + $0x88] sm:$0xff] }
  0x19   : > { %167 = vst [vmem:[%s690_s27 + $0x40] sm:$0xff] %v166_v8  ;;  %v170_v10 = vld [vmem:[%s682_s26 + $0xa0] sm:$0xff]  ;;  %v172_v11 = vld [vmem:[%s682_s26 + $0xa8] sm:$0xff]  ;;  %169 = vst [vmem:[%s690_s27 + $0x48] sm:$0xff] %v168_v9 }
  0x1a   : > { %171 = vst [vmem:[%s690_s27 + $0x50] sm:$0xff] %v170_v10  ;;  %173 = vst [vmem:[%s690_s27 + $0x58] sm:$0xff] %v172_v11  ;;  %v174_v12 = vld [vmem:[%s682_s26 + $0xc0] sm:$0xff]  ;;  %v176_v13 = vld [vmem:[%s682_s26 + $0xc8] sm:$0xff] }
  0x1b   : > { %v178_v14 = vld [vmem:[%s682_s26 + $0xe0] sm:$0xff]  ;;  %175 = vst [vmem:[%s690_s27 + $0x60] sm:$0xff] %v174_v12  ;;  %177 = vst [vmem:[%s690_s27 + $0x68] sm:$0xff] %v176_v13  ;;  %v180_v15 = vld [vmem:[%s682_s26 + $0xe8] sm:$0xff] }
  0x1c   : > { %179 = vst [vmem:[%s690_s27 + $0x70] sm:$0xff] %v178_v14  ;;  %v182_v16 = vld [vmem:[%s682_s26 + $0x100] sm:$0xff]  ;;  %v184_v17 = vld [vmem:[%s682_s26 + $0x108] sm:$0xff]  ;;  %181 = vst [vmem:[%s690_s27 + $0x78] sm:$0xff] %v180_v15 }
  0x1d   : > { %183 = vst [vmem:[%s690_s27 + $0x80] sm:$0xff] %v182_v16  ;;  %185 = vst [vmem:[%s690_s27 + $0x88] sm:$0xff] %v184_v17  ;;  %v186_v18 = vld [vmem:[%s682_s26 + $0x120] sm:$0xff]  ;;  %v188_v19 = vld [vmem:[%s682_s26 + $0x128] sm:$0xff] }
  0x1e   : > { %v190_v20 = vld [vmem:[%s682_s26 + $0x140] sm:$0xff]  ;;  %187 = vst [vmem:[%s690_s27 + $0x90] sm:$0xff] %v186_v18  ;;  %189 = vst [vmem:[%s690_s27 + $0x98] sm:$0xff] %v188_v19  ;;  %v192_v21 = vld [vmem:[%s682_s26 + $0x148] sm:$0xff] }
  0x1f   : > { %191 = vst [vmem:[%s690_s27 + $0xa0] sm:$0xff] %v190_v20  ;;  %v194_v22 = vld [vmem:[%s682_s26 + $0x160] sm:$0xff]  ;;  %v196_v23 = vld [vmem:[%s682_s26 + $0x168] sm:$0xff]  ;;  %193 = vst [vmem:[%s690_s27 + $0xa8] sm:$0xff] %v192_v21 }
  0x20   : > { %195 = vst [vmem:[%s690_s27 + $0xb0] sm:$0xff] %v194_v22  ;;  %197 = vst [vmem:[%s690_s27 + $0xb8] sm:$0xff] %v196_v23  ;;  %v198_v24 = vld [vmem:[%s682_s26 + $0x180] sm:$0xff]  ;;  %v200_v25 = vld [vmem:[%s682_s26 + $0x188] sm:$0xff] }
  0x21   : > { %v202_v26 = vld [vmem:[%s682_s26 + $0x1a0] sm:$0xff]  ;;  %199 = vst [vmem:[%s690_s27 + $0xc0] sm:$0xff] %v198_v24  ;;  %201 = vst [vmem:[%s690_s27 + $0xc8] sm:$0xff] %v200_v25  ;;  %v204_v27 = vld [vmem:[%s682_s26 + $0x1a8] sm:$0xff] }
  0x22   : > { %203 = vst [vmem:[%s690_s27 + $0xd0] sm:$0xff] %v202_v26  ;;  %v206_v28 = vld [vmem:[%s682_s26 + $0x1c0] sm:$0xff]  ;;  %v208_v29 = vld [vmem:[%s682_s26 + $0x1c8] sm:$0xff]  ;;  %205 = vst [vmem:[%s690_s27 + $0xd8] sm:$0xff] %v204_v27 }
  0x23   : > { %207 = vst [vmem:[%s690_s27 + $0xe0] sm:$0xff] %v206_v28  ;;  %209 = vst [vmem:[%s690_s27 + $0xe8] sm:$0xff] %v208_v29  ;;  %v210_v30 = vld [vmem:[%s682_s26 + $0x1e0] sm:$0xff]  ;;  %v212_v31 = vld [vmem:[%s682_s26 + $0x1e8] sm:$0xff] }
  0x24   : > { %v214_v32 = vld [vmem:[%s682_s26 + $0x200] sm:$0xff]  ;;  %211 = vst [vmem:[%s690_s27 + $0xf0] sm:$0xff] %v210_v30  ;;  %213 = vst [vmem:[%s690_s27 + $0xf8] sm:$0xff] %v212_v31  ;;  %v216_v33 = vld [vmem:[%s682_s26 + $0x208] sm:$0xff] }
  0x25   : > { %215 = vst [vmem:[%s690_s27 + $0x100] sm:$0xff] %v214_v32  ;;  %v218_v34 = vld [vmem:[%s682_s26 + $0x220] sm:$0xff]  ;;  %v220_v35 = vld [vmem:[%s682_s26 + $0x228] sm:$0xff]  ;;  %217 = vst [vmem:[%s690_s27 + $0x108] sm:$0xff] %v216_v33 }
  0x26   : > { %219 = vst [vmem:[%s690_s27 + $0x110] sm:$0xff] %v218_v34  ;;  %221 = vst [vmem:[%s690_s27 + $0x118] sm:$0xff] %v220_v35 }
  0x27 PF: > { %p504_p7 = scmp.ge.s32.totalorder %s619_s14, 1  ;;  %p226_p8 = scmp.lt.s32.totalorder %s619_s14, 3 }
  0x29   : > { %p227_p9 = pnand %p504_p7, %p226_p8 }
  0x2a   : > { %s233_s28 = sand.u32 (!%p227_p9), 1, %s611_s12   ;;  %v258_v36 = vld [vmem:[%s838_s0 + $0x8] sm:$0xff] (!%p227_p9)  ;;  %vm309_vm0 = vcmask (!%p227_p9), 130048   ;;  %v260_v37 = vld [vmem:[%s838_s0 + $0x18] sm:$0xff] (!%p227_p9)  ;;  %v297_v38 = vld [vmem:[%s840_s2] sm:$0xff] (!%p227_p9)  ;;  %v621_v39 = vmov (!%p227_p9), 0  }
  0x2b   : > { %230 = sbr.rel (%p227_p9) target bundleno = 313 (0x139), region = 51  ;;  %506 = vmatprep.mubr.msk.f32.mxu0 (!%p227_p9), %vm309_vm0, %v258_v36  ;;  %507 = vmatprep.mubr.msk.f32.mxu1 (!%p227_p9), %vm309_vm0, %v260_v37  ;;  %v298_v53 = vld [vmem:[%s840_s2 + $0x8] sm:$0xff] (!%p227_p9)  ;;  %v257_v31 = vld [vmem:[%s838_s0] sm:$0xff] (!%p227_p9)  ;;  %v259_v32 = vld [vmem:[%s838_s0 + $0x10] sm:$0xff] (!%p227_p9)  ;;  %s505_s23 = sshll.u32 (!%p227_p9), %s233_s28, 5 }
  0x2c   : > { %s570_s6 = smul.u32 (!%p227_p9), 288, %s233_s28  ;;  %596 = vset.pattern.permute.xlu0 (!%p227_p9), %v621_v39  ;;  %s254_s12 = scalar_lea.vmem (!%p227_p9), [#allocation3], %s505_s23 }
  0x2d   : > { %301 = vperm.xlu0 (!%p227_p9), %596, %v297_v38  }
  0x2e   : > { %s772_s9 = scalar_lea.vmem (!%p227_p9), [#allocation2], %s570_s6 }
  0x2f   : > { %v262_v40 = vld [vmem:[%s772_s9 + $0x8] sm:$0xff] (!%p227_p9)  ;;  %v264_v41 = vld [vmem:[%s772_s9 + $0x18] sm:$0xff] (!%p227_p9)  ;;  %v261_v42 = vld [vmem:[%s772_s9] sm:$0xff] (!%p227_p9) }
  0x30   : > { %v515_v43 = vpack.c.bf16 (!%p227_p9), %v264_v41, %v262_v40  ;;  %v263_v44 = vld [vmem:[%s772_s9 + $0x10] sm:$0xff] (!%p227_p9)  ;;  %v266_v45 = vld [vmem:[%s772_s9 + $0x28] sm:$0xff] (!%p227_p9)  ;;  %v268_v46 = vld [vmem:[%s772_s9 + $0x38] sm:$0xff] (!%p227_p9) }
  0x31   : > { %v517_v47 = vpack.c.bf16 (!%p227_p9), %v263_v44, %v261_v42  ;;  %v519_v48 = vpack.c.bf16 (!%p227_p9), %v268_v46, %v266_v45  ;;  %v265_v49 = vld [vmem:[%s772_s9 + $0x20] sm:$0xff] (!%p227_p9)  ;;  %v267_v50 = vld [vmem:[%s772_s9 + $0x30] sm:$0xff] (!%p227_p9)  ;;  %v270_v51 = vld [vmem:[%s772_s9 + $0x48] sm:$0xff] (!%p227_p9)  ;;  %306 = vperm.xlu0 (!%p227_p9), %596, %v298_v53  }
  0x32   : > { %516 = vmatprep.subr.bf16.mxu0 %v515_v43  ;;  %551 = vmatprep.subr.bf16.mxu1 %v515_v43  ;;  %v272_v52 = vld [vmem:[%s772_s9 + $0x58] sm:$0xff]  ;;  %v521_v54 = vpack.c.bf16 %v267_v50, %v265_v49  ;;  %v269_v56 = vld [vmem:[%s772_s9 + $0x40] sm:$0xff]  ;;  %v271_v57 = vld [vmem:[%s772_s9 + $0x50] sm:$0xff]  ;;  %s514_s24 = sshll.u32 (%p672_p5), %s498_s15, 4 }
  0x33   : > { %518 = vmatpush1.bf16.msra.mxu0 %v517_v47  ;;  %560 = vmatpush1.bf16.msra.mxu1 %v517_v47  ;;  %v523_v55 = vpack.c.bf16 %v272_v52, %v270_v51  ;;  %v274_v58 = vld [vmem:[%s772_s9 + $0x68] sm:$0xff]  ;;  %v276_v59 = vld [vmem:[%s772_s9 + $0x78] sm:$0xff]  ;;  %v525_v60 = vpack.c.bf16 %v271_v57, %v269_v56  ;;  %v273_v62 = vld [vmem:[%s772_s9 + $0x60] sm:$0xff]  ;;  %s418_s27 = scalar_lea.vmem (%p672_p5), %s841_s3, %s514_s24 }
  0x34   : > { %520 = vmatprep.subr.bf16.mxu0 %v519_v48  ;;  %552 = vmatprep.subr.bf16.mxu1 %v519_v48  ;;  %v527_v61 = vpack.c.bf16 %v276_v59, %v274_v58  ;;  %v275_v63 = vld [vmem:[%s772_s9 + $0x70] sm:$0xff]  ;;  %v278_v0 = vld [vmem:[%s772_s9 + $0x88] sm:$0xff]  ;;  %v280_v1 = vld [vmem:[%s772_s9 + $0x98] sm:$0xff] }
  0x35   : > { %v529_v2 = vpack.c.bf16 %v275_v63, %v273_v62  ;;  %v531_v3 = vpack.c.bf16 %v280_v1, %v278_v0  ;;  %v277_v4 = vld [vmem:[%s772_s9 + $0x80] sm:$0xff]  ;;  %v279_v5 = vld [vmem:[%s772_s9 + $0x90] sm:$0xff]  ;;  %v282_v6 = vld [vmem:[%s772_s9 + $0xa8] sm:$0xff] }
  0x36   : > { %v284_v7 = vld [vmem:[%s772_s9 + $0xb8] sm:$0xff]  ;;  %v533_v8 = vpack.c.bf16 %v279_v5, %v277_v4  ;;  %v281_v10 = vld [vmem:[%s772_s9 + $0xa0] sm:$0xff]  ;;  %v283_v11 = vld [vmem:[%s772_s9 + $0xb0] sm:$0xff] }
  0x37   : > { %522 = vmatpush1.bf16.msra.mxu0 %v521_v54  ;;  %561 = vmatpush1.bf16.msra.mxu1 %v521_v54  ;;  %v535_v9 = vpack.c.bf16 %v284_v7, %v282_v6  ;;  %v286_v12 = vld [vmem:[%s772_s9 + $0xc8] sm:$0xff]  ;;  %v288_v13 = vld [vmem:[%s772_s9 + $0xd8] sm:$0xff]  ;;  %v537_v14 = vpack.c.bf16 %v283_v11, %v281_v10  ;;  %v285_v16 = vld [vmem:[%s772_s9 + $0xc0] sm:$0xff] }
  0x38   : > { %524 = vmatprep.subr.bf16.mxu0 %v523_v55  ;;  %553 = vmatprep.subr.bf16.mxu1 %v523_v55  ;;  %v539_v15 = vpack.c.bf16 %v288_v13, %v286_v12  ;;  %v287_v17 = vld [vmem:[%s772_s9 + $0xd0] sm:$0xff]  ;;  %v290_v18 = vld [vmem:[%s772_s9 + $0xe8] sm:$0xff]  ;;  %v292_v19 = vld [vmem:[%s772_s9 + $0xf8] sm:$0xff] }
  0x39   : > { %v541_v20 = vpack.c.bf16 %v287_v17, %v285_v16  ;;  %v543_v21 = vpack.c.bf16 %v292_v19, %v290_v18  ;;  %v289_v22 = vld [vmem:[%s772_s9 + $0xe0] sm:$0xff]  ;;  %v291_v23 = vld [vmem:[%s772_s9 + $0xf0] sm:$0xff]  ;;  %v294_v24 = vld [vmem:[%s772_s9 + $0x108] sm:$0xff] }
  0x3a   : > { %v296_v25 = vld [vmem:[%s772_s9 + $0x118] sm:$0xff]  ;;  %v545_v26 = vpack.c.bf16 %v291_v23, %v289_v22  ;;  %v293_v28 = vld [vmem:[%s772_s9 + $0x100] sm:$0xff]  ;;  %v295_v29 = vld [vmem:[%s772_s9 + $0x110] sm:$0xff] }
  0x3b   : > { %526 = vmatpush1.bf16.msra.mxu0 %v525_v60  ;;  %562 = vmatpush1.bf16.msra.mxu1 %v525_v60  ;;  %v547_v27 = vpack.c.bf16 %v296_v25, %v294_v24  ;;  %v549_v30 = vpack.c.bf16 %v295_v29, %v293_v28 }
  0x3c   : > { %528 = vmatprep.subr.bf16.mxu0 %v527_v61  ;;  %554 = vmatprep.subr.bf16.mxu1 %v527_v61 }
  0x3f   : > { %530 = vmatpush1.bf16.msra.mxu0 %v529_v2  ;;  %563 = vmatpush1.bf16.msra.mxu1 %v529_v2 }
  0x40   : > { %532 = vmatprep.subr.bf16.mxu0 %v531_v3  ;;  %555 = vmatprep.subr.bf16.mxu1 %v531_v3 }
  0x43   : > { %534 = vmatpush1.bf16.msra.mxu0 %v533_v8  ;;  %564 = vmatpush1.bf16.msra.mxu1 %v533_v8 }
  0x44   : > { %536 = vmatprep.subr.bf16.mxu0 %v535_v9  ;;  %556 = vmatprep.subr.bf16.mxu1 %v535_v9 }
  0x47   : > { %538 = vmatpush1.bf16.msra.mxu0 %v537_v14  ;;  %565 = vmatpush1.bf16.msra.mxu1 %v537_v14 }
  0x48   : > { %540 = vmatprep.subr.bf16.mxu0 %v539_v15  ;;  %557 = vmatprep.subr.bf16.mxu1 %v539_v15 }
  0x4b   : > { %542 = vmatpush1.bf16.msra.mxu0 %v541_v20  ;;  %566 = vmatpush1.bf16.msra.mxu1 %v541_v20 }
  0x4c   : > { %544 = vmatprep.subr.bf16.mxu0 %v543_v21  ;;  %558 = vmatprep.subr.bf16.mxu1 %v543_v21 }
  0x4f   : > { %546 = vmatpush1.bf16.msra.mxu0 %v545_v26  ;;  %567 = vmatpush1.bf16.msra.mxu1 %v545_v26 }
  0x50   : > { %548 = vmatprep.subr.bf16.mxu0 %v547_v27  ;;  %559 = vmatprep.subr.bf16.mxu1 %v547_v27 }
  0x53   : > { %550 = vmatpush1.bf16.msra.mxu0 %v549_v30  ;;  %568 = vmatpush1.bf16.msra.mxu1 %v549_v30 }
  0x56   : > { %381 = vmatmul.mubr.f32.vlgmr.msra.gmra.mrb[0].mxu0 %v257_v31  ;;  %387 = vmatmul.mubr.f32.vlgmr.msra.gmra.mrb[0].mxu1 %v259_v32 }
  0xac   : > { %v302_v33 = vpop.permute.xlu0 %301 }
  0xb0   : > { %v307_v34 = vpop.permute.xlu0 %306 }
 0x129   : > { %v382_v35 = vpop.f32.mrb[0].mxu0  ;;  %v388_v36 = vpop.f32.mrb[0].mxu1 }
 0x12a   : > { %v383_v37 = vadd.f32 %v382_v35, %v302_v33  ;;  %v389_v38 = vadd.f32 %v388_v36, %v307_v34  ;;  %v384_v39 = vpop.f32.mrb[1].mxu0  ;;  %v390_v40 = vpop.f32.mrb[1].mxu1  ;;  %415 = sbr.rel (!%p672_p5) target bundleno = 313 (0x139), region = 59 }
 0x12b   : > { %v385_v41 = vadd.f32 %v384_v39, %v302_v33  ;;  %v391_v42 = vadd.f32 %v390_v40, %v307_v34 }
 0x12c   : > { %vm393_vm1 = vcmp.ge.f32.partialorder %v383_v37, 0.0  ;;  %v397_v43 = vmul.f32 0.2, %v383_v37  ;;  %vm395_vm2 = vcmp.ge.f32.partialorder %v389_v38, 0.0  ;;  %v399_v44 = vmul.f32 0.2, %v389_v38 }
 0x12d   : > { %vm394_vm3 = vcmp.ge.f32.partialorder %v385_v41, 0.0  ;;  %v398_v45 = vmul.f32 0.2, %v385_v41  ;;  %vm396_vm4 = vcmp.ge.f32.partialorder %v391_v42, 0.0  ;;  %v400_v46 = vmul.f32 0.2, %v391_v42 }
 0x12e   : > { %v401_v47 = vsel %vm393_vm1, %v383_v37, %v397_v43  ;;  %v403_v48 = vsel %vm395_vm2, %v389_v38, %v399_v44 }
 0x12f   : > { %405 = vst [vmem:[%s254_s12] sm:$0xff] %v401_v47  ;;  %407 = vst [vmem:[%s254_s12 + $0x10] sm:$0xff] %v403_v48  ;;  %v402_v49 = vsel %vm394_vm3, %v385_v41, %v398_v45  ;;  %v404_v50 = vsel %vm396_vm4, %v391_v42, %v400_v46 }
 0x130   : > { %406 = vst [vmem:[%s254_s12 + $0x8] sm:$0xff] %v402_v49  ;;  %408 = vst [vmem:[%s254_s12 + $0x18] sm:$0xff] %v404_v50 }
 0x136   : > { %v431_v51 = vld [vmem:[%s254_s12] sm:$0xff]  ;;  %v435_v53 = vld [vmem:[%s254_s12 + $0x10] sm:$0xff] }
 0x137   : > { %v433_v52 = vld [vmem:[%s254_s12 + $0x8] sm:$0xff]  ;;  %v437_v54 = vld [vmem:[%s254_s12 + $0x18] sm:$0xff]  ;;  %432 = vst [vmem:[%s418_s27] sm:$0xff] %v431_v51  ;;  %436 = vst [vmem:[%s418_s27 + $0x20] sm:$0xff] %v435_v53 }
 0x138   : > { %434 = vst [vmem:[%s418_s27 + $0x8] sm:$0xff] %v433_v52  ;;  %438 = vst [vmem:[%s418_s27 + $0x28] sm:$0xff] %v437_v54 }
 0x139 PF: > { %p10_p10 = scmp.ge.s32.totalorder %s659_s16, 4   ;;  %s843_s12 = smov %s615_s13 }
 0x13a   : > { %s844_s13 = smov %s670_s19  ;;  %s845_s14 = smov %s659_s16 }
 0x13b   :  { %12 = sbr.rel (!%p10_p10) target bundleno = 2 (0x2), region = 113 }

// kernel: contextnet_forward.10
= control target key start
LH: loop header
LB: loop body
LE: loop exit
PB: predicated region body
PF: predicated region fallthrough
CT: control target
= control target key end

     0   :  { %v235_v0 = vmov 0.0|0.0   ;;  %v236_v6 = vmov 0   ;;  %vm64_vm0 = vcmask 130048   ;;  %s381_s1 = inlined_call_operand.vmem [shape: f32[144,128], index: 1, kind: input, shape index: {}]   ;;  %s382_s0 = inlined_call_operand.vmem [shape: f32[32,144], index: 0, kind: input, shape index: {}]   ;;  %s383_s2 = inlined_call_operand.vmem [shape: f32[32,1], index: 2, kind: input, shape index: {}]   ;;  %s384_s3 = inlined_call_operand.vmem [shape: f32[32,128], index: 3, kind: output, shape index: {}]  }
   0x1   :  { %186 = vmatprep.subr.bf16.mxu0 %v235_v0  ;;  %213 = vmatprep.subr.bf16.mxu1 %v235_v0  ;;  %v22_v1 = vld [vmem:[%s381_s1] sm:$0xff]  ;;  %v23_v2 = vld [vmem:[%s381_s1 + $0x8] sm:$0xff]  ;;  %v24_v3 = vld [vmem:[%s381_s1 + $0x10] sm:$0xff] }
   0x2   :  { %v187_v4 = vpack.c.bf16 %v23_v2, %v22_v1  ;;  %v25_v5 = vld [vmem:[%s381_s1 + $0x18] sm:$0xff]  ;;  %234 = vset.pattern.permute.xlu1 %v236_v6  ;;  %233 = vset.pattern.permute.xlu0 %v236_v6  ;;  %v26_v8 = vld [vmem:[%s381_s1 + $0x20] sm:$0xff]  ;;  %v27_v9 = vld [vmem:[%s381_s1 + $0x28] sm:$0xff] }
   0x3   :  { %v190_v7 = vpack.c.bf16 %v25_v5, %v24_v3  ;;  %v15_v10 = vld [vmem:[%s382_s0 + $0x8] sm:$0xff]  ;;  %v193_v12 = vpack.c.bf16 %v27_v9, %v26_v8  ;;  %v28_v13 = vld [vmem:[%s381_s1 + $0x30] sm:$0xff]  ;;  %v29_v14 = vld [vmem:[%s381_s1 + $0x38] sm:$0xff] }
   0x4   :  { %188 = vmatpush1.bf16.msra.mxu0 %v187_v4  ;;  %222 = vmatpush1.bf16.msra.mxu1 %v187_v4  ;;  %v19_v11 = vld [vmem:[%s382_s0 + $0x28] sm:$0xff]  ;;  %v42_v15 = vld [vmem:[%s383_s2 + $0x10] sm:$0xff]  ;;  %v40_v16 = vld [vmem:[%s383_s2] sm:$0xff]  ;;  %v196_v17 = vpack.c.bf16 %v29_v14, %v28_v13 }
   0x5   :  { %189 = vmatprep.subr.bf16.mxu0 %v235_v0  ;;  %214 = vmatprep.subr.bf16.mxu1 %v235_v0  ;;  %v43_v18 = vld [vmem:[%s383_s2 + $0x18] sm:$0xff]  ;;  %v41_v19 = vld [vmem:[%s383_s2 + $0x8] sm:$0xff]  ;;  %v30_v20 = vld [vmem:[%s381_s1 + $0x40] sm:$0xff] }
   0x6   :  { %182 = vmatprep.mubr.msk.f32.mxu0 %vm64_vm0, %v15_v10  ;;  %184 = vmatprep.mubr.msk.f32.mxu1 %vm64_vm0, %v19_v11  ;;  %v31_v21 = vld [vmem:[%s381_s1 + $0x48] sm:$0xff]  ;;  %v32_v23 = vld [vmem:[%s381_s1 + $0x50] sm:$0xff]  ;;  %v33_v24 = vld [vmem:[%s381_s1 + $0x58] sm:$0xff] }
   0x7   :  { %56 = vperm.xlu1 %234, %v42_v15   ;;  %46 = vperm.xlu0 %233, %v40_v16   ;;  %v199_v22 = vpack.c.bf16 %v31_v21, %v30_v20  ;;  %v202_v25 = vpack.c.bf16 %v33_v24, %v32_v23  ;;  %v34_v26 = vld [vmem:[%s381_s1 + $0x60] sm:$0xff]  ;;  %v35_v27 = vld [vmem:[%s381_s1 + $0x68] sm:$0xff]  ;;  %v36_v29 = vld [vmem:[%s381_s1 + $0x70] sm:$0xff] }
   0x8   :  { %191 = vmatpush1.bf16.msra.mxu0 %v190_v7  ;;  %223 = vmatpush1.bf16.msra.mxu1 %v190_v7  ;;  %v205_v28 = vpack.c.bf16 %v35_v27, %v34_v26  ;;  %v37_v30 = vld [vmem:[%s381_s1 + $0x78] sm:$0xff]  ;;  %v38_v32 = vld [vmem:[%s381_s1 + $0x80] sm:$0xff]  ;;  %v39_v33 = vld [vmem:[%s381_s1 + $0x88] sm:$0xff] }
   0x9   :  { %192 = vmatprep.subr.bf16.mxu0 %v235_v0  ;;  %215 = vmatprep.subr.bf16.mxu1 %v235_v0  ;;  %v208_v31 = vpack.c.bf16 %v37_v30, %v36_v29  ;;  %v211_v34 = vpack.c.bf16 %v39_v33, %v38_v32  ;;  %v14_v35 = vld [vmem:[%s382_s0] sm:$0xff]  ;;  %v17_v37 = vld [vmem:[%s382_s0 + $0x18] sm:$0xff]  ;;  %v16_v39 = vld [vmem:[%s382_s0 + $0x10] sm:$0xff] }
   0xa   :  { %v18_v36 = vld [vmem:[%s382_s0 + $0x20] sm:$0xff]  ;;  %v21_v38 = vld [vmem:[%s382_s0 + $0x38] sm:$0xff]  ;;  %v20_v40 = vld [vmem:[%s382_s0 + $0x30] sm:$0xff] }
   0xb   :  { %61 = vperm.xlu1 %234, %v43_v18   ;;  %51 = vperm.xlu0 %233, %v41_v19  }
   0xc   :  { %194 = vmatpush1.bf16.msra.mxu0 %v193_v12  ;;  %224 = vmatpush1.bf16.msra.mxu1 %v193_v12 }
   0xd   :  { %195 = vmatprep.subr.bf16.mxu0 %v235_v0  ;;  %216 = vmatprep.subr.bf16.mxu1 %v235_v0 }
  0x10   :  { %197 = vmatpush1.bf16.msra.mxu0 %v196_v17  ;;  %225 = vmatpush1.bf16.msra.mxu1 %v196_v17 }
  0x11   :  { %198 = vmatprep.subr.bf16.mxu0 %v235_v0  ;;  %217 = vmatprep.subr.bf16.mxu1 %v235_v0 }
  0x14   :  { %200 = vmatpush1.bf16.msra.mxu0 %v199_v22  ;;  %226 = vmatpush1.bf16.msra.mxu1 %v199_v22 }
  0x15   :  { %201 = vmatprep.subr.bf16.mxu0 %v235_v0  ;;  %218 = vmatprep.subr.bf16.mxu1 %v235_v0 }
  0x18   :  { %203 = vmatpush1.bf16.msra.mxu0 %v202_v25  ;;  %227 = vmatpush1.bf16.msra.mxu1 %v202_v25 }
  0x19   :  { %204 = vmatprep.subr.bf16.mxu0 %v235_v0  ;;  %219 = vmatprep.subr.bf16.mxu1 %v235_v0 }
  0x1c   :  { %206 = vmatpush1.bf16.msra.mxu0 %v205_v28  ;;  %228 = vmatpush1.bf16.msra.mxu1 %v205_v28 }
  0x1d   :  { %207 = vmatprep.subr.bf16.mxu0 %v235_v0  ;;  %220 = vmatprep.subr.bf16.mxu1 %v235_v0 }
  0x20   :  { %209 = vmatpush1.bf16.msra.mxu0 %v208_v31  ;;  %229 = vmatpush1.bf16.msra.mxu1 %v208_v31 }
  0x21   :  { %210 = vmatprep.subr.bf16.mxu0 %v235_v0  ;;  %221 = vmatprep.subr.bf16.mxu1 %v235_v0 }
  0x24   :  { %212 = vmatpush1.bf16.msra.mxu0 %v211_v34  ;;  %230 = vmatpush1.bf16.msra.mxu1 %v211_v34 }
  0x27   :  { %142 = vmatmul.mubr.f32.vlgmr.msra.gmra.mrb[0].mxu0 %v14_v35  ;;  %152 = vmatmul.mubr.f32.vlgmr.msra.gmra.mrb[0].mxu1 %v18_v36 }
  0x28   :  { %183 = vmatprep.mubr.msk.f32.mxu0 %vm64_vm0, %v17_v37  ;;  %185 = vmatprep.mubr.msk.f32.mxu1 %vm64_vm0, %v21_v38 }
  0x2b   :  { %147 = vmatmul.mubr.f32.gmra.mrb[2].mxu0 %v16_v39  ;;  %157 = vmatmul.mubr.f32.gmra.mrb[2].mxu1 %v20_v40 }
  0x86   :  { %v57_v41 = vpop.permute.xlu1 %56  ;;  %v47_v42 = vpop.permute.xlu0 %46 }
  0x8a   :  { %v62_v49 = vpop.permute.xlu1 %61  ;;  %v52_v50 = vpop.permute.xlu0 %51 }
  0xfa   :  { %v143_v43 = vpop.f32.mrb[0].mxu0  ;;  %v153_v44 = vpop.f32.mrb[0].mxu1 }
  0xfb   :  { %v144_v45 = vadd.f32 %v143_v43, %v47_v42  ;;  %v154_v46 = vadd.f32 %v153_v44, %v57_v41  ;;  %v145_v47 = vpop.f32.mrb[1].mxu0  ;;  %v155_v48 = vpop.f32.mrb[1].mxu1 }
  0xfd   :  { %vm162_vm1 = vcmp.ge.f32.partialorder %v144_v45, 0.0  ;;  %v166_v51 = vmul.f32 0.2, %v144_v45  ;;  %vm164_vm2 = vcmp.ge.f32.partialorder %v154_v46, 0.0  ;;  %v168_v52 = vmul.f32 0.2, %v154_v46 }
  0xfe   :  { %v148_v53 = vpop.f32.mrb[2].mxu0  ;;  %v158_v54 = vpop.f32.mrb[2].mxu1 }
  0xff   :  { %v170_v55 = vsel %vm162_vm1, %v144_v45, %v166_v51  ;;  %v172_v56 = vsel %vm164_vm2, %v154_v46, %v168_v52  ;;  %v149_v57 = vadd.f32 %v148_v53, %v52_v50  ;;  %v159_v58 = vadd.f32 %v158_v54, %v62_v49  ;;  %v150_v59 = vpop.f32.mrb[3].mxu0  ;;  %v160_v60 = vpop.f32.mrb[3].mxu1 }
 0x100   :  { %174 = vst [vmem:[%s384_s3] sm:$0xff] %v170_v55  ;;  %176 = vst [vmem:[%s384_s3 + $0x10] sm:$0xff] %v172_v56 }
 0x101   :  { %vm163_vm3 = vcmp.ge.f32.partialorder %v149_v57, 0.0  ;;  %v167_v61 = vmul.f32 0.2, %v149_v57  ;;  %vm165_vm4 = vcmp.ge.f32.partialorder %v159_v58, 0.0  ;;  %v169_v62 = vmul.f32 0.2, %v159_v58 }
 0x103   :  { %v171_v63 = vsel %vm163_vm3, %v149_v57, %v167_v61  ;;  %v173_v0 = vsel %vm165_vm4, %v159_v58, %v169_v62 }
 0x104   :  { %175 = vst [vmem:[%s384_s3 + $0x8] sm:$0xff] %v171_v63  ;;  %177 = vst [vmem:[%s384_s3 + $0x18] sm:$0xff] %v173_v0 }

// kernel: contextnet_forward.11
= control target key start
LH: loop header
LB: loop body
LE: loop exit
PB: predicated region body
PF: predicated region fallthrough
CT: control target
= control target key end

     0   :  { %v402_v3 = vmov 0   ;;  %vm86_vm0 = vcmask 261120   ;;  %s595_s1 = inlined_call_operand.vmem [shape: f32[288,128], index: 1, kind: input, shape index: {}]   ;;  %s596_s0 = inlined_call_operand.vmem [shape: f32[32,288], index: 0, kind: input, shape index: {}]   ;;  %s597_s2 = inlined_call_operand.vmem [shape: f32[32,1], index: 2, kind: input, shape index: {}]   ;;  %s598_s3 = inlined_call_operand.vmem [shape: f32[32,128], index: 3, kind: output, shape index: {}]  }
   0x1   :  { %v42_v0 = vld [vmem:[%s595_s1 + $0x80] sm:$0xff]  ;;  %v43_v1 = vld [vmem:[%s595_s1 + $0x88] sm:$0xff]  ;;  %400 = vset.pattern.permute.xlu0 %v402_v3  ;;  %401 = vset.pattern.permute.xlu1 %v402_v3  ;;  %v44_v6 = vld [vmem:[%s595_s1 + $0x90] sm:$0xff] }
   0x2   :  { %v26_v2 = vld [vmem:[%s595_s1] sm:$0xff]  ;;  %v359_v4 = vpack.c.bf16 %v43_v1, %v42_v0  ;;  %v27_v5 = vld [vmem:[%s595_s1 + $0x8] sm:$0xff]  ;;  %v45_v7 = vld [vmem:[%s595_s1 + $0x98] sm:$0xff] }
   0x3   :  { %v361_v8 = vpack.c.bf16 %v27_v5, %v26_v2  ;;  %v363_v9 = vpack.c.bf16 %v45_v7, %v44_v6  ;;  %v28_v10 = vld [vmem:[%s595_s1 + $0x10] sm:$0xff]  ;;  %v29_v11 = vld [vmem:[%s595_s1 + $0x18] sm:$0xff]  ;;  %v46_v12 = vld [vmem:[%s595_s1 + $0xa0] sm:$0xff] }
   0x4   :  { %360 = vmatprep.subr.bf16.mxu0 %v359_v4  ;;  %v47_v13 = vld [vmem:[%s595_s1 + $0xa8] sm:$0xff]  ;;  %v365_v14 = vpack.c.bf16 %v29_v11, %v28_v10  ;;  %v30_v16 = vld [vmem:[%s595_s1 + $0x20] sm:$0xff]  ;;  %v48_v18 = vld [vmem:[%s595_s1 + $0xb0] sm:$0xff] }
   0x5   :  { %362 = vmatpush3.bf16.msra.mxu0 %v361_v8  ;;  %v367_v15 = vpack.c.bf16 %v47_v13, %v46_v12  ;;  %v31_v17 = vld [vmem:[%s595_s1 + $0x28] sm:$0xff]  ;;  %v49_v19 = vld [vmem:[%s595_s1 + $0xb8] sm:$0xff]  ;;  %v32_v22 = vld [vmem:[%s595_s1 + $0x30] sm:$0xff] }
   0x6   :  { %364 = vmatprep.subr.bf16.mxu0 %v363_v9  ;;  %v369_v20 = vpack.c.bf16 %v31_v17, %v30_v16  ;;  %v371_v21 = vpack.c.bf16 %v49_v19, %v48_v18  ;;  %v33_v23 = vld [vmem:[%s595_s1 + $0x38] sm:$0xff]  ;;  %v50_v24 = vld [vmem:[%s595_s1 + $0xc0] sm:$0xff]  ;;  %v51_v25 = vld [vmem:[%s595_s1 + $0xc8] sm:$0xff] }
   0x7   :  { %v58_v26 = vld [vmem:[%s595_s1 + $0x100] sm:$0xff]  ;;  %v59_v27 = vld [vmem:[%s595_s1 + $0x108] sm:$0xff]  ;;  %v373_v30 = vpack.c.bf16 %v33_v23, %v32_v22  ;;  %v60_v31 = vld [vmem:[%s595_s1 + $0x110] sm:$0xff]  ;;  %v375_v33 = vpack.c.bf16 %v51_v25, %v50_v24 }
   0x8   :  { %v391_v28 = vpack.c.bf16 %v59_v27, %v58_v26  ;;  %v15_v29 = vld [vmem:[%s596_s0 + $0x8] sm:$0xff]  ;;  %v61_v32 = vld [vmem:[%s595_s1 + $0x118] sm:$0xff]  ;;  %v34_v34 = vld [vmem:[%s595_s1 + $0x40] sm:$0xff] }
   0x9   :  { %366 = vmatpush3.bf16.msra.mxu0 %v365_v14  ;;  %163 = vmatprep.mubr.f32.mxu0 %v15_v29  ;;  %v35_v35 = vld [vmem:[%s595_s1 + $0x48] sm:$0xff]  ;;  %v395_v36 = vpack.c.bf16 %v61_v32, %v60_v31  ;;  %v16_v37 = vld [vmem:[%s596_s0 + $0x10] sm:$0xff]  ;;  %v53_v39 = vld [vmem:[%s595_s1 + $0xd8] sm:$0xff] }
   0xa   :  { %368 = vmatprep.subr.bf16.mxu0 %v367_v15  ;;  %392 = vmatprep.subr.bf16.mxu1 %v391_v28  ;;  %v52_v38 = vld [vmem:[%s595_s1 + $0xd0] sm:$0xff]  ;;  %v377_v40 = vpack.c.bf16 %v35_v35, %v34_v34  ;;  %v62_v41 = vld [vmem:[%s597_s2] sm:$0xff]  ;;  %v37_v45 = vld [vmem:[%s595_s1 + $0x58] sm:$0xff] }
   0xb   :  { %394 = vmatpush3.bf16.msra.mxu1 %v391_v28  ;;  %353 = vmatprep.mubr.msk.f32.mxu1 %vm86_vm0, %v16_v37  ;;  %v64_v42 = vld [vmem:[%s597_s2 + $0x10] sm:$0xff]  ;;  %v379_v43 = vpack.c.bf16 %v53_v39, %v52_v38  ;;  %v54_v46 = vld [vmem:[%s595_s1 + $0xe0] sm:$0xff]  ;;  %v55_v47 = vld [vmem:[%s595_s1 + $0xe8] sm:$0xff] }
   0xc   :  { %396 = vmatprep.subr.bf16.mxu1 %v395_v36  ;;  %v36_v44 = vld [vmem:[%s595_s1 + $0x50] sm:$0xff]  ;;  %68 = vperm.xlu0 %400, %v62_v41   ;;  %v19_v48 = vld [vmem:[%s596_s0 + $0x28] sm:$0xff]  ;;  %v22_v49 = vld [vmem:[%s596_s0 + $0x40] sm:$0xff]  ;;  %v383_v53 = vpack.c.bf16 %v55_v47, %v54_v46 }
   0xd   :  { %370 = vmatpush3.bf16.msra.mxu0 %v369_v20  ;;  %78 = vperm.xlu1 %401, %v64_v42   ;;  %v63_v50 = vld [vmem:[%s597_s2 + $0x8] sm:$0xff]  ;;  %v381_v51 = vpack.c.bf16 %v37_v45, %v36_v44  ;;  %v65_v52 = vld [vmem:[%s597_s2 + $0x18] sm:$0xff]  ;;  %v38_v54 = vld [vmem:[%s595_s1 + $0x60] sm:$0xff] }
   0xe   :  { %372 = vmatprep.subr.bf16.mxu0 %v371_v21  ;;  %v39_v55 = vld [vmem:[%s595_s1 + $0x68] sm:$0xff]  ;;  %v56_v56 = vld [vmem:[%s595_s1 + $0xf0] sm:$0xff]  ;;  %v57_v57 = vld [vmem:[%s595_s1 + $0xf8] sm:$0xff] }
   0xf   :  { %398 = vmatpush3.bf16.msra.mxu1 %v395_v36  ;;  %v25_v58 = vld [vmem:[%s596_s0 + $0x58] sm:$0xff]  ;;  %v385_v59 = vpack.c.bf16 %v39_v55, %v38_v54  ;;  %v387_v60 = vpack.c.bf16 %v57_v57, %v56_v56  ;;  %v40_v61 = vld [vmem:[%s595_s1 + $0x70] sm:$0xff]  ;;  %v14_v0 = vld [vmem:[%s596_s0] sm:$0xff] }
  0x10   :  { %73 = vperm.xlu0 %400, %v63_v50   ;;  %v41_v62 = vld [vmem:[%s595_s1 + $0x78] sm:$0xff]  ;;  %v18_v1 = vld [vmem:[%s596_s0 + $0x20] sm:$0xff]  ;;  %v20_v4 = vld [vmem:[%s596_s0 + $0x30] sm:$0xff] }
  0x11   :  { %374 = vmatpush3.bf16.msra.mxu0 %v373_v30  ;;  %83 = vperm.xlu1 %401, %v65_v52   ;;  %v389_v63 = vpack.c.bf16 %v41_v62, %v40_v61  ;;  %v17_v2 = vld [vmem:[%s596_s0 + $0x18] sm:$0xff]  ;;  %v24_v5 = vld [vmem:[%s596_s0 + $0x50] sm:$0xff]  ;;  %v23_v6 = vld [vmem:[%s596_s0 + $0x48] sm:$0xff] }
  0x12   :  { %376 = vmatprep.subr.bf16.mxu0 %v375_v33  ;;  %354 = vmatmul.mubr.msk.f32.vlgmr.msra.gmra.mrb[0].mxu1 %vm86_vm0, %v19_v48  ;;  %v21_v3 = vld [vmem:[%s596_s0 + $0x38] sm:$0xff] }
  0x13   :  { %356 = vmatprep.mubr.msk.f32.mxu1 %vm86_vm0, %v22_v49 }
  0x15   :  { %378 = vmatpush3.bf16.msra.mxu0 %v377_v40 }
  0x16   :  { %380 = vmatprep.subr.bf16.mxu0 %v379_v43  ;;  %357 = vmatmul.mubr.msk.f32.gmra.mrb[2].mxu1 %vm86_vm0, %v25_v58 }
  0x19   :  { %382 = vmatpush3.bf16.msra.mxu0 %v381_v51 }
  0x1a   :  { %384 = vmatprep.subr.bf16.mxu0 %v383_v53 }
  0x1d   :  { %386 = vmatpush3.bf16.msra.mxu0 %v385_v59 }
  0x1e   :  { %388 = vmatprep.subr.bf16.mxu0 %v387_v60 }
  0x21   :  { %390 = vmatpush3.bf16.msra.mxu0 %v389_v63 }
  0x24   :  { %164 = vmatmul.mubr.f32.vlgmr.msra.gmra.mrb[0].mxu0 %v14_v0 }
  0x25   :  { %168 = vmatprep.mubr.f32.mxu0 %v18_v1 }
  0x28   :  { %169 = vmatmul.mubr.f32.gmra.mrb[2].mxu0 %v17_v2 }
  0x29   :  { %173 = vmatprep.mubr.f32.mxu0 %v21_v3 }
  0x2c   :  { %174 = vmatmul.mubr.f32.gmra.mrb[4].mxu0 %v20_v4 }
  0x2d   :  { %178 = vmatprep.mubr.f32.mxu0 %v24_v5 }
  0x30   :  { %179 = vmatmul.mubr.f32.gmra.mrb[6].mxu0 %v23_v6 }
  0x8b   :  { %v69_v11 = vpop.permute.xlu0 %68 }
  0x8c   :  { %v79_v24 = vpop.permute.xlu1 %78 }
  0x8f   :  { %v74_v18 = vpop.permute.xlu0 %73 }
  0x90   :  { %v84_v36 = vpop.permute.xlu1 %83 }
  0xe5   :  { %v355_v7 = vpop.f32.mrb[0].mxu1 }
  0xe6   :  { %v250_v8 = vpop.f32.mrb[1].mxu1 }
  0xe9   :  { %v358_v9 = vpop.f32.mrb[2].mxu1 }
  0xea   :  { %v260_v10 = vpop.f32.mrb[3].mxu1 }
  0xf7   :  { %v325_v12 = vpop.f32.mrb[0].mxu0 }
  0xf8   :  { %v326_v13 = vpop.f32.mrb[1].mxu0 }
  0xf9   :  { %v327_v14 = vadd.f32 %v326_v13, %v325_v12 }
  0xfb   :  { %v166_v15 = vadd.f32 %v327_v14, %v69_v11  ;;  %v328_v16 = vpop.f32.mrb[2].mxu0 }
  0xfc   :  { %v329_v17 = vpop.f32.mrb[3].mxu0 }
  0xfd   :  { %v330_v19 = vadd.f32 %v329_v17, %v328_v16  ;;  %v251_v20 = vadd.f32 %v250_v8, %v166_v15 }
  0xff   :  { %vm269_vm1 = vcmp.ge.f32.partialorder %v251_v20, 0.0  ;;  %v273_v21 = vmul.f32 0.2, %v251_v20  ;;  %v171_v22 = vadd.f32 %v330_v19, %v74_v18  ;;  %v331_v23 = vpop.f32.mrb[4].mxu0 }
 0x100   :  { %v332_v25 = vpop.f32.mrb[5].mxu0 }
 0x101   :  { %v277_v26 = vsel %vm269_vm1, %v251_v20, %v273_v21  ;;  %v256_v27 = vadd.f32 %v355_v7, %v171_v22  ;;  %v333_v28 = vadd.f32 %v332_v25, %v331_v23 }
 0x102   :  { %281 = vst [vmem:[%s598_s3] sm:$0xff] %v277_v26 }
 0x103   :  { %vm270_vm2 = vcmp.ge.f32.partialorder %v256_v27, 0.0  ;;  %v274_v29 = vmul.f32 0.2, %v256_v27  ;;  %v334_v30 = vpop.f32.mrb[6].mxu0  ;;  %v176_v31 = vadd.f32 %v333_v28, %v79_v24 }
 0x104   :  { %v335_v32 = vpop.f32.mrb[7].mxu0 }
 0x105   :  { %v278_v33 = vsel %vm270_vm2, %v256_v27, %v274_v29  ;;  %v336_v34 = vadd.f32 %v335_v32, %v334_v30  ;;  %v261_v35 = vadd.f32 %v260_v10, %v176_v31 }
 0x106   :  { %282 = vst [vmem:[%s598_s3 + $0x8] sm:$0xff] %v278_v33 }
 0x107   :  { %v181_v37 = vadd.f32 %v336_v34, %v84_v36  ;;  %vm271_vm3 = vcmp.ge.f32.partialorder %v261_v35, 0.0  ;;  %v275_v38 = vmul.f32 0.2, %v261_v35 }
 0x109   :  { %v266_v39 = vadd.f32 %v358_v9, %v181_v37  ;;  %v279_v40 = vsel %vm271_vm3, %v261_v35, %v275_v38 }
 0x10a   :  { %283 = vst [vmem:[%s598_s3 + $0x10] sm:$0xff] %v279_v40 }
 0x10b   :  { %vm272_vm4 = vcmp.ge.f32.partialorder %v266_v39, 0.0  ;;  %v276_v41 = vmul.f32 0.2, %v266_v39 }
 0x10d   :  { %v280_v42 = vsel %vm272_vm4, %v266_v39, %v276_v41 }
 0x10e   :  { %284 = vst [vmem:[%s598_s3 + $0x18] sm:$0xff] %v280_v42 }

// kernel: contextnet_forward.12
= control target key start
LH: loop header
LB: loop body
LE: loop exit
PB: predicated region body
PF: predicated region fallthrough
CT: control target
= control target key end

     0   :  { %v548_v3 = vmov 0   ;;  %vm122_vm0 = vcmask 261120   ;;  %s805_s1 = inlined_call_operand.vmem [shape: f32[288,128], index: 1, kind: input, shape index: {}]   ;;  %s806_s0 = inlined_call_operand.vmem [shape: f32[64,288], index: 0, kind: input, shape index: {}]   ;;  %s807_s2 = inlined_call_operand.vmem [shape: f32[64,1], index: 2, kind: input, shape index: {}]   ;;  %s808_s3 = inlined_call_operand.vmem [shape: f32[64,128], index: 3, kind: output, shape index: {}]  }
   0x1   :  { %v54_v0 = vld [vmem:[%s805_s1 + $0x80] sm:$0xff]  ;;  %v55_v1 = vld [vmem:[%s805_s1 + $0x88] sm:$0xff]  ;;  %546 = vset.pattern.permute.xlu0 %v548_v3  ;;  %547 = vset.pattern.permute.xlu1 %v548_v3  ;;  %v56_v6 = vld [vmem:[%s805_s1 + $0x90] sm:$0xff] }
   0x2   :  { %v38_v2 = vld [vmem:[%s805_s1] sm:$0xff]  ;;  %v489_v4 = vpack.c.bf16 %v55_v1, %v54_v0  ;;  %v39_v5 = vld [vmem:[%s805_s1 + $0x8] sm:$0xff]  ;;  %v57_v7 = vld [vmem:[%s805_s1 + $0x98] sm:$0xff] }
   0x3   :  { %v491_v8 = vpack.c.bf16 %v39_v5, %v38_v2  ;;  %v493_v9 = vpack.c.bf16 %v57_v7, %v56_v6  ;;  %v40_v10 = vld [vmem:[%s805_s1 + $0x10] sm:$0xff]  ;;  %v41_v11 = vld [vmem:[%s805_s1 + $0x18] sm:$0xff]  ;;  %v58_v12 = vld [vmem:[%s805_s1 + $0xa0] sm:$0xff] }
   0x4   :  { %490 = vmatprep.subr.bf16.mxu0 %v489_v4  ;;  %529 = vmatprep.subr.bf16.mxu1 %v489_v4  ;;  %v59_v13 = vld [vmem:[%s805_s1 + $0xa8] sm:$0xff]  ;;  %v495_v14 = vpack.c.bf16 %v41_v11, %v40_v10  ;;  %v42_v16 = vld [vmem:[%s805_s1 + $0x20] sm:$0xff]  ;;  %v60_v18 = vld [vmem:[%s805_s1 + $0xb0] sm:$0xff] }
   0x5   :  { %492 = vmatpush3.bf16.msra.mxu0 %v491_v8  ;;  %537 = vmatpush3.bf16.msra.mxu1 %v491_v8  ;;  %v497_v15 = vpack.c.bf16 %v59_v13, %v58_v12  ;;  %v43_v17 = vld [vmem:[%s805_s1 + $0x28] sm:$0xff]  ;;  %v61_v19 = vld [vmem:[%s805_s1 + $0xb8] sm:$0xff]  ;;  %v44_v22 = vld [vmem:[%s805_s1 + $0x30] sm:$0xff] }
   0x6   :  { %494 = vmatprep.subr.bf16.mxu0 %v493_v9  ;;  %530 = vmatprep.subr.bf16.mxu1 %v493_v9  ;;  %v499_v20 = vpack.c.bf16 %v43_v17, %v42_v16  ;;  %v501_v21 = vpack.c.bf16 %v61_v19, %v60_v18  ;;  %v45_v23 = vld [vmem:[%s805_s1 + $0x38] sm:$0xff]  ;;  %v62_v24 = vld [vmem:[%s805_s1 + $0xc0] sm:$0xff]  ;;  %v63_v25 = vld [vmem:[%s805_s1 + $0xc8] sm:$0xff] }
   0x7   :  { %v15_v26 = vld [vmem:[%s806_s0 + $0x8] sm:$0xff]  ;;  %v33_v27 = vld [vmem:[%s806_s0 + $0x98] sm:$0xff]  ;;  %v503_v28 = vpack.c.bf16 %v45_v23, %v44_v22  ;;  %v505_v29 = vpack.c.bf16 %v63_v25, %v62_v24  ;;  %v46_v30 = vld [vmem:[%s805_s1 + $0x40] sm:$0xff] }
   0x8   :  { %211 = vmatprep.mubr.f32.mxu0 %v15_v26  ;;  %v47_v31 = vld [vmem:[%s805_s1 + $0x48] sm:$0xff]  ;;  %v64_v32 = vld [vmem:[%s805_s1 + $0xd0] sm:$0xff]  ;;  %v65_v33 = vld [vmem:[%s805_s1 + $0xd8] sm:$0xff]  ;;  %241 = vmatprep.mubr.f32.mxu1 %v33_v27 }
   0x9   :  { %496 = vmatpush3.bf16.msra.mxu0 %v495_v14  ;;  %538 = vmatpush3.bf16.msra.mxu1 %v495_v14  ;;  %v507_v34 = vpack.c.bf16 %v47_v31, %v46_v30  ;;  %v509_v35 = vpack.c.bf16 %v65_v33, %v64_v32  ;;  %v48_v36 = vld [vmem:[%s805_s1 + $0x50] sm:$0xff]  ;;  %v49_v37 = vld [vmem:[%s805_s1 + $0x58] sm:$0xff]  ;;  %v66_v38 = vld [vmem:[%s805_s1 + $0xe0] sm:$0xff] }
   0xa   :  { %498 = vmatprep.subr.bf16.mxu0 %v497_v15  ;;  %531 = vmatprep.subr.bf16.mxu1 %v497_v15  ;;  %v67_v39 = vld [vmem:[%s805_s1 + $0xe8] sm:$0xff]  ;;  %v511_v40 = vpack.c.bf16 %v49_v37, %v48_v36  ;;  %v74_v41 = vld [vmem:[%s807_s2] sm:$0xff]  ;;  %v76_v42 = vld [vmem:[%s807_s2 + $0x10] sm:$0xff] }
   0xb   :  { %v513_v43 = vpack.c.bf16 %v67_v39, %v66_v38  ;;  %v50_v44 = vld [vmem:[%s805_s1 + $0x60] sm:$0xff]  ;;  %v51_v45 = vld [vmem:[%s805_s1 + $0x68] sm:$0xff]  ;;  %v68_v46 = vld [vmem:[%s805_s1 + $0xf0] sm:$0xff]  ;;  %84 = vperm.xlu0 %546, %v74_v41   ;;  %94 = vperm.xlu1 %547, %v76_v42  }
   0xc   :  { %v69_v47 = vld [vmem:[%s805_s1 + $0xf8] sm:$0xff]  ;;  %v75_v48 = vld [vmem:[%s807_s2 + $0x8] sm:$0xff]  ;;  %v515_v50 = vpack.c.bf16 %v51_v45, %v50_v44  ;;  %v52_v52 = vld [vmem:[%s805_s1 + $0x70] sm:$0xff] }
   0xd   :  { %500 = vmatpush3.bf16.msra.mxu0 %v499_v20  ;;  %539 = vmatpush3.bf16.msra.mxu1 %v499_v20  ;;  %v77_v49 = vld [vmem:[%s807_s2 + $0x18] sm:$0xff]  ;;  %v517_v51 = vpack.c.bf16 %v69_v47, %v68_v46  ;;  %v70_v54 = vld [vmem:[%s805_s1 + $0x100] sm:$0xff]  ;;  %v71_v55 = vld [vmem:[%s805_s1 + $0x108] sm:$0xff] }
   0xe   :  { %502 = vmatprep.subr.bf16.mxu0 %v501_v21  ;;  %532 = vmatprep.subr.bf16.mxu1 %v501_v21  ;;  %v53_v53 = vld [vmem:[%s805_s1 + $0x78] sm:$0xff]  ;;  %v78_v56 = vld [vmem:[%s807_s2 + $0x20] sm:$0xff]  ;;  %v79_v57 = vld [vmem:[%s807_s2 + $0x28] sm:$0xff]  ;;  %v521_v59 = vpack.c.bf16 %v71_v55, %v70_v54 }
   0xf   :  { %89 = vperm.xlu0 %546, %v75_v48   ;;  %99 = vperm.xlu1 %547, %v77_v49   ;;  %v519_v58 = vpack.c.bf16 %v53_v53, %v52_v52  ;;  %v72_v60 = vld [vmem:[%s805_s1 + $0x110] sm:$0xff]  ;;  %v73_v61 = vld [vmem:[%s805_s1 + $0x118] sm:$0xff]  ;;  %v14_v0 = vld [vmem:[%s806_s0] sm:$0xff] }
  0x10   :  { %v80_v62 = vld [vmem:[%s807_s2 + $0x30] sm:$0xff]  ;;  %v81_v63 = vld [vmem:[%s807_s2 + $0x38] sm:$0xff]  ;;  %v18_v2 = vld [vmem:[%s806_s0 + $0x20] sm:$0xff]  ;;  %v525_v3 = vpack.c.bf16 %v73_v61, %v72_v60 }
  0x11   :  { %504 = vmatpush3.bf16.msra.mxu0 %v503_v28  ;;  %540 = vmatpush3.bf16.msra.mxu1 %v503_v28  ;;  %v32_v1 = vld [vmem:[%s806_s0 + $0x90] sm:$0xff]  ;;  %v17_v5 = vld [vmem:[%s806_s0 + $0x18] sm:$0xff]  ;;  %v35_v6 = vld [vmem:[%s806_s0 + $0xa8] sm:$0xff] }
  0x12   :  { %506 = vmatprep.subr.bf16.mxu0 %v505_v29  ;;  %533 = vmatprep.subr.bf16.mxu1 %v505_v29  ;;  %v36_v4 = vld [vmem:[%s806_s0 + $0xb0] sm:$0xff]  ;;  %v21_v7 = vld [vmem:[%s806_s0 + $0x38] sm:$0xff]  ;;  %v19_v10 = vld [vmem:[%s806_s0 + $0x28] sm:$0xff] }
  0x13   :  { %104 = vperm.xlu0 %546, %v78_v56   ;;  %109 = vperm.xlu1 %547, %v79_v57   ;;  %v16_v8 = vld [vmem:[%s806_s0 + $0x10] sm:$0xff]  ;;  %v22_v12 = vld [vmem:[%s806_s0 + $0x40] sm:$0xff]  ;;  %v23_v13 = vld [vmem:[%s806_s0 + $0x48] sm:$0xff] }
  0x14   :  { %v20_v9 = vld [vmem:[%s806_s0 + $0x30] sm:$0xff]  ;;  %v25_v14 = vld [vmem:[%s806_s0 + $0x58] sm:$0xff]  ;;  %v27_v15 = vld [vmem:[%s806_s0 + $0x68] sm:$0xff] }
  0x15   :  { %508 = vmatpush3.bf16.msra.mxu0 %v507_v34  ;;  %541 = vmatpush3.bf16.msra.mxu1 %v507_v34  ;;  %v24_v11 = vld [vmem:[%s806_s0 + $0x50] sm:$0xff]  ;;  %v26_v17 = vld [vmem:[%s806_s0 + $0x60] sm:$0xff]  ;;  %v31_v18 = vld [vmem:[%s806_s0 + $0x88] sm:$0xff] }
  0x16   :  { %510 = vmatprep.subr.bf16.mxu0 %v509_v35  ;;  %534 = vmatprep.subr.bf16.mxu1 %v509_v35  ;;  %v28_v16 = vld [vmem:[%s806_s0 + $0x70] sm:$0xff]  ;;  %v30_v19 = vld [vmem:[%s806_s0 + $0x80] sm:$0xff]  ;;  %v29_v21 = vld [vmem:[%s806_s0 + $0x78] sm:$0xff] }
  0x17   :  { %114 = vperm.xlu0 %546, %v80_v62   ;;  %119 = vperm.xlu1 %547, %v81_v63   ;;  %v34_v20 = vld [vmem:[%s806_s0 + $0xa0] sm:$0xff]  ;;  %v37_v22 = vld [vmem:[%s806_s0 + $0xb8] sm:$0xff] }
  0x19   :  { %512 = vmatpush3.bf16.msra.mxu0 %v511_v40  ;;  %542 = vmatpush3.bf16.msra.mxu1 %v511_v40 }
  0x1a   :  { %514 = vmatprep.subr.bf16.mxu0 %v513_v43  ;;  %535 = vmatprep.subr.bf16.mxu1 %v513_v43 }
  0x1d   :  { %516 = vmatpush3.bf16.msra.mxu0 %v515_v50  ;;  %543 = vmatpush3.bf16.msra.mxu1 %v515_v50 }
  0x1e   :  { %518 = vmatprep.subr.bf16.mxu0 %v517_v51  ;;  %536 = vmatprep.subr.bf16.mxu1 %v517_v51 }
  0x21   :  { %520 = vmatpush3.bf16.msra.mxu0 %v519_v58  ;;  %544 = vmatpush3.bf16.msra.mxu1 %v519_v58 }
  0x22   :  { %522 = vmatprep.subr.bf16.mxu1 %v521_v59 }
  0x24   :  { %212 = vmatmul.mubr.f32.vlgmr.msra.gmra.mrb[0].mxu0 %v14_v0  ;;  %242 = vmatmul.mubr.f32.vlgmr.msra.gmra.mrb[0].mxu1 %v32_v1 }
  0x25   :  { %524 = vmatpush3.bf16.msra.mxu1 %v521_v59  ;;  %216 = vmatprep.mubr.f32.mxu0 %v18_v2 }
  0x26   :  { %246 = vmatprep.mubr.f32.mxu1 %v36_v4  ;;  %526 = vmatprep.subr.bf16.mxu1 %v525_v3 }
  0x28   :  { %217 = vmatmul.mubr.f32.gmra.mrb[2].mxu0 %v17_v5  ;;  %247 = vmatmul.mubr.f32.gmra.mrb[2].mxu1 %v35_v6 }
  0x29   :  { %528 = vmatpush3.bf16.msra.mxu1 %v525_v3  ;;  %221 = vmatprep.mubr.f32.mxu0 %v21_v7 }
  0x2a   :  { %477 = vmatprep.mubr.msk.f32.mxu1 %vm122_vm0, %v16_v8 }
  0x2c   :  { %222 = vmatmul.mubr.f32.gmra.mrb[4].mxu0 %v20_v9  ;;  %478 = vmatmul.mubr.msk.f32.vlgmr.msra.gmra.mrb[4].mxu1 %vm122_vm0, %v19_v10 }
  0x2d   :  { %226 = vmatprep.mubr.f32.mxu0 %v24_v11  ;;  %480 = vmatprep.mubr.msk.f32.mxu1 %vm122_vm0, %v22_v12 }
  0x30   :  { %227 = vmatmul.mubr.f32.gmra.mrb[6].mxu0 %v23_v13  ;;  %481 = vmatmul.mubr.msk.f32.gmra.mrb[6].mxu1 %vm122_vm0, %v25_v14 }
  0x31   :  { %231 = vmatprep.mubr.f32.mxu0 %v27_v15  ;;  %483 = vmatprep.mubr.msk.f32.mxu1 %vm122_vm0, %v28_v16 }
  0x34   :  { %232 = vmatmul.mubr.f32.gmra.mrb[8].mxu0 %v26_v17  ;;  %484 = vmatmul.mubr.msk.f32.gmra.mrb[8].mxu1 %vm122_vm0, %v31_v18 }
  0x35   :  { %236 = vmatprep.mubr.f32.mxu0 %v30_v19  ;;  %486 = vmatprep.mubr.msk.f32.mxu1 %vm122_vm0, %v34_v20 }
  0x38   :  { %237 = vmatmul.mubr.f32.gmra.mrb[10].mxu0 %v29_v21  ;;  %487 = vmatmul.mubr.msk.f32.gmra.mrb[10].mxu1 %vm122_vm0, %v37_v22 }
  0x8a   :  { %v85_v23 = vpop.permute.xlu0 %84  ;;  %v95_v24 = vpop.permute.xlu1 %94 }
  0x8e   :  { %v90_v25 = vpop.permute.xlu0 %89  ;;  %v100_v26 = vpop.permute.xlu1 %99 }
  0x92   :  { %v105_v39 = vpop.permute.xlu0 %104  ;;  %v110_v40 = vpop.permute.xlu1 %109 }
  0x96   :  { %v115_v59 = vpop.permute.xlu0 %114  ;;  %v120_v60 = vpop.permute.xlu1 %119 }
  0xf7   :  { %v433_v27 = vpop.f32.mrb[0].mxu0  ;;  %v451_v28 = vpop.f32.mrb[0].mxu1 }
  0xf8   :  { %v434_v29 = vpop.f32.mrb[1].mxu0  ;;  %v452_v30 = vpop.f32.mrb[1].mxu1 }
  0xf9   :  { %v435_v31 = vadd.f32 %v434_v29, %v433_v27  ;;  %v453_v32 = vadd.f32 %v452_v30, %v451_v28 }
  0xfb   :  { %v436_v33 = vpop.f32.mrb[2].mxu0  ;;  %v454_v34 = vpop.f32.mrb[2].mxu1  ;;  %v214_v44 = vadd.f32 %v435_v31, %v85_v23  ;;  %v244_v9 = vadd.f32 %v453_v32, %v115_v59 }
  0xfc   :  { %v437_v35 = vpop.f32.mrb[3].mxu0  ;;  %v455_v36 = vpop.f32.mrb[3].mxu1 }
  0xfd   :  { %v438_v37 = vadd.f32 %v437_v35, %v436_v33  ;;  %v456_v38 = vadd.f32 %v455_v36, %v454_v34 }
  0xff   :  { %v439_v41 = vpop.f32.mrb[4].mxu0  ;;  %v219_v42 = vadd.f32 %v438_v37, %v90_v25  ;;  %v479_v43 = vpop.f32.mrb[4].mxu1  ;;  %v249_v6 = vadd.f32 %v456_v38, %v120_v60 }
 0x100   :  { %v440_v45 = vpop.f32.mrb[5].mxu0  ;;  %v318_v46 = vpop.f32.mrb[5].mxu1 }
 0x101   :  { %v324_v47 = vadd.f32 %v479_v43, %v219_v42  ;;  %v441_v48 = vadd.f32 %v440_v45, %v439_v41  ;;  %v319_v49 = vadd.f32 %v318_v46, %v214_v44 }
 0x103   :  { %vm358_vm1 = vcmp.ge.f32.partialorder %v324_v47, 0.0  ;;  %v366_v50 = vmul.f32 0.2, %v324_v47  ;;  %vm357_vm2 = vcmp.ge.f32.partialorder %v319_v49, 0.0  ;;  %v365_v51 = vmul.f32 0.2, %v319_v49 }
 0x104   :  { %v442_v52 = vpop.f32.mrb[6].mxu0  ;;  %v482_v53 = vpop.f32.mrb[6].mxu1  ;;  %v224_v54 = vadd.f32 %v441_v48, %v95_v24 }
 0x105   :  { %v374_v55 = vsel %vm358_vm1, %v324_v47, %v366_v50  ;;  %v373_v56 = vsel %vm357_vm2, %v319_v49, %v365_v51  ;;  %v443_v57 = vpop.f32.mrb[7].mxu0  ;;  %v328_v58 = vpop.f32.mrb[7].mxu1 }
 0x106   :  { %382 = vst [vmem:[%s808_s3 + $0x8] sm:$0xff] %v374_v55  ;;  %381 = vst [vmem:[%s808_s3] sm:$0xff] %v373_v56  ;;  %v444_v61 = vadd.f32 %v443_v57, %v442_v52  ;;  %v329_v62 = vadd.f32 %v328_v58, %v224_v54 }
 0x107   :  { %v445_v63 = vpop.f32.mrb[8].mxu0  ;;  %v485_v0 = vpop.f32.mrb[8].mxu1 }
 0x108   :  { %v229_v1 = vadd.f32 %v444_v61, %v100_v26  ;;  %vm359_vm3 = vcmp.ge.f32.partialorder %v329_v62, 0.0  ;;  %v367_v2 = vmul.f32 0.2, %v329_v62  ;;  %v446_v3 = vpop.f32.mrb[9].mxu0  ;;  %v338_v4 = vpop.f32.mrb[9].mxu1 }
 0x109   :  { %v447_v5 = vadd.f32 %v446_v3, %v445_v63 }
 0x10a   :  { %v334_v7 = vadd.f32 %v482_v53, %v229_v1  ;;  %v375_v8 = vsel %vm359_vm3, %v329_v62, %v367_v2 }
 0x10b   :  { %383 = vst [vmem:[%s808_s3 + $0x10] sm:$0xff] %v375_v8  ;;  %v234_v10 = vadd.f32 %v447_v5, %v105_v39  ;;  %v448_v11 = vpop.f32.mrb[10].mxu0  ;;  %v488_v12 = vpop.f32.mrb[10].mxu1 }
 0x10c   :  { %vm360_vm4 = vcmp.ge.f32.partialorder %v334_v7, 0.0  ;;  %v368_v13 = vmul.f32 0.2, %v334_v7  ;;  %v354_v14 = vadd.f32 %v488_v12, %v249_v6  ;;  %v449_v15 = vpop.f32.mrb[11].mxu0  ;;  %v348_v16 = vpop.f32.mrb[11].mxu1 }
 0x10d   :  { %v339_v17 = vadd.f32 %v338_v4, %v234_v10  ;;  %v450_v18 = vadd.f32 %v449_v15, %v448_v11  ;;  %v349_v19 = vadd.f32 %v348_v16, %v244_v9 }
 0x10e   :  { %v376_v20 = vsel %vm360_vm4, %v334_v7, %v368_v13  ;;  %vm364_vm5 = vcmp.ge.f32.partialorder %v354_v14, 0.0  ;;  %v372_v21 = vmul.f32 0.2, %v354_v14 }
 0x10f   :  { %384 = vst [vmem:[%s808_s3 + $0x18] sm:$0xff] %v376_v20  ;;  %vm361_vm6 = vcmp.ge.f32.partialorder %v339_v17, 0.0  ;;  %v369_v22 = vmul.f32 0.2, %v339_v17  ;;  %v239_v23 = vadd.f32 %v450_v18, %v110_v40  ;;  %vm363_vm7 = vcmp.ge.f32.partialorder %v349_v19, 0.0 }
 0x110   :  { %v380_v24 = vsel %vm364_vm5, %v354_v14, %v372_v21  ;;  %v371_v25 = vmul.f32 0.2, %v349_v19 }
 0x111   :  { %v377_v26 = vsel %vm361_vm6, %v339_v17, %v369_v22  ;;  %388 = vst [vmem:[%s808_s3 + $0x38] sm:$0xff] %v380_v24  ;;  %v344_v27 = vadd.f32 %v485_v0, %v239_v23 }
 0x112   :  { %385 = vst [vmem:[%s808_s3 + $0x20] sm:$0xff] %v377_v26  ;;  %v379_v28 = vsel %vm363_vm7, %v349_v19, %v371_v25 }
 0x113   :  { %vm362_vm8 = vcmp.ge.f32.partialorder %v344_v27, 0.0  ;;  %v370_v29 = vmul.f32 0.2, %v344_v27  ;;  %387 = vst [vmem:[%s808_s3 + $0x30] sm:$0xff] %v379_v28 }
 0x115   :  { %v378_v30 = vsel %vm362_vm8, %v344_v27, %v370_v29 }
 0x116   :  { %386 = vst [vmem:[%s808_s3 + $0x28] sm:$0xff] %v378_v30 }

// kernel: contextnet_forward.13
= control target key start
LH: loop header
LB: loop body
LE: loop exit
PB: predicated region body
PF: predicated region fallthrough
CT: control target
= control target key end

     0   :  { %v805_v3 = vmov 0   ;;  %vm174_vm0 = vcmask 523264   ;;  %s1221_s1 = inlined_call_operand.vmem [shape: f32[576,128], index: 1, kind: input, shape index: {}]   ;;  %s1222_s0 = inlined_call_operand.vmem [shape: f32[64,576], index: 0, kind: input, shape index: {}]   ;;  %s1223_s2 = inlined_call_operand.vmem [shape: f32[64,1], index: 2, kind: input, shape index: {}]   ;;  %s1224_s3 = inlined_call_operand.vmem [shape: f32[64,128], index: 3, kind: output, shape index: {}]  }
   0x1   :  { %v70_v0 = vld [vmem:[%s1221_s1 + $0x80] sm:$0xff]  ;;  %v71_v1 = vld [vmem:[%s1221_s1 + $0x88] sm:$0xff]  ;;  %803 = vset.pattern.permute.xlu0 %v805_v3  ;;  %804 = vset.pattern.permute.xlu1 %v805_v3  ;;  %v72_v12 = vld [vmem:[%s1221_s1 + $0x90] sm:$0xff] }
   0x2   :  { %v102_v2 = vld [vmem:[%s1221_s1 + $0x180] sm:$0xff]  ;;  %v714_v4 = vpack.c.bf16 %v71_v1, %v70_v0  ;;  %v103_v5 = vld [vmem:[%s1221_s1 + $0x188] sm:$0xff]  ;;  %v73_v14 = vld [vmem:[%s1221_s1 + $0x98] sm:$0xff] }
   0x3   :  { %v54_v6 = vld [vmem:[%s1221_s1] sm:$0xff]  ;;  %v55_v7 = vld [vmem:[%s1221_s1 + $0x8] sm:$0xff]  ;;  %v746_v8 = vpack.c.bf16 %v103_v5, %v102_v2  ;;  %v104_v15 = vld [vmem:[%s1221_s1 + $0x190] sm:$0xff]  ;;  %v718_v17 = vpack.c.bf16 %v73_v14, %v72_v12 }
   0x4   :  { %v716_v9 = vpack.c.bf16 %v55_v7, %v54_v6  ;;  %v86_v10 = vld [vmem:[%s1221_s1 + $0x100] sm:$0xff]  ;;  %v87_v11 = vld [vmem:[%s1221_s1 + $0x108] sm:$0xff]  ;;  %715 = vmatprep.subr.bf16.mxu0 %v714_v4  ;;  %v105_v16 = vld [vmem:[%s1221_s1 + $0x198] sm:$0xff] }
   0x5   :  { %v748_v13 = vpack.c.bf16 %v87_v11, %v86_v10  ;;  %747 = vmatprep.subr.bf16.mxu1 %v746_v8  ;;  %v750_v18 = vpack.c.bf16 %v105_v16, %v104_v15  ;;  %v56_v19 = vld [vmem:[%s1221_s1 + $0x10] sm:$0xff]  ;;  %v57_v20 = vld [vmem:[%s1221_s1 + $0x18] sm:$0xff]  ;;  %v74_v24 = vld [vmem:[%s1221_s1 + $0xa0] sm:$0xff] }
   0x6   :  { %717 = vmatpush3.bf16.msra.mxu0 %v716_v9  ;;  %v88_v21 = vld [vmem:[%s1221_s1 + $0x110] sm:$0xff]  ;;  %v720_v22 = vpack.c.bf16 %v57_v20, %v56_v19  ;;  %v89_v23 = vld [vmem:[%s1221_s1 + $0x118] sm:$0xff]  ;;  %v75_v25 = vld [vmem:[%s1221_s1 + $0xa8] sm:$0xff] }
   0x7   :  { %749 = vmatpush3.bf16.msra.mxu1 %v748_v13  ;;  %719 = vmatprep.subr.bf16.mxu0 %v718_v17  ;;  %v752_v26 = vpack.c.bf16 %v89_v23, %v88_v21  ;;  %v722_v27 = vpack.c.bf16 %v75_v25, %v74_v24  ;;  %v106_v28 = vld [vmem:[%s1221_s1 + $0x1a0] sm:$0xff]  ;;  %v107_v29 = vld [vmem:[%s1221_s1 + $0x1a8] sm:$0xff]  ;;  %v76_v36 = vld [vmem:[%s1221_s1 + $0xb0] sm:$0xff] }
   0x8   :  { %751 = vmatprep.subr.bf16.mxu1 %v750_v18  ;;  %v58_v30 = vld [vmem:[%s1221_s1 + $0x20] sm:$0xff]  ;;  %v754_v31 = vpack.c.bf16 %v107_v29, %v106_v28  ;;  %v59_v32 = vld [vmem:[%s1221_s1 + $0x28] sm:$0xff]  ;;  %v77_v37 = vld [vmem:[%s1221_s1 + $0xb8] sm:$0xff] }
   0x9   :  { %v90_v33 = vld [vmem:[%s1221_s1 + $0x120] sm:$0xff]  ;;  %v91_v34 = vld [vmem:[%s1221_s1 + $0x128] sm:$0xff]  ;;  %v724_v35 = vpack.c.bf16 %v59_v32, %v58_v30  ;;  %v108_v38 = vld [vmem:[%s1221_s1 + $0x1b0] sm:$0xff]  ;;  %v726_v40 = vpack.c.bf16 %v77_v37, %v76_v36 }
   0xa   :  { %721 = vmatpush3.bf16.msra.mxu0 %v720_v22  ;;  %v756_v39 = vpack.c.bf16 %v91_v34, %v90_v33  ;;  %v109_v41 = vld [vmem:[%s1221_s1 + $0x1b8] sm:$0xff]  ;;  %v60_v42 = vld [vmem:[%s1221_s1 + $0x30] sm:$0xff]  ;;  %v78_v47 = vld [vmem:[%s1221_s1 + $0xc0] sm:$0xff] }
   0xb   :  { %753 = vmatpush3.bf16.msra.mxu1 %v752_v26  ;;  %723 = vmatprep.subr.bf16.mxu0 %v722_v27  ;;  %v61_v43 = vld [vmem:[%s1221_s1 + $0x38] sm:$0xff]  ;;  %v758_v44 = vpack.c.bf16 %v109_v41, %v108_v38  ;;  %v92_v45 = vld [vmem:[%s1221_s1 + $0x130] sm:$0xff]  ;;  %v79_v48 = vld [vmem:[%s1221_s1 + $0xc8] sm:$0xff] }
   0xc   :  { %755 = vmatprep.subr.bf16.mxu1 %v754_v31  ;;  %v93_v46 = vld [vmem:[%s1221_s1 + $0x138] sm:$0xff]  ;;  %v110_v49 = vld [vmem:[%s1221_s1 + $0x1c0] sm:$0xff]  ;;  %v111_v50 = vld [vmem:[%s1221_s1 + $0x1c8] sm:$0xff]  ;;  %v728_v51 = vpack.c.bf16 %v61_v43, %v60_v42  ;;  %v730_v53 = vpack.c.bf16 %v79_v48, %v78_v47 }
   0xd   :  { %v760_v52 = vpack.c.bf16 %v93_v46, %v92_v45  ;;  %v62_v54 = vld [vmem:[%s1221_s1 + $0x40] sm:$0xff]  ;;  %v63_v55 = vld [vmem:[%s1221_s1 + $0x48] sm:$0xff]  ;;  %v762_v57 = vpack.c.bf16 %v111_v50, %v110_v49  ;;  %v80_v59 = vld [vmem:[%s1221_s1 + $0xd0] sm:$0xff] }
   0xe   :  { %725 = vmatpush3.bf16.msra.mxu0 %v724_v35  ;;  %v94_v56 = vld [vmem:[%s1221_s1 + $0x140] sm:$0xff]  ;;  %v95_v58 = vld [vmem:[%s1221_s1 + $0x148] sm:$0xff]  ;;  %v81_v60 = vld [vmem:[%s1221_s1 + $0xd8] sm:$0xff]  ;;  %v732_v63 = vpack.c.bf16 %v63_v55, %v62_v54 }
   0xf   :  { %757 = vmatpush3.bf16.msra.mxu1 %v756_v39  ;;  %727 = vmatprep.subr.bf16.mxu0 %v726_v40  ;;  %v112_v61 = vld [vmem:[%s1221_s1 + $0x1d0] sm:$0xff]  ;;  %v113_v62 = vld [vmem:[%s1221_s1 + $0x1d8] sm:$0xff]  ;;  %v764_v0 = vpack.c.bf16 %v95_v58, %v94_v56  ;;  %v734_v1 = vpack.c.bf16 %v81_v60, %v80_v59  ;;  %v82_v7 = vld [vmem:[%s1221_s1 + $0xe0] sm:$0xff] }
  0x10   :  { %759 = vmatprep.subr.bf16.mxu1 %v758_v44  ;;  %v64_v2 = vld [vmem:[%s1221_s1 + $0x50] sm:$0xff]  ;;  %v65_v3 = vld [vmem:[%s1221_s1 + $0x58] sm:$0xff]  ;;  %v766_v5 = vpack.c.bf16 %v113_v62, %v112_v61  ;;  %v83_v8 = vld [vmem:[%s1221_s1 + $0xe8] sm:$0xff] }
  0x11   :  { %v96_v4 = vld [vmem:[%s1221_s1 + $0x150] sm:$0xff]  ;;  %v97_v6 = vld [vmem:[%s1221_s1 + $0x158] sm:$0xff]  ;;  %v114_v9 = vld [vmem:[%s1221_s1 + $0x1e0] sm:$0xff]  ;;  %v736_v11 = vpack.c.bf16 %v65_v3, %v64_v2  ;;  %v738_v15 = vpack.c.bf16 %v83_v8, %v82_v7 }
  0x12   :  { %729 = vmatpush3.bf16.msra.mxu0 %v728_v51  ;;  %v115_v10 = vld [vmem:[%s1221_s1 + $0x1e8] sm:$0xff]  ;;  %v66_v12 = vld [vmem:[%s1221_s1 + $0x60] sm:$0xff]  ;;  %v768_v14 = vpack.c.bf16 %v97_v6, %v96_v4  ;;  %v17_v18 = vld [vmem:[%s1222_s0 + $0x18] sm:$0xff] }
  0x13   :  { %761 = vmatpush3.bf16.msra.mxu1 %v760_v52  ;;  %731 = vmatprep.subr.bf16.mxu0 %v730_v53  ;;  %v67_v13 = vld [vmem:[%s1221_s1 + $0x68] sm:$0xff]  ;;  %v98_v16 = vld [vmem:[%s1221_s1 + $0x160] sm:$0xff]  ;;  %v770_v19 = vpack.c.bf16 %v115_v10, %v114_v9  ;;  %v84_v21 = vld [vmem:[%s1221_s1 + $0xf0] sm:$0xff] }
  0x14   :  { %763 = vmatprep.subr.bf16.mxu1 %v762_v57  ;;  %v15_v17 = vld [vmem:[%s1222_s0 + $0x8] sm:$0xff]  ;;  %v85_v22 = vld [vmem:[%s1221_s1 + $0xf8] sm:$0xff]  ;;  %v116_v23 = vld [vmem:[%s1221_s1 + $0x1f0] sm:$0xff]  ;;  %368 = vmatprep.mubr.f32.mxu1 %v17_v18  ;;  %v740_v25 = vpack.c.bf16 %v67_v13, %v66_v12 }
  0x15   :  { %v99_v20 = vld [vmem:[%s1221_s1 + $0x168] sm:$0xff]  ;;  %263 = vmatprep.mubr.f32.mxu0 %v15_v17  ;;  %v117_v24 = vld [vmem:[%s1221_s1 + $0x1f8] sm:$0xff]  ;;  %v742_v27 = vpack.c.bf16 %v85_v22, %v84_v21  ;;  %v68_v28 = vld [vmem:[%s1221_s1 + $0x70] sm:$0xff] }
  0x16   :  { %733 = vmatpush3.bf16.msra.mxu0 %v732_v63  ;;  %v772_v26 = vpack.c.bf16 %v99_v20, %v98_v16  ;;  %v69_v29 = vld [vmem:[%s1221_s1 + $0x78] sm:$0xff]  ;;  %v100_v30 = vld [vmem:[%s1221_s1 + $0x170] sm:$0xff]  ;;  %v774_v31 = vpack.c.bf16 %v117_v24, %v116_v23  ;;  %v118_v33 = vld [vmem:[%s1221_s1 + $0x200] sm:$0xff] }
  0x17   :  { %765 = vmatpush3.bf16.msra.mxu1 %v764_v0  ;;  %735 = vmatprep.subr.bf16.mxu0 %v734_v1  ;;  %v101_v32 = vld [vmem:[%s1221_s1 + $0x178] sm:$0xff]  ;;  %v119_v34 = vld [vmem:[%s1221_s1 + $0x208] sm:$0xff]  ;;  %v744_v35 = vpack.c.bf16 %v69_v29, %v68_v28  ;;  %v120_v38 = vld [vmem:[%s1221_s1 + $0x210] sm:$0xff] }
  0x18   :  { %767 = vmatprep.subr.bf16.mxu1 %v766_v5  ;;  %v776_v36 = vpack.c.bf16 %v101_v32, %v100_v30  ;;  %v778_v37 = vpack.c.bf16 %v119_v34, %v118_v33  ;;  %v121_v39 = vld [vmem:[%s1221_s1 + $0x218] sm:$0xff]  ;;  %v14_v40 = vld [vmem:[%s1222_s0] sm:$0xff]  ;;  %v16_v41 = vld [vmem:[%s1222_s0 + $0x10] sm:$0xff] }
  0x19   :  { %v20_v42 = vld [vmem:[%s1222_s0 + $0x30] sm:$0xff]  ;;  %v782_v43 = vpack.c.bf16 %v121_v39, %v120_v38  ;;  %v22_v44 = vld [vmem:[%s1222_s0 + $0x40] sm:$0xff]  ;;  %v123_v46 = vld [vmem:[%s1221_s1 + $0x228] sm:$0xff] }
  0x1a   :  { %737 = vmatpush3.bf16.msra.mxu0 %v736_v11  ;;  %v122_v45 = vld [vmem:[%s1221_s1 + $0x220] sm:$0xff]  ;;  %v19_v47 = vld [vmem:[%s1222_s0 + $0x28] sm:$0xff]  ;;  %v21_v48 = vld [vmem:[%s1222_s0 + $0x38] sm:$0xff] }
  0x1b   :  { %769 = vmatpush3.bf16.msra.mxu1 %v768_v14  ;;  %739 = vmatprep.subr.bf16.mxu0 %v738_v15  ;;  %v25_v49 = vld [vmem:[%s1222_s0 + $0x58] sm:$0xff]  ;;  %v27_v50 = vld [vmem:[%s1222_s0 + $0x68] sm:$0xff]  ;;  %v786_v51 = vpack.c.bf16 %v123_v46, %v122_v45  ;;  %v124_v52 = vld [vmem:[%s1221_s1 + $0x230] sm:$0xff] }
  0x1c   :  { %771 = vmatprep.subr.bf16.mxu1 %v770_v19  ;;  %v125_v53 = vld [vmem:[%s1221_s1 + $0x238] sm:$0xff]  ;;  %v24_v54 = vld [vmem:[%s1222_s0 + $0x50] sm:$0xff]  ;;  %v26_v55 = vld [vmem:[%s1222_s0 + $0x60] sm:$0xff] }
  0x1d   :  { %v30_v56 = vld [vmem:[%s1222_s0 + $0x80] sm:$0xff]  ;;  %v32_v57 = vld [vmem:[%s1222_s0 + $0x90] sm:$0xff]  ;;  %v790_v58 = vpack.c.bf16 %v125_v53, %v124_v52  ;;  %v29_v59 = vld [vmem:[%s1222_s0 + $0x78] sm:$0xff] }
  0x1e   :  { %741 = vmatpush3.bf16.msra.mxu0 %v740_v25  ;;  %v31_v60 = vld [vmem:[%s1222_s0 + $0x88] sm:$0xff]  ;;  %v37_v62 = vld [vmem:[%s1222_s0 + $0xb8] sm:$0xff]  ;;  %v126_v63 = vld [vmem:[%s1223_s2] sm:$0xff] }
  0x1f   :  { %773 = vmatpush3.bf16.msra.mxu1 %v772_v26  ;;  %743 = vmatprep.subr.bf16.mxu0 %v742_v27  ;;  %v35_v61 = vld [vmem:[%s1222_s0 + $0xa8] sm:$0xff]  ;;  %v34_v0 = vld [vmem:[%s1222_s0 + $0xa0] sm:$0xff]  ;;  %v128_v1 = vld [vmem:[%s1223_s2 + $0x10] sm:$0xff] }
  0x20   :  { %775 = vmatprep.subr.bf16.mxu1 %v774_v31  ;;  %v36_v2 = vld [vmem:[%s1222_s0 + $0xb0] sm:$0xff]  ;;  %v42_v4 = vld [vmem:[%s1222_s0 + $0xe0] sm:$0xff]  ;;  %136 = vperm.xlu0 %803, %v126_v63   ;;  %v127_v5 = vld [vmem:[%s1223_s2 + $0x8] sm:$0xff] }
  0x21   :  { %v40_v3 = vld [vmem:[%s1222_s0 + $0xd0] sm:$0xff]  ;;  %146 = vperm.xlu1 %804, %v128_v1   ;;  %v39_v6 = vld [vmem:[%s1222_s0 + $0xc8] sm:$0xff]  ;;  %v129_v7 = vld [vmem:[%s1223_s2 + $0x18] sm:$0xff] }
  0x22   :  { %745 = vmatpush3.bf16.msra.mxu0 %v744_v35  ;;  %v41_v8 = vld [vmem:[%s1222_s0 + $0xd8] sm:$0xff]  ;;  %v47_v10 = vld [vmem:[%s1222_s0 + $0x108] sm:$0xff]  ;;  %v130_v11 = vld [vmem:[%s1223_s2 + $0x20] sm:$0xff] }
  0x23   :  { %777 = vmatpush3.bf16.msra.mxu1 %v776_v36  ;;  %779 = vmatprep.subr.bf16.mxu0 %v778_v37  ;;  %v45_v9 = vld [vmem:[%s1222_s0 + $0xf8] sm:$0xff]  ;;  %v44_v12 = vld [vmem:[%s1222_s0 + $0xf0] sm:$0xff]  ;;  %v131_v13 = vld [vmem:[%s1223_s2 + $0x28] sm:$0xff] }
  0x24   :  { %794 = vmatprep.subr.bf16.mxu1 %v778_v37  ;;  %141 = vperm.xlu0 %803, %v127_v5   ;;  %v46_v14 = vld [vmem:[%s1222_s0 + $0x100] sm:$0xff]  ;;  %v52_v16 = vld [vmem:[%s1222_s0 + $0x130] sm:$0xff]  ;;  %v49_v18 = vld [vmem:[%s1222_s0 + $0x118] sm:$0xff] }
  0x25   :  { %264 = vmatmul.mubr.f32.vlgmr.msra.gmra.mrb[0].mxu0 %v14_v40  ;;  %151 = vperm.xlu1 %804, %v129_v7   ;;  %v50_v15 = vld [vmem:[%s1222_s0 + $0x120] sm:$0xff]  ;;  %v132_v17 = vld [vmem:[%s1223_s2 + $0x30] sm:$0xff]  ;;  %v133_v19 = vld [vmem:[%s1223_s2 + $0x38] sm:$0xff] }
  0x26   :  { %369 = vmatmul.mubr.f32.vlgmr.msra.gmra.mrb[0].mxu1 %v16_v41  ;;  %781 = vmatpush3.bf16.msra.mxu0 %v778_v37  ;;  %v51_v20 = vld [vmem:[%s1222_s0 + $0x128] sm:$0xff]  ;;  %v18_v21 = vld [vmem:[%s1222_s0 + $0x20] sm:$0xff]  ;;  %v28_v25 = vld [vmem:[%s1222_s0 + $0x70] sm:$0xff] }
  0x27   :  { %798 = vmatpush3.bf16.msra.mxu1 %v778_v37  ;;  %268 = vmatprep.mubr.f32.mxu0 %v20_v42  ;;  %v38_v22 = vld [vmem:[%s1222_s0 + $0xc0] sm:$0xff]  ;;  %v23_v23 = vld [vmem:[%s1222_s0 + $0x48] sm:$0xff]  ;;  %v48_v26 = vld [vmem:[%s1222_s0 + $0x110] sm:$0xff] }
  0x28   :  { %373 = vmatprep.mubr.f32.mxu1 %v22_v44  ;;  %783 = vmatprep.subr.bf16.mxu0 %v782_v43  ;;  %v43_v24 = vld [vmem:[%s1222_s0 + $0xe8] sm:$0xff]  ;;  %v33_v27 = vld [vmem:[%s1222_s0 + $0x98] sm:$0xff] }
  0x29   :  { %269 = vmatmul.mubr.f32.gmra.mrb[2].mxu0 %v19_v47  ;;  %795 = vmatprep.subr.bf16.mxu1 %v782_v43  ;;  %v53_v28 = vld [vmem:[%s1222_s0 + $0x138] sm:$0xff] }
  0x2a   :  { %374 = vmatmul.mubr.f32.gmra.mrb[2].mxu1 %v21_v48  ;;  %273 = vmatprep.mubr.f32.mxu0 %v25_v49 }
  0x2b   :  { %378 = vmatprep.mubr.f32.mxu1 %v27_v50  ;;  %785 = vmatpush3.bf16.msra.mxu0 %v782_v43 }
  0x2c   :  { %799 = vmatpush3.bf16.msra.mxu1 %v782_v43  ;;  %787 = vmatprep.subr.bf16.mxu0 %v786_v51 }
  0x2d   :  { %274 = vmatmul.mubr.f32.gmra.mrb[4].mxu0 %v24_v54  ;;  %796 = vmatprep.subr.bf16.mxu1 %v786_v51 }
  0x2e   :  { %379 = vmatmul.mubr.f32.gmra.mrb[4].mxu1 %v26_v55  ;;  %278 = vmatprep.mubr.f32.mxu0 %v30_v56 }
  0x2f   :  { %383 = vmatprep.mubr.f32.mxu1 %v32_v57  ;;  %789 = vmatpush3.bf16.msra.mxu0 %v786_v51 }
  0x30   :  { %800 = vmatpush3.bf16.msra.mxu1 %v786_v51  ;;  %791 = vmatprep.subr.bf16.mxu0 %v790_v58 }
  0x31   :  { %279 = vmatmul.mubr.f32.gmra.mrb[6].mxu0 %v29_v59  ;;  %797 = vmatprep.subr.bf16.mxu1 %v790_v58 }
  0x32   :  { %384 = vmatmul.mubr.f32.gmra.mrb[6].mxu1 %v31_v60  ;;  %283 = vmatprep.mubr.f32.mxu0 %v35_v61 }
  0x33   :  { %388 = vmatprep.mubr.f32.mxu1 %v37_v62  ;;  %793 = vmatpush3.bf16.msra.mxu0 %v790_v58 }
  0x34   :  { %801 = vmatpush3.bf16.msra.mxu1 %v790_v58  ;;  %156 = vperm.xlu0 %803, %v130_v11  }
  0x35   :  { %284 = vmatmul.mubr.f32.gmra.mrb[8].mxu0 %v34_v0  ;;  %161 = vperm.xlu1 %804, %v131_v13  }
  0x36   :  { %389 = vmatmul.mubr.f32.gmra.mrb[8].mxu1 %v36_v2  ;;  %288 = vmatprep.mubr.f32.mxu0 %v40_v3 }
  0x37   :  { %393 = vmatprep.mubr.f32.mxu1 %v42_v4 }
  0x38   :  { %166 = vperm.xlu0 %803, %v132_v17  }
  0x39   :  { %289 = vmatmul.mubr.f32.gmra.mrb[10].mxu0 %v39_v6  ;;  %171 = vperm.xlu1 %804, %v133_v19  }
  0x3a   :  { %394 = vmatmul.mubr.f32.gmra.mrb[10].mxu1 %v41_v8  ;;  %293 = vmatprep.mubr.f32.mxu0 %v45_v9 }
  0x3b   :  { %398 = vmatprep.mubr.f32.mxu1 %v47_v10 }
  0x3d   :  { %294 = vmatmul.mubr.f32.gmra.mrb[12].mxu0 %v44_v12 }
  0x3e   :  { %399 = vmatmul.mubr.f32.gmra.mrb[12].mxu1 %v46_v14  ;;  %298 = vmatprep.mubr.f32.mxu0 %v50_v15 }
  0x3f   :  { %403 = vmatprep.mubr.f32.mxu1 %v52_v16 }
  0x41   :  { %299 = vmatmul.mubr.f32.gmra.mrb[14].mxu0 %v49_v18 }
  0x42   :  { %404 = vmatmul.mubr.f32.gmra.mrb[14].mxu1 %v51_v20  ;;  %702 = vmatprep.mubr.msk.f32.mxu0 %vm174_vm0, %v18_v21 }
  0x43   :  { %708 = vmatprep.mubr.msk.f32.mxu1 %vm174_vm0, %v38_v22 }
  0x45   :  { %703 = vmatmul.mubr.msk.f32.vlgmr.msra.gmra.mrb[16].mxu0 %vm174_vm0, %v23_v23 }
  0x46   :  { %709 = vmatmul.mubr.msk.f32.vlgmr.msra.gmra.mrb[16].mxu1 %vm174_vm0, %v43_v24  ;;  %705 = vmatprep.mubr.msk.f32.mxu0 %vm174_vm0, %v28_v25 }
  0x47   :  { %711 = vmatprep.mubr.msk.f32.mxu1 %vm174_vm0, %v48_v26 }
  0x49   :  { %706 = vmatmul.mubr.msk.f32.gmra.mrb[18].mxu0 %vm174_vm0, %v33_v27 }
  0x4a   :  { %712 = vmatmul.mubr.msk.f32.gmra.mrb[18].mxu1 %vm174_vm0, %v53_v28 }
  0x9f   :  { %v137_v29 = vpop.permute.xlu0 %136 }
  0xa0   :  { %v147_v47 = vpop.permute.xlu1 %146 }
  0xa3   :  { %v142_v38 = vpop.permute.xlu0 %141 }
  0xa4   :  { %v152_v62 = vpop.permute.xlu1 %151 }
  0xb3   :  { %v157_v7 = vpop.permute.xlu0 %156 }
  0xb4   :  { %v162_v15 = vpop.permute.xlu1 %161 }
  0xb7   :  { %v167_v24 = vpop.permute.xlu0 %166 }
  0xf8   :  { %v590_v30 = vpop.f32.mrb[0].mxu0 }
  0xf9   :  { %v646_v31 = vpop.f32.mrb[0].mxu1  ;;  %v591_v32 = vpop.f32.mrb[1].mxu0 }
  0xfa   :  { %v592_v33 = vadd.f32 %v591_v32, %v590_v30  ;;  %v647_v34 = vpop.f32.mrb[1].mxu1 }
  0xfb   :  { %v648_v35 = vadd.f32 %v647_v34, %v646_v31 }
  0xfc   :  { %v266_v36 = vadd.f32 %v592_v33, %v137_v29  ;;  %v593_v37 = vpop.f32.mrb[2].mxu0  ;;  %v172_v33 = vpop.permute.xlu1 %171 }
  0xfd   :  { %v649_v39 = vpop.f32.mrb[2].mxu1  ;;  %v594_v40 = vpop.f32.mrb[3].mxu0 }
  0xfe   :  { %v595_v41 = vadd.f32 %v594_v40, %v593_v37  ;;  %v650_v42 = vpop.f32.mrb[3].mxu1  ;;  %v371_v43 = vadd.f32 %v648_v35, %v266_v36 }
  0xff   :  { %v651_v44 = vadd.f32 %v650_v42, %v649_v39 }
 0x100   :  { %v271_v45 = vadd.f32 %v595_v41, %v142_v38  ;;  %v596_v46 = vpop.f32.mrb[4].mxu0 }
 0x101   :  { %v652_v48 = vpop.f32.mrb[4].mxu1  ;;  %v597_v49 = vpop.f32.mrb[5].mxu0 }
 0x102   :  { %v598_v50 = vadd.f32 %v597_v49, %v596_v46  ;;  %v653_v51 = vpop.f32.mrb[5].mxu1  ;;  %v376_v52 = vadd.f32 %v651_v44, %v271_v45 }
 0x103   :  { %v654_v53 = vadd.f32 %v653_v51, %v652_v48 }
 0x104   :  { %v276_v54 = vadd.f32 %v598_v50, %v147_v47  ;;  %v599_v55 = vpop.f32.mrb[6].mxu0 }
 0x105   :  { %v655_v56 = vpop.f32.mrb[6].mxu1  ;;  %v600_v57 = vpop.f32.mrb[7].mxu0 }
 0x106   :  { %v601_v58 = vadd.f32 %v600_v57, %v599_v55  ;;  %v656_v59 = vpop.f32.mrb[7].mxu1  ;;  %v1194_v60 = vadd.f32 %v654_v53, %v276_v54 }
 0x107   :  { %v657_v61 = vadd.f32 %v656_v59, %v655_v56 }
 0x108   :  { %v281_v63 = vadd.f32 %v601_v58, %v152_v62  ;;  %v602_v0 = vpop.f32.mrb[8].mxu0 }
 0x109   :  { %v658_v1 = vpop.f32.mrb[8].mxu1  ;;  %v603_v2 = vpop.f32.mrb[9].mxu0 }
 0x10a   :  { %v604_v3 = vadd.f32 %v603_v2, %v602_v0  ;;  %v659_v4 = vpop.f32.mrb[9].mxu1  ;;  %v386_v5 = vadd.f32 %v657_v61, %v281_v63 }
 0x10b   :  { %v660_v6 = vadd.f32 %v659_v4, %v658_v1 }
 0x10c   :  { %v286_v8 = vadd.f32 %v604_v3, %v157_v7  ;;  %v605_v9 = vpop.f32.mrb[10].mxu0 }
 0x10d   :  { %v661_v10 = vpop.f32.mrb[10].mxu1  ;;  %v606_v11 = vpop.f32.mrb[11].mxu0 }
 0x10e   :  { %v607_v12 = vadd.f32 %v606_v11, %v605_v9  ;;  %v662_v13 = vpop.f32.mrb[11].mxu1  ;;  %v391_v14 = vadd.f32 %v660_v6, %v286_v8 }
 0x10f   :  { %v663_v16 = vadd.f32 %v662_v13, %v661_v10 }
 0x110   :  { %v291_v17 = vadd.f32 %v607_v12, %v162_v15  ;;  %v608_v18 = vpop.f32.mrb[12].mxu0 }
 0x111   :  { %v664_v19 = vpop.f32.mrb[12].mxu1  ;;  %v609_v20 = vpop.f32.mrb[13].mxu0 }
 0x112   :  { %v610_v21 = vadd.f32 %v609_v20, %v608_v18  ;;  %v665_v22 = vpop.f32.mrb[13].mxu1  ;;  %v396_v23 = vadd.f32 %v663_v16, %v291_v17 }
 0x113   :  { %v666_v25 = vadd.f32 %v665_v22, %v664_v19 }
 0x114   :  { %v296_v26 = vadd.f32 %v610_v21, %v167_v24  ;;  %v611_v27 = vpop.f32.mrb[14].mxu0 }
 0x115   :  { %v667_v28 = vpop.f32.mrb[14].mxu1  ;;  %v612_v29 = vpop.f32.mrb[15].mxu0 }
 0x116   :  { %v613_v30 = vadd.f32 %v612_v29, %v611_v27  ;;  %v668_v31 = vpop.f32.mrb[15].mxu1  ;;  %v401_v32 = vadd.f32 %v666_v25, %v296_v26 }
 0x117   :  { %v669_v34 = vadd.f32 %v668_v31, %v667_v28 }
 0x118   :  { %v301_v35 = vadd.f32 %v613_v30, %v172_v33  ;;  %v704_v36 = vpop.f32.mrb[16].mxu0 }
 0x119   :  { %v481_v37 = vadd.f32 %v704_v36, %v376_v52  ;;  %v710_v38 = vpop.f32.mrb[16].mxu1  ;;  %v475_v39 = vpop.f32.mrb[17].mxu0 }
 0x11a   :  { %v501_v40 = vadd.f32 %v710_v38, %v396_v23  ;;  %v476_v41 = vadd.f32 %v475_v39, %v371_v43  ;;  %v495_v42 = vpop.f32.mrb[17].mxu1  ;;  %v406_v44 = vadd.f32 %v669_v34, %v301_v35 }
 0x11b   :  { %vm515_vm1 = vcmp.ge.f32.partialorder %v481_v37, 0.0  ;;  %v523_v45 = vmul.f32 0.2, %v481_v37  ;;  %v496_v46 = vadd.f32 %v495_v42, %v391_v14 }
 0x11c   :  { %vm519_vm2 = vcmp.ge.f32.partialorder %v501_v40, 0.0  ;;  %v527_v47 = vmul.f32 0.2, %v501_v40  ;;  %vm514_vm3 = vcmp.ge.f32.partialorder %v476_v41, 0.0  ;;  %v522_v48 = vmul.f32 0.2, %v476_v41 }
 0x11d   :  { %v531_v49 = vsel %vm515_vm1, %v481_v37, %v523_v45  ;;  %vm518_vm4 = vcmp.ge.f32.partialorder %v496_v46, 0.0  ;;  %v526_v50 = vmul.f32 0.2, %v496_v46  ;;  %v707_v51 = vpop.f32.mrb[18].mxu0  ;;  %v713_v53 = vpop.f32.mrb[18].mxu1 }
 0x11e   :  { %539 = vst [vmem:[%s1224_s3 + $0x8] sm:$0xff] %v531_v49  ;;  %v535_v52 = vsel %vm519_vm2, %v501_v40, %v527_v47  ;;  %v530_v43 = vsel %vm514_vm3, %v476_v41, %v522_v48  ;;  %v491_v54 = vadd.f32 %v707_v51, %v386_v5  ;;  %v511_v55 = vadd.f32 %v713_v53, %v406_v44  ;;  %v485_v56 = vpop.f32.mrb[19].mxu0  ;;  %v505_v57 = vpop.f32.mrb[19].mxu1 }
 0x11f   :  { %543 = vst [vmem:[%s1224_s3 + $0x28] sm:$0xff] %v535_v52  ;;  %538 = vst [vmem:[%s1224_s3] sm:$0xff] %v530_v43  ;;  %v534_v58 = vsel %vm518_vm4, %v496_v46, %v526_v50  ;;  %v486_v59 = vadd.f32 %v485_v56, %v1194_v60  ;;  %v506_v61 = vadd.f32 %v505_v57, %v401_v32 }
 0x120   :  { %542 = vst [vmem:[%s1224_s3 + $0x20] sm:$0xff] %v534_v58  ;;  %vm517_vm5 = vcmp.ge.f32.partialorder %v491_v54, 0.0  ;;  %v525_v62 = vmul.f32 0.2, %v491_v54  ;;  %vm521_vm6 = vcmp.ge.f32.partialorder %v511_v55, 0.0 }
 0x121   :  { %v529_v63 = vmul.f32 0.2, %v511_v55  ;;  %vm516_vm7 = vcmp.ge.f32.partialorder %v486_v59, 0.0  ;;  %v524_v0 = vmul.f32 0.2, %v486_v59  ;;  %vm520_vm8 = vcmp.ge.f32.partialorder %v506_v61, 0.0 }
 0x122   :  { %v528_v1 = vmul.f32 0.2, %v506_v61  ;;  %v533_v2 = vsel %vm517_vm5, %v491_v54, %v525_v62 }
 0x123   :  { %v537_v3 = vsel %vm521_vm6, %v511_v55, %v529_v63  ;;  %541 = vst [vmem:[%s1224_s3 + $0x18] sm:$0xff] %v533_v2  ;;  %v532_v60 = vsel %vm516_vm7, %v486_v59, %v524_v0 }
 0x124   :  { %545 = vst [vmem:[%s1224_s3 + $0x38] sm:$0xff] %v537_v3  ;;  %v536_v4 = vsel %vm520_vm8, %v506_v61, %v528_v1  ;;  %540 = vst [vmem:[%s1224_s3 + $0x10] sm:$0xff] %v532_v60 }
 0x125   :  { %544 = vst [vmem:[%s1224_s3 + $0x30] sm:$0xff] %v536_v4 }

// kernel: contextnet_forward.14
= control target key start
LH: loop header
LB: loop body
LE: loop exit
PB: predicated region body
PF: predicated region fallthrough
CT: control target
= control target key end

     0   :  { %v1145_v3 = vmov 0   ;;  %vm262_vm0 = vcmask 523264   ;;  %s1776_s1 = inlined_call_operand.vmem [shape: f32[576,128], index: 1, kind: input, shape index: {}]   ;;  %s1777_s0 = inlined_call_operand.vmem [shape: f32[128,576], index: 0, kind: input, shape index: {}]   ;;  %s1778_s2 = inlined_call_operand.vmem [shape: f32[128,1], index: 2, kind: input, shape index: {}]   ;;  %s1779_s3 = inlined_call_operand.vmem [shape: f32[128,128], index: 3, kind: output, shape index: {}]  }
   0x1   :  { %v110_v0 = vld [vmem:[%s1776_s1 + $0x80] sm:$0xff]  ;;  %v111_v1 = vld [vmem:[%s1776_s1 + $0x88] sm:$0xff]  ;;  %1143 = vset.pattern.permute.xlu0 %v1145_v3  ;;  %1144 = vset.pattern.permute.xlu1 %v1145_v3  ;;  %v112_v12 = vld [vmem:[%s1776_s1 + $0x90] sm:$0xff] }
   0x2   :  { %v142_v2 = vld [vmem:[%s1776_s1 + $0x180] sm:$0xff]  ;;  %v1054_v4 = vpack.c.bf16 %v111_v1, %v110_v0  ;;  %v143_v5 = vld [vmem:[%s1776_s1 + $0x188] sm:$0xff]  ;;  %v113_v14 = vld [vmem:[%s1776_s1 + $0x98] sm:$0xff] }
   0x3   :  { %v94_v6 = vld [vmem:[%s1776_s1] sm:$0xff]  ;;  %v95_v7 = vld [vmem:[%s1776_s1 + $0x8] sm:$0xff]  ;;  %v1086_v8 = vpack.c.bf16 %v143_v5, %v142_v2  ;;  %v144_v15 = vld [vmem:[%s1776_s1 + $0x190] sm:$0xff]  ;;  %v1058_v17 = vpack.c.bf16 %v113_v14, %v112_v12 }
   0x4   :  { %v1056_v9 = vpack.c.bf16 %v95_v7, %v94_v6  ;;  %v126_v10 = vld [vmem:[%s1776_s1 + $0x100] sm:$0xff]  ;;  %v127_v11 = vld [vmem:[%s1776_s1 + $0x108] sm:$0xff]  ;;  %1055 = vmatprep.subr.bf16.mxu0 %v1054_v4  ;;  %v145_v16 = vld [vmem:[%s1776_s1 + $0x198] sm:$0xff] }
   0x5   :  { %v1088_v13 = vpack.c.bf16 %v127_v11, %v126_v10  ;;  %1087 = vmatprep.subr.bf16.mxu1 %v1086_v8  ;;  %v1090_v18 = vpack.c.bf16 %v145_v16, %v144_v15  ;;  %v96_v19 = vld [vmem:[%s1776_s1 + $0x10] sm:$0xff]  ;;  %v97_v20 = vld [vmem:[%s1776_s1 + $0x18] sm:$0xff]  ;;  %v114_v24 = vld [vmem:[%s1776_s1 + $0xa0] sm:$0xff] }
   0x6   :  { %1057 = vmatpush3.bf16.msra.mxu0 %v1056_v9  ;;  %v128_v21 = vld [vmem:[%s1776_s1 + $0x110] sm:$0xff]  ;;  %v1060_v22 = vpack.c.bf16 %v97_v20, %v96_v19  ;;  %v129_v23 = vld [vmem:[%s1776_s1 + $0x118] sm:$0xff]  ;;  %v115_v25 = vld [vmem:[%s1776_s1 + $0xa8] sm:$0xff] }
   0x7   :  { %1089 = vmatpush3.bf16.msra.mxu1 %v1088_v13  ;;  %1059 = vmatprep.subr.bf16.mxu0 %v1058_v17  ;;  %v1092_v26 = vpack.c.bf16 %v129_v23, %v128_v21  ;;  %v1062_v27 = vpack.c.bf16 %v115_v25, %v114_v24  ;;  %v146_v28 = vld [vmem:[%s1776_s1 + $0x1a0] sm:$0xff]  ;;  %v147_v29 = vld [vmem:[%s1776_s1 + $0x1a8] sm:$0xff]  ;;  %v116_v36 = vld [vmem:[%s1776_s1 + $0xb0] sm:$0xff] }
   0x8   :  { %1091 = vmatprep.subr.bf16.mxu1 %v1090_v18  ;;  %v98_v30 = vld [vmem:[%s1776_s1 + $0x20] sm:$0xff]  ;;  %v1094_v31 = vpack.c.bf16 %v147_v29, %v146_v28  ;;  %v99_v32 = vld [vmem:[%s1776_s1 + $0x28] sm:$0xff]  ;;  %v117_v37 = vld [vmem:[%s1776_s1 + $0xb8] sm:$0xff] }
   0x9   :  { %v130_v33 = vld [vmem:[%s1776_s1 + $0x120] sm:$0xff]  ;;  %v131_v34 = vld [vmem:[%s1776_s1 + $0x128] sm:$0xff]  ;;  %v1064_v35 = vpack.c.bf16 %v99_v32, %v98_v30  ;;  %v148_v38 = vld [vmem:[%s1776_s1 + $0x1b0] sm:$0xff]  ;;  %v1066_v40 = vpack.c.bf16 %v117_v37, %v116_v36 }
   0xa   :  { %1061 = vmatpush3.bf16.msra.mxu0 %v1060_v22  ;;  %v1096_v39 = vpack.c.bf16 %v131_v34, %v130_v33  ;;  %v149_v41 = vld [vmem:[%s1776_s1 + $0x1b8] sm:$0xff]  ;;  %v100_v42 = vld [vmem:[%s1776_s1 + $0x30] sm:$0xff]  ;;  %v118_v47 = vld [vmem:[%s1776_s1 + $0xc0] sm:$0xff] }
   0xb   :  { %1093 = vmatpush3.bf16.msra.mxu1 %v1092_v26  ;;  %1063 = vmatprep.subr.bf16.mxu0 %v1062_v27  ;;  %v101_v43 = vld [vmem:[%s1776_s1 + $0x38] sm:$0xff]  ;;  %v1098_v44 = vpack.c.bf16 %v149_v41, %v148_v38  ;;  %v132_v45 = vld [vmem:[%s1776_s1 + $0x130] sm:$0xff]  ;;  %v119_v48 = vld [vmem:[%s1776_s1 + $0xc8] sm:$0xff] }
   0xc   :  { %1095 = vmatprep.subr.bf16.mxu1 %v1094_v31  ;;  %v133_v46 = vld [vmem:[%s1776_s1 + $0x138] sm:$0xff]  ;;  %v150_v49 = vld [vmem:[%s1776_s1 + $0x1c0] sm:$0xff]  ;;  %v151_v50 = vld [vmem:[%s1776_s1 + $0x1c8] sm:$0xff]  ;;  %v1068_v51 = vpack.c.bf16 %v101_v43, %v100_v42  ;;  %v1070_v53 = vpack.c.bf16 %v119_v48, %v118_v47 }
   0xd   :  { %v1100_v52 = vpack.c.bf16 %v133_v46, %v132_v45  ;;  %v102_v54 = vld [vmem:[%s1776_s1 + $0x40] sm:$0xff]  ;;  %v103_v55 = vld [vmem:[%s1776_s1 + $0x48] sm:$0xff]  ;;  %v1102_v57 = vpack.c.bf16 %v151_v50, %v150_v49  ;;  %v120_v59 = vld [vmem:[%s1776_s1 + $0xd0] sm:$0xff] }
   0xe   :  { %1065 = vmatpush3.bf16.msra.mxu0 %v1064_v35  ;;  %v134_v56 = vld [vmem:[%s1776_s1 + $0x140] sm:$0xff]  ;;  %v135_v58 = vld [vmem:[%s1776_s1 + $0x148] sm:$0xff]  ;;  %v121_v60 = vld [vmem:[%s1776_s1 + $0xd8] sm:$0xff]  ;;  %v1072_v63 = vpack.c.bf16 %v103_v55, %v102_v54 }
   0xf   :  { %1097 = vmatpush3.bf16.msra.mxu1 %v1096_v39  ;;  %1067 = vmatprep.subr.bf16.mxu0 %v1066_v40  ;;  %v152_v61 = vld [vmem:[%s1776_s1 + $0x1d0] sm:$0xff]  ;;  %v153_v62 = vld [vmem:[%s1776_s1 + $0x1d8] sm:$0xff]  ;;  %v1104_v0 = vpack.c.bf16 %v135_v58, %v134_v56  ;;  %v1074_v1 = vpack.c.bf16 %v121_v60, %v120_v59  ;;  %v122_v7 = vld [vmem:[%s1776_s1 + $0xe0] sm:$0xff] }
  0x10   :  { %1099 = vmatprep.subr.bf16.mxu1 %v1098_v44  ;;  %v104_v2 = vld [vmem:[%s1776_s1 + $0x50] sm:$0xff]  ;;  %v105_v3 = vld [vmem:[%s1776_s1 + $0x58] sm:$0xff]  ;;  %v1106_v5 = vpack.c.bf16 %v153_v62, %v152_v61  ;;  %v123_v8 = vld [vmem:[%s1776_s1 + $0xe8] sm:$0xff] }
  0x11   :  { %v136_v4 = vld [vmem:[%s1776_s1 + $0x150] sm:$0xff]  ;;  %v137_v6 = vld [vmem:[%s1776_s1 + $0x158] sm:$0xff]  ;;  %v154_v9 = vld [vmem:[%s1776_s1 + $0x1e0] sm:$0xff]  ;;  %v1076_v11 = vpack.c.bf16 %v105_v3, %v104_v2  ;;  %v1078_v15 = vpack.c.bf16 %v123_v8, %v122_v7 }
  0x12   :  { %1069 = vmatpush3.bf16.msra.mxu0 %v1068_v51  ;;  %v155_v10 = vld [vmem:[%s1776_s1 + $0x1e8] sm:$0xff]  ;;  %v106_v12 = vld [vmem:[%s1776_s1 + $0x60] sm:$0xff]  ;;  %v1108_v14 = vpack.c.bf16 %v137_v6, %v136_v4  ;;  %v17_v18 = vld [vmem:[%s1777_s0 + $0x18] sm:$0xff] }
  0x13   :  { %1101 = vmatpush3.bf16.msra.mxu1 %v1100_v52  ;;  %1071 = vmatprep.subr.bf16.mxu0 %v1070_v53  ;;  %v107_v13 = vld [vmem:[%s1776_s1 + $0x68] sm:$0xff]  ;;  %v138_v16 = vld [vmem:[%s1776_s1 + $0x160] sm:$0xff]  ;;  %v1110_v19 = vpack.c.bf16 %v155_v10, %v154_v9  ;;  %v124_v21 = vld [vmem:[%s1776_s1 + $0xf0] sm:$0xff] }
  0x14   :  { %1103 = vmatprep.subr.bf16.mxu1 %v1102_v57  ;;  %v15_v17 = vld [vmem:[%s1777_s0 + $0x8] sm:$0xff]  ;;  %v125_v22 = vld [vmem:[%s1776_s1 + $0xf8] sm:$0xff]  ;;  %v156_v23 = vld [vmem:[%s1776_s1 + $0x1f0] sm:$0xff]  ;;  %520 = vmatprep.mubr.f32.mxu1 %v17_v18  ;;  %v1080_v25 = vpack.c.bf16 %v107_v13, %v106_v12 }
  0x15   :  { %v139_v20 = vld [vmem:[%s1776_s1 + $0x168] sm:$0xff]  ;;  %375 = vmatprep.mubr.f32.mxu0 %v15_v17  ;;  %v157_v24 = vld [vmem:[%s1776_s1 + $0x1f8] sm:$0xff]  ;;  %v1082_v27 = vpack.c.bf16 %v125_v22, %v124_v21  ;;  %v108_v28 = vld [vmem:[%s1776_s1 + $0x70] sm:$0xff] }
  0x16   :  { %1073 = vmatpush3.bf16.msra.mxu0 %v1072_v63  ;;  %v1112_v26 = vpack.c.bf16 %v139_v20, %v138_v16  ;;  %v109_v29 = vld [vmem:[%s1776_s1 + $0x78] sm:$0xff]  ;;  %v140_v30 = vld [vmem:[%s1776_s1 + $0x170] sm:$0xff]  ;;  %v1114_v31 = vpack.c.bf16 %v157_v24, %v156_v23  ;;  %v158_v33 = vld [vmem:[%s1776_s1 + $0x200] sm:$0xff] }
  0x17   :  { %1105 = vmatpush3.bf16.msra.mxu1 %v1104_v0  ;;  %1075 = vmatprep.subr.bf16.mxu0 %v1074_v1  ;;  %v141_v32 = vld [vmem:[%s1776_s1 + $0x178] sm:$0xff]  ;;  %v159_v34 = vld [vmem:[%s1776_s1 + $0x208] sm:$0xff]  ;;  %v1084_v35 = vpack.c.bf16 %v109_v29, %v108_v28  ;;  %v160_v38 = vld [vmem:[%s1776_s1 + $0x210] sm:$0xff] }
  0x18   :  { %1107 = vmatprep.subr.bf16.mxu1 %v1106_v5  ;;  %v1116_v36 = vpack.c.bf16 %v141_v32, %v140_v30  ;;  %v1118_v37 = vpack.c.bf16 %v159_v34, %v158_v33  ;;  %v161_v39 = vld [vmem:[%s1776_s1 + $0x218] sm:$0xff]  ;;  %v14_v40 = vld [vmem:[%s1777_s0] sm:$0xff]  ;;  %v16_v41 = vld [vmem:[%s1777_s0 + $0x10] sm:$0xff] }
  0x19   :  { %v20_v42 = vld [vmem:[%s1777_s0 + $0x30] sm:$0xff]  ;;  %v1122_v43 = vpack.c.bf16 %v161_v39, %v160_v38  ;;  %v22_v44 = vld [vmem:[%s1777_s0 + $0x40] sm:$0xff]  ;;  %v163_v46 = vld [vmem:[%s1776_s1 + $0x228] sm:$0xff] }
  0x1a   :  { %1077 = vmatpush3.bf16.msra.mxu0 %v1076_v11  ;;  %v162_v45 = vld [vmem:[%s1776_s1 + $0x220] sm:$0xff]  ;;  %v19_v47 = vld [vmem:[%s1777_s0 + $0x28] sm:$0xff]  ;;  %v21_v48 = vld [vmem:[%s1777_s0 + $0x38] sm:$0xff] }
  0x1b   :  { %1109 = vmatpush3.bf16.msra.mxu1 %v1108_v14  ;;  %1079 = vmatprep.subr.bf16.mxu0 %v1078_v15  ;;  %v25_v49 = vld [vmem:[%s1777_s0 + $0x58] sm:$0xff]  ;;  %v27_v50 = vld [vmem:[%s1777_s0 + $0x68] sm:$0xff]  ;;  %v1126_v51 = vpack.c.bf16 %v163_v46, %v162_v45  ;;  %v24_v52 = vld [vmem:[%s1777_s0 + $0x50] sm:$0xff] }
  0x1c   :  { %1111 = vmatprep.subr.bf16.mxu1 %v1110_v19  ;;  %v164_v53 = vld [vmem:[%s1776_s1 + $0x230] sm:$0xff]  ;;  %v26_v54 = vld [vmem:[%s1777_s0 + $0x60] sm:$0xff]  ;;  %v165_v56 = vld [vmem:[%s1776_s1 + $0x238] sm:$0xff] }
  0x1d   :  { %v30_v55 = vld [vmem:[%s1777_s0 + $0x80] sm:$0xff]  ;;  %v32_v57 = vld [vmem:[%s1777_s0 + $0x90] sm:$0xff]  ;;  %v1130_v58 = vpack.c.bf16 %v165_v56, %v164_v53  ;;  %v29_v59 = vld [vmem:[%s1777_s0 + $0x78] sm:$0xff] }
  0x1e   :  { %1081 = vmatpush3.bf16.msra.mxu0 %v1080_v25  ;;  %v31_v60 = vld [vmem:[%s1777_s0 + $0x88] sm:$0xff]  ;;  %v37_v62 = vld [vmem:[%s1777_s0 + $0xb8] sm:$0xff]  ;;  %v34_v63 = vld [vmem:[%s1777_s0 + $0xa0] sm:$0xff] }
  0x1f   :  { %1113 = vmatpush3.bf16.msra.mxu1 %v1112_v26  ;;  %1083 = vmatprep.subr.bf16.mxu0 %v1082_v27  ;;  %v35_v61 = vld [vmem:[%s1777_s0 + $0xa8] sm:$0xff]  ;;  %v36_v0 = vld [vmem:[%s1777_s0 + $0xb0] sm:$0xff]  ;;  %v42_v2 = vld [vmem:[%s1777_s0 + $0xe0] sm:$0xff] }
  0x20   :  { %1115 = vmatprep.subr.bf16.mxu1 %v1114_v31  ;;  %v40_v1 = vld [vmem:[%s1777_s0 + $0xd0] sm:$0xff]  ;;  %v166_v3 = vld [vmem:[%s1778_s2] sm:$0xff]  ;;  %v39_v5 = vld [vmem:[%s1777_s0 + $0xc8] sm:$0xff] }
  0x21   :  { %184 = vperm.xlu0 %1143, %v166_v3   ;;  %v168_v4 = vld [vmem:[%s1778_s2 + $0x10] sm:$0xff]  ;;  %v167_v6 = vld [vmem:[%s1778_s2 + $0x8] sm:$0xff]  ;;  %v41_v7 = vld [vmem:[%s1777_s0 + $0xd8] sm:$0xff] }
  0x22   :  { %1085 = vmatpush3.bf16.msra.mxu0 %v1084_v35  ;;  %v45_v8 = vld [vmem:[%s1777_s0 + $0xf8] sm:$0xff]  ;;  %194 = vperm.xlu1 %1144, %v168_v4   ;;  %v47_v9 = vld [vmem:[%s1777_s0 + $0x108] sm:$0xff]  ;;  %v44_v11 = vld [vmem:[%s1777_s0 + $0xf0] sm:$0xff] }
  0x23   :  { %1117 = vmatpush3.bf16.msra.mxu1 %v1116_v36  ;;  %1119 = vmatprep.subr.bf16.mxu0 %v1118_v37  ;;  %v169_v10 = vld [vmem:[%s1778_s2 + $0x18] sm:$0xff]  ;;  %v170_v12 = vld [vmem:[%s1778_s2 + $0x20] sm:$0xff]  ;;  %v52_v15 = vld [vmem:[%s1777_s0 + $0x130] sm:$0xff] }
  0x24   :  { %1134 = vmatprep.subr.bf16.mxu1 %v1118_v37  ;;  %v46_v13 = vld [vmem:[%s1777_s0 + $0x100] sm:$0xff]  ;;  %v171_v16 = vld [vmem:[%s1778_s2 + $0x28] sm:$0xff]  ;;  %v49_v17 = vld [vmem:[%s1777_s0 + $0x118] sm:$0xff] }
  0x25   :  { %376 = vmatmul.mubr.f32.vlgmr.msra.gmra.mrb[0].mxu0 %v14_v40  ;;  %189 = vperm.xlu0 %1143, %v167_v6   ;;  %v50_v14 = vld [vmem:[%s1777_s0 + $0x120] sm:$0xff]  ;;  %v172_v18 = vld [vmem:[%s1778_s2 + $0x30] sm:$0xff]  ;;  %v51_v19 = vld [vmem:[%s1777_s0 + $0x128] sm:$0xff] }
  0x26   :  { %521 = vmatmul.mubr.f32.vlgmr.msra.gmra.mrb[0].mxu1 %v16_v41  ;;  %1121 = vmatpush3.bf16.msra.mxu0 %v1118_v37  ;;  %v55_v20 = vld [vmem:[%s1777_s0 + $0x148] sm:$0xff]  ;;  %v57_v21 = vld [vmem:[%s1777_s0 + $0x158] sm:$0xff]  ;;  %v54_v23 = vld [vmem:[%s1777_s0 + $0x140] sm:$0xff] }
  0x27   :  { %1138 = vmatpush3.bf16.msra.mxu1 %v1118_v37  ;;  %380 = vmatprep.mubr.f32.mxu0 %v20_v42  ;;  %v173_v22 = vld [vmem:[%s1778_s2 + $0x38] sm:$0xff]  ;;  %v174_v24 = vld [vmem:[%s1778_s2 + $0x40] sm:$0xff]  ;;  %v56_v25 = vld [vmem:[%s1777_s0 + $0x150] sm:$0xff] }
  0x28   :  { %525 = vmatprep.mubr.f32.mxu1 %v22_v44  ;;  %1123 = vmatprep.subr.bf16.mxu0 %v1122_v43  ;;  %v60_v26 = vld [vmem:[%s1777_s0 + $0x170] sm:$0xff]  ;;  %v62_v27 = vld [vmem:[%s1777_s0 + $0x180] sm:$0xff]  ;;  %v175_v28 = vld [vmem:[%s1778_s2 + $0x48] sm:$0xff] }
  0x29   :  { %381 = vmatmul.mubr.f32.gmra.mrb[2].mxu0 %v19_v47  ;;  %1135 = vmatprep.subr.bf16.mxu1 %v1122_v43  ;;  %v59_v29 = vld [vmem:[%s1777_s0 + $0x168] sm:$0xff]  ;;  %v176_v30 = vld [vmem:[%s1778_s2 + $0x50] sm:$0xff]  ;;  %v61_v31 = vld [vmem:[%s1777_s0 + $0x178] sm:$0xff] }
  0x2a   :  { %526 = vmatmul.mubr.f32.gmra.mrb[2].mxu1 %v21_v48  ;;  %385 = vmatprep.mubr.f32.mxu0 %v25_v49  ;;  %v65_v32 = vld [vmem:[%s1777_s0 + $0x198] sm:$0xff]  ;;  %v67_v33 = vld [vmem:[%s1777_s0 + $0x1a8] sm:$0xff]  ;;  %v64_v35 = vld [vmem:[%s1777_s0 + $0x190] sm:$0xff] }
  0x2b   :  { %530 = vmatprep.mubr.f32.mxu1 %v27_v50  ;;  %1125 = vmatpush3.bf16.msra.mxu0 %v1122_v43  ;;  %v177_v34 = vld [vmem:[%s1778_s2 + $0x58] sm:$0xff]  ;;  %v178_v36 = vld [vmem:[%s1778_s2 + $0x60] sm:$0xff]  ;;  %v72_v39 = vld [vmem:[%s1777_s0 + $0x1d0] sm:$0xff] }
  0x2c   :  { %1139 = vmatpush3.bf16.msra.mxu1 %v1122_v43  ;;  %1127 = vmatprep.subr.bf16.mxu0 %v1126_v51  ;;  %v66_v37 = vld [vmem:[%s1777_s0 + $0x1a0] sm:$0xff]  ;;  %v179_v40 = vld [vmem:[%s1778_s2 + $0x68] sm:$0xff]  ;;  %v69_v41 = vld [vmem:[%s1777_s0 + $0x1b8] sm:$0xff] }
  0x2d   :  { %386 = vmatmul.mubr.f32.gmra.mrb[4].mxu0 %v24_v52  ;;  %1136 = vmatprep.subr.bf16.mxu1 %v1126_v51  ;;  %v70_v38 = vld [vmem:[%s1777_s0 + $0x1c0] sm:$0xff]  ;;  %v180_v42 = vld [vmem:[%s1778_s2 + $0x70] sm:$0xff]  ;;  %v71_v43 = vld [vmem:[%s1777_s0 + $0x1c8] sm:$0xff] }
  0x2e   :  { %531 = vmatmul.mubr.f32.gmra.mrb[4].mxu1 %v26_v54  ;;  %390 = vmatprep.mubr.f32.mxu0 %v30_v55  ;;  %v75_v44 = vld [vmem:[%s1777_s0 + $0x1e8] sm:$0xff]  ;;  %v77_v45 = vld [vmem:[%s1777_s0 + $0x1f8] sm:$0xff]  ;;  %v74_v47 = vld [vmem:[%s1777_s0 + $0x1e0] sm:$0xff] }
  0x2f   :  { %535 = vmatprep.mubr.f32.mxu1 %v32_v57  ;;  %1129 = vmatpush3.bf16.msra.mxu0 %v1126_v51  ;;  %v181_v46 = vld [vmem:[%s1778_s2 + $0x78] sm:$0xff]  ;;  %v76_v48 = vld [vmem:[%s1777_s0 + $0x1f0] sm:$0xff]  ;;  %v82_v50 = vld [vmem:[%s1777_s0 + $0x220] sm:$0xff] }
  0x30   :  { %1140 = vmatpush3.bf16.msra.mxu1 %v1126_v51  ;;  %1131 = vmatprep.subr.bf16.mxu0 %v1130_v58  ;;  %v80_v49 = vld [vmem:[%s1777_s0 + $0x210] sm:$0xff]  ;;  %v79_v51 = vld [vmem:[%s1777_s0 + $0x208] sm:$0xff]  ;;  %v81_v52 = vld [vmem:[%s1777_s0 + $0x218] sm:$0xff] }
  0x31   :  { %391 = vmatmul.mubr.f32.gmra.mrb[6].mxu0 %v29_v59  ;;  %1137 = vmatprep.subr.bf16.mxu1 %v1130_v58  ;;  %v85_v53 = vld [vmem:[%s1777_s0 + $0x238] sm:$0xff]  ;;  %v87_v54 = vld [vmem:[%s1777_s0 + $0x248] sm:$0xff]  ;;  %v84_v55 = vld [vmem:[%s1777_s0 + $0x230] sm:$0xff] }
  0x32   :  { %536 = vmatmul.mubr.f32.gmra.mrb[6].mxu1 %v31_v60  ;;  %395 = vmatprep.mubr.f32.mxu0 %v35_v61  ;;  %v86_v56 = vld [vmem:[%s1777_s0 + $0x240] sm:$0xff]  ;;  %v89_v59 = vld [vmem:[%s1777_s0 + $0x258] sm:$0xff]  ;;  %v91_v60 = vld [vmem:[%s1777_s0 + $0x268] sm:$0xff] }
  0x33   :  { %540 = vmatprep.mubr.f32.mxu1 %v37_v62  ;;  %1133 = vmatpush3.bf16.msra.mxu0 %v1130_v58  ;;  %v90_v57 = vld [vmem:[%s1777_s0 + $0x260] sm:$0xff]  ;;  %v33_v3 = vld [vmem:[%s1777_s0 + $0x98] sm:$0xff] }
  0x34   :  { %1141 = vmatpush3.bf16.msra.mxu1 %v1130_v58  ;;  %199 = vperm.xlu1 %1144, %v169_v10   ;;  %v92_v58 = vld [vmem:[%s1777_s0 + $0x270] sm:$0xff]  ;;  %v18_v61 = vld [vmem:[%s1777_s0 + $0x20] sm:$0xff]  ;;  %v73_v4 = vld [vmem:[%s1777_s0 + $0x1d8] sm:$0xff] }
  0x35   :  { %396 = vmatmul.mubr.f32.gmra.mrb[8].mxu0 %v34_v63  ;;  %204 = vperm.xlu0 %1143, %v170_v12   ;;  %v58_v62 = vld [vmem:[%s1777_s0 + $0x160] sm:$0xff]  ;;  %v23_v63 = vld [vmem:[%s1777_s0 + $0x48] sm:$0xff]  ;;  %v88_v10 = vld [vmem:[%s1777_s0 + $0x250] sm:$0xff] }
  0x36   :  { %541 = vmatmul.mubr.f32.gmra.mrb[8].mxu1 %v36_v0  ;;  %400 = vmatprep.mubr.f32.mxu0 %v40_v1  ;;  %v63_v0 = vld [vmem:[%s1777_s0 + $0x188] sm:$0xff]  ;;  %v28_v1 = vld [vmem:[%s1777_s0 + $0x70] sm:$0xff]  ;;  %v78_v6 = vld [vmem:[%s1777_s0 + $0x200] sm:$0xff] }
  0x37   :  { %545 = vmatprep.mubr.f32.mxu1 %v42_v2  ;;  %v68_v2 = vld [vmem:[%s1777_s0 + $0x1b0] sm:$0xff]  ;;  %v93_v12 = vld [vmem:[%s1777_s0 + $0x278] sm:$0xff] }
  0x38   :  { %209 = vperm.xlu1 %1144, %v171_v16  }
  0x39   :  { %401 = vmatmul.mubr.f32.gmra.mrb[10].mxu0 %v39_v5  ;;  %214 = vperm.xlu0 %1143, %v172_v18   ;;  %v38_v5 = vld [vmem:[%s1777_s0 + $0xc0] sm:$0xff] }
  0x3a   :  { %546 = vmatmul.mubr.f32.gmra.mrb[10].mxu1 %v41_v7  ;;  %405 = vmatprep.mubr.f32.mxu0 %v45_v8  ;;  %v43_v7 = vld [vmem:[%s1777_s0 + $0xe8] sm:$0xff] }
  0x3b   :  { %550 = vmatprep.mubr.f32.mxu1 %v47_v9  ;;  %v83_v8 = vld [vmem:[%s1777_s0 + $0x228] sm:$0xff]  ;;  %v48_v9 = vld [vmem:[%s1777_s0 + $0x110] sm:$0xff] }
  0x3c   :  { %219 = vperm.xlu1 %1144, %v173_v22  }
  0x3d   :  { %406 = vmatmul.mubr.f32.gmra.mrb[12].mxu0 %v44_v11  ;;  %224 = vperm.xlu0 %1143, %v174_v24   ;;  %v53_v11 = vld [vmem:[%s1777_s0 + $0x138] sm:$0xff] }
  0x3e   :  { %551 = vmatmul.mubr.f32.gmra.mrb[12].mxu1 %v46_v13  ;;  %410 = vmatprep.mubr.f32.mxu0 %v50_v14 }
  0x3f   :  { %555 = vmatprep.mubr.f32.mxu1 %v52_v15 }
  0x40   :  { %229 = vperm.xlu1 %1144, %v175_v28  }
  0x41   :  { %411 = vmatmul.mubr.f32.gmra.mrb[14].mxu0 %v49_v17  ;;  %234 = vperm.xlu0 %1143, %v176_v30  }
  0x42   :  { %556 = vmatmul.mubr.f32.gmra.mrb[14].mxu1 %v51_v19  ;;  %415 = vmatprep.mubr.f32.mxu0 %v55_v20 }
  0x43   :  { %560 = vmatprep.mubr.f32.mxu1 %v57_v21 }
  0x44   :  { %239 = vperm.xlu1 %1144, %v177_v34  }
  0x45   :  { %416 = vmatmul.mubr.f32.gmra.mrb[16].mxu0 %v54_v23  ;;  %244 = vperm.xlu0 %1143, %v178_v36  }
  0x46   :  { %561 = vmatmul.mubr.f32.gmra.mrb[16].mxu1 %v56_v25  ;;  %420 = vmatprep.mubr.f32.mxu0 %v60_v26 }
  0x47   :  { %565 = vmatprep.mubr.f32.mxu1 %v62_v27 }
  0x48   :  { %249 = vperm.xlu1 %1144, %v179_v40  }
  0x49   :  { %421 = vmatmul.mubr.f32.gmra.mrb[18].mxu0 %v59_v29  ;;  %254 = vperm.xlu0 %1143, %v180_v42  }
  0x4a   :  { %566 = vmatmul.mubr.f32.gmra.mrb[18].mxu1 %v61_v31  ;;  %425 = vmatprep.mubr.f32.mxu0 %v65_v32 }
  0x4b   :  { %570 = vmatprep.mubr.f32.mxu1 %v67_v33 }
  0x4c   :  { %259 = vperm.xlu1 %1144, %v181_v46  }
  0x4d   :  { %426 = vmatmul.mubr.f32.gmra.mrb[20].mxu0 %v64_v35 }
  0x4e   :  { %571 = vmatmul.mubr.f32.gmra.mrb[20].mxu1 %v66_v37  ;;  %430 = vmatprep.mubr.f32.mxu0 %v70_v38 }
  0x4f   :  { %575 = vmatprep.mubr.f32.mxu1 %v72_v39 }
  0x51   :  { %431 = vmatmul.mubr.f32.gmra.mrb[22].mxu0 %v69_v41 }
  0x52   :  { %576 = vmatmul.mubr.f32.gmra.mrb[22].mxu1 %v71_v43  ;;  %435 = vmatprep.mubr.f32.mxu0 %v75_v44 }
  0x53   :  { %580 = vmatprep.mubr.f32.mxu1 %v77_v45 }
  0x55   :  { %436 = vmatmul.mubr.f32.gmra.mrb[24].mxu0 %v74_v47 }
  0x56   :  { %581 = vmatmul.mubr.f32.gmra.mrb[24].mxu1 %v76_v48  ;;  %440 = vmatprep.mubr.f32.mxu0 %v80_v49 }
  0x57   :  { %585 = vmatprep.mubr.f32.mxu1 %v82_v50 }
  0x59   :  { %441 = vmatmul.mubr.f32.gmra.mrb[26].mxu0 %v79_v51 }
  0x5a   :  { %586 = vmatmul.mubr.f32.gmra.mrb[26].mxu1 %v81_v52  ;;  %445 = vmatprep.mubr.f32.mxu0 %v85_v53 }
  0x5b   :  { %590 = vmatprep.mubr.f32.mxu1 %v87_v54 }
  0x5d   :  { %446 = vmatmul.mubr.f32.gmra.mrb[28].mxu0 %v84_v55 }
  0x5e   :  { %591 = vmatmul.mubr.f32.gmra.mrb[28].mxu1 %v86_v56  ;;  %450 = vmatprep.mubr.f32.mxu0 %v90_v57 }
  0x5f   :  { %595 = vmatprep.mubr.f32.mxu1 %v92_v58 }
  0x61   :  { %451 = vmatmul.mubr.f32.gmra.mrb[30].mxu0 %v89_v59 }
  0x62   :  { %596 = vmatmul.mubr.f32.gmra.mrb[30].mxu1 %v91_v60  ;;  %1030 = vmatprep.mubr.msk.f32.mxu0 %vm262_vm0, %v18_v61 }
  0x63   :  { %1042 = vmatprep.mubr.msk.f32.mxu1 %vm262_vm0, %v58_v62 }
  0x65   :  { %1031 = vmatmul.mubr.msk.f32.vlgmr.msra.gmra.mrb[32].mxu0 %vm262_vm0, %v23_v63 }
  0x66   :  { %1043 = vmatmul.mubr.msk.f32.vlgmr.msra.gmra.mrb[32].mxu1 %vm262_vm0, %v63_v0  ;;  %1033 = vmatprep.mubr.msk.f32.mxu0 %vm262_vm0, %v28_v1 }
  0x67   :  { %1045 = vmatprep.mubr.msk.f32.mxu1 %vm262_vm0, %v68_v2 }
  0x69   :  { %1034 = vmatmul.mubr.msk.f32.gmra.mrb[34].mxu0 %vm262_vm0, %v33_v3 }
  0x6a   :  { %1046 = vmatmul.mubr.msk.f32.gmra.mrb[34].mxu1 %vm262_vm0, %v73_v4  ;;  %1036 = vmatprep.mubr.msk.f32.mxu0 %vm262_vm0, %v38_v5 }
  0x6b   :  { %1048 = vmatprep.mubr.msk.f32.mxu1 %vm262_vm0, %v78_v6 }
  0x6d   :  { %1037 = vmatmul.mubr.msk.f32.gmra.mrb[36].mxu0 %vm262_vm0, %v43_v7 }
  0x6e   :  { %1049 = vmatmul.mubr.msk.f32.gmra.mrb[36].mxu1 %vm262_vm0, %v83_v8  ;;  %1039 = vmatprep.mubr.msk.f32.mxu0 %vm262_vm0, %v48_v9 }
  0x6f   :  { %1051 = vmatprep.mubr.msk.f32.mxu1 %vm262_vm0, %v88_v10 }
  0x71   :  { %1040 = vmatmul.mubr.msk.f32.gmra.mrb[38].mxu0 %vm262_vm0, %v53_v11 }
  0x72   :  { %1052 = vmatmul.mubr.msk.f32.gmra.mrb[38].mxu1 %vm262_vm0, %v93_v12 }
  0xa0   :  { %v185_v13 = vpop.permute.xlu0 %184 }
  0xa1   :  { %v195_v27 = vpop.permute.xlu1 %194 }
  0xa4   :  { %v190_v22 = vpop.permute.xlu0 %189 }
  0xb3   :  { %v200_v40 = vpop.permute.xlu1 %199 }
  0xb4   :  { %v205_v49 = vpop.permute.xlu0 %204 }
  0xb7   :  { %v210_v58 = vpop.permute.xlu1 %209 }
  0xb8   :  { %v215_v3 = vpop.permute.xlu0 %214 }
  0xf8   :  { %v862_v14 = vpop.f32.mrb[0].mxu0 }
  0xf9   :  { %v942_v15 = vpop.f32.mrb[0].mxu1  ;;  %v863_v16 = vpop.f32.mrb[1].mxu0 }
  0xfa   :  { %v864_v17 = vadd.f32 %v863_v16, %v862_v14  ;;  %v943_v18 = vpop.f32.mrb[1].mxu1 }
  0xfb   :  { %v944_v19 = vadd.f32 %v943_v18, %v942_v15  ;;  %v220_v18 = vpop.permute.xlu1 %219 }
  0xfc   :  { %v378_v20 = vadd.f32 %v864_v17, %v185_v13  ;;  %v865_v21 = vpop.f32.mrb[2].mxu0 }
  0xfd   :  { %v945_v23 = vpop.f32.mrb[2].mxu1  ;;  %v866_v24 = vpop.f32.mrb[3].mxu0 }
  0xfe   :  { %v867_v25 = vadd.f32 %v866_v24, %v865_v21  ;;  %v946_v26 = vpop.f32.mrb[3].mxu1  ;;  %v1686_v28 = vadd.f32 %v944_v19, %v378_v20 }
  0xff   :  { %v947_v29 = vadd.f32 %v946_v26, %v945_v23 }
 0x100   :  { %v383_v30 = vadd.f32 %v867_v25, %v190_v22  ;;  %v868_v31 = vpop.f32.mrb[4].mxu0 }
 0x101   :  { %v948_v32 = vpop.f32.mrb[4].mxu1  ;;  %v869_v33 = vpop.f32.mrb[5].mxu0 }
 0x102   :  { %v870_v34 = vadd.f32 %v869_v33, %v868_v31  ;;  %v949_v35 = vpop.f32.mrb[5].mxu1  ;;  %v1688_v36 = vadd.f32 %v947_v29, %v383_v30 }
 0x103   :  { %v950_v37 = vadd.f32 %v949_v35, %v948_v32 }
 0x104   :  { %v388_v38 = vadd.f32 %v870_v34, %v195_v27  ;;  %v871_v39 = vpop.f32.mrb[6].mxu0  ;;  %v225_v27 = vpop.permute.xlu0 %224 }
 0x105   :  { %v951_v41 = vpop.f32.mrb[6].mxu1  ;;  %v872_v42 = vpop.f32.mrb[7].mxu0 }
 0x106   :  { %v873_v43 = vadd.f32 %v872_v42, %v871_v39  ;;  %v952_v44 = vpop.f32.mrb[7].mxu1  ;;  %v1690_v45 = vadd.f32 %v950_v37, %v388_v38  ;;  %v230_v37 = vpop.permute.xlu1 %229 }
 0x107   :  { %v953_v46 = vadd.f32 %v952_v44, %v951_v41 }
 0x108   :  { %v393_v47 = vadd.f32 %v873_v43, %v200_v40  ;;  %v874_v48 = vpop.f32.mrb[8].mxu0 }
 0x109   :  { %v954_v50 = vpop.f32.mrb[8].mxu1  ;;  %v875_v51 = vpop.f32.mrb[9].mxu0 }
 0x10a   :  { %v876_v52 = vadd.f32 %v875_v51, %v874_v48  ;;  %v955_v53 = vpop.f32.mrb[9].mxu1  ;;  %v1692_v54 = vadd.f32 %v953_v46, %v393_v47  ;;  %v235_v47 = vpop.permute.xlu0 %234 }
 0x10b   :  { %v956_v55 = vadd.f32 %v955_v53, %v954_v50 }
 0x10c   :  { %v398_v56 = vadd.f32 %v876_v52, %v205_v49  ;;  %v877_v57 = vpop.f32.mrb[10].mxu0 }
 0x10d   :  { %v957_v59 = vpop.f32.mrb[10].mxu1  ;;  %v878_v60 = vpop.f32.mrb[11].mxu0 }
 0x10e   :  { %v879_v61 = vadd.f32 %v878_v60, %v877_v57  ;;  %v958_v62 = vpop.f32.mrb[11].mxu1  ;;  %v1694_v63 = vadd.f32 %v956_v55, %v398_v56  ;;  %v240_v57 = vpop.permute.xlu1 %239 }
 0x10f   :  { %v959_v0 = vadd.f32 %v958_v62, %v957_v59 }
 0x110   :  { %v403_v1 = vadd.f32 %v879_v61, %v210_v58  ;;  %v880_v2 = vpop.f32.mrb[12].mxu0 }
 0x111   :  { %v960_v4 = vpop.f32.mrb[12].mxu1  ;;  %v881_v5 = vpop.f32.mrb[13].mxu0 }
 0x112   :  { %v882_v6 = vadd.f32 %v881_v5, %v880_v2  ;;  %v961_v7 = vpop.f32.mrb[13].mxu1  ;;  %v1696_v8 = vadd.f32 %v959_v0, %v403_v1 }
 0x113   :  { %v962_v9 = vadd.f32 %v961_v7, %v960_v4 }
 0x114   :  { %v408_v10 = vadd.f32 %v882_v6, %v215_v3  ;;  %v883_v11 = vpop.f32.mrb[14].mxu0  ;;  %v245_v3 = vpop.permute.xlu0 %244 }
 0x115   :  { %v963_v12 = vpop.f32.mrb[14].mxu1  ;;  %v884_v13 = vpop.f32.mrb[15].mxu0 }
 0x116   :  { %v885_v14 = vadd.f32 %v884_v13, %v883_v11  ;;  %v964_v15 = vpop.f32.mrb[15].mxu1  ;;  %v1698_v16 = vadd.f32 %v962_v9, %v408_v10  ;;  %v250_v13 = vpop.permute.xlu1 %249 }
 0x117   :  { %v965_v17 = vadd.f32 %v964_v15, %v963_v12 }
 0x118   :  { %v413_v19 = vadd.f32 %v885_v14, %v220_v18  ;;  %v886_v20 = vpop.f32.mrb[16].mxu0 }
 0x119   :  { %v966_v21 = vpop.f32.mrb[16].mxu1  ;;  %v887_v22 = vpop.f32.mrb[17].mxu0 }
 0x11a   :  { %v888_v23 = vadd.f32 %v887_v22, %v886_v20  ;;  %v967_v24 = vpop.f32.mrb[17].mxu1  ;;  %v1700_v25 = vadd.f32 %v965_v17, %v413_v19 }
 0x11b   :  { %v968_v26 = vadd.f32 %v967_v24, %v966_v21 }
 0x11c   :  { %v418_v29 = vadd.f32 %v888_v23, %v225_v27  ;;  %v889_v30 = vpop.f32.mrb[18].mxu0  ;;  %v255_v23 = vpop.permute.xlu0 %254 }
 0x11d   :  { %v969_v31 = vpop.f32.mrb[18].mxu1  ;;  %v890_v32 = vpop.f32.mrb[19].mxu0 }
 0x11e   :  { %v891_v33 = vadd.f32 %v890_v32, %v889_v30  ;;  %v970_v34 = vpop.f32.mrb[19].mxu1  ;;  %v1702_v35 = vadd.f32 %v968_v26, %v418_v29 }
 0x11f   :  { %v971_v38 = vadd.f32 %v970_v34, %v969_v31  ;;  %v260_v34 = vpop.permute.xlu1 %259 }
 0x120   :  { %v423_v39 = vadd.f32 %v891_v33, %v230_v37  ;;  %v892_v40 = vpop.f32.mrb[20].mxu0 }
 0x121   :  { %v972_v41 = vpop.f32.mrb[20].mxu1  ;;  %v893_v42 = vpop.f32.mrb[21].mxu0 }
 0x122   :  { %v894_v43 = vadd.f32 %v893_v42, %v892_v40  ;;  %v973_v44 = vpop.f32.mrb[21].mxu1  ;;  %v568_v46 = vadd.f32 %v971_v38, %v423_v39 }
 0x123   :  { %v974_v48 = vadd.f32 %v973_v44, %v972_v41 }
 0x124   :  { %v428_v49 = vadd.f32 %v894_v43, %v235_v47  ;;  %v895_v50 = vpop.f32.mrb[22].mxu0 }
 0x125   :  { %v975_v51 = vpop.f32.mrb[22].mxu1  ;;  %v896_v52 = vpop.f32.mrb[23].mxu0 }
 0x126   :  { %v897_v53 = vadd.f32 %v896_v52, %v895_v50  ;;  %v976_v55 = vpop.f32.mrb[23].mxu1  ;;  %v1704_v56 = vadd.f32 %v974_v48, %v428_v49 }
 0x127   :  { %v977_v58 = vadd.f32 %v976_v55, %v975_v51 }
 0x128   :  { %v433_v59 = vadd.f32 %v897_v53, %v240_v57  ;;  %v898_v60 = vpop.f32.mrb[24].mxu0 }
 0x129   :  { %v978_v61 = vpop.f32.mrb[24].mxu1  ;;  %v899_v62 = vpop.f32.mrb[25].mxu0 }
 0x12a   :  { %v900_v0 = vadd.f32 %v899_v62, %v898_v60  ;;  %v979_v1 = vpop.f32.mrb[25].mxu1  ;;  %v578_v2 = vadd.f32 %v977_v58, %v433_v59 }
 0x12b   :  { %v980_v4 = vadd.f32 %v979_v1, %v978_v61 }
 0x12c   :  { %v438_v5 = vadd.f32 %v900_v0, %v245_v3  ;;  %v901_v6 = vpop.f32.mrb[26].mxu0 }
 0x12d   :  { %v981_v7 = vpop.f32.mrb[26].mxu1  ;;  %v902_v9 = vpop.f32.mrb[27].mxu0 }
 0x12e   :  { %v903_v10 = vadd.f32 %v902_v9, %v901_v6  ;;  %v982_v11 = vpop.f32.mrb[27].mxu1  ;;  %v1706_v12 = vadd.f32 %v980_v4, %v438_v5 }
 0x12f   :  { %v983_v14 = vadd.f32 %v982_v11, %v981_v7 }
 0x130   :  { %v443_v15 = vadd.f32 %v903_v10, %v250_v13  ;;  %v904_v17 = vpop.f32.mrb[28].mxu0 }
 0x131   :  { %v984_v18 = vpop.f32.mrb[28].mxu1  ;;  %v905_v19 = vpop.f32.mrb[29].mxu0 }
 0x132   :  { %v906_v20 = vadd.f32 %v905_v19, %v904_v17  ;;  %v985_v21 = vpop.f32.mrb[29].mxu1  ;;  %v1708_v22 = vadd.f32 %v983_v14, %v443_v15 }
 0x133   :  { %v986_v24 = vadd.f32 %v985_v21, %v984_v18 }
 0x134   :  { %v448_v26 = vadd.f32 %v906_v20, %v255_v23  ;;  %v907_v27 = vpop.f32.mrb[30].mxu0 }
 0x135   :  { %v987_v29 = vpop.f32.mrb[30].mxu1  ;;  %v908_v30 = vpop.f32.mrb[31].mxu0 }
 0x136   :  { %v909_v31 = vadd.f32 %v908_v30, %v907_v27  ;;  %v988_v32 = vpop.f32.mrb[31].mxu1  ;;  %v1710_v33 = vadd.f32 %v986_v24, %v448_v26 }
 0x137   :  { %v989_v37 = vadd.f32 %v988_v32, %v987_v29 }
 0x138   :  { %v453_v38 = vadd.f32 %v909_v31, %v260_v34  ;;  %v1032_v39 = vpop.f32.mrb[32].mxu0 }
 0x139   :  { %v673_v40 = vadd.f32 %v1032_v39, %v1688_v36  ;;  %v1044_v41 = vpop.f32.mrb[32].mxu1  ;;  %v667_v42 = vpop.f32.mrb[33].mxu0 }
 0x13a   :  { %v713_v43 = vadd.f32 %v1044_v41, %v568_v46  ;;  %v668_v44 = vadd.f32 %v667_v42, %v1686_v28  ;;  %v707_v47 = vpop.f32.mrb[33].mxu1  ;;  %v1714_v48 = vadd.f32 %v989_v37, %v453_v38 }
 0x13b   :  { %vm747_vm1 = vcmp.ge.f32.partialorder %v673_v40, 0.0  ;;  %v763_v49 = vmul.f32 0.2, %v673_v40  ;;  %v708_v50 = vadd.f32 %v707_v47, %v1702_v35 }
 0x13c   :  { %vm755_vm2 = vcmp.ge.f32.partialorder %v713_v43, 0.0  ;;  %v771_v51 = vmul.f32 0.2, %v713_v43  ;;  %vm746_vm3 = vcmp.ge.f32.partialorder %v668_v44, 0.0  ;;  %v762_v52 = vmul.f32 0.2, %v668_v44 }
 0x13d   :  { %v779_v53 = vsel %vm747_vm1, %v673_v40, %v763_v49  ;;  %vm754_vm4 = vcmp.ge.f32.partialorder %v708_v50, 0.0  ;;  %v770_v55 = vmul.f32 0.2, %v708_v50  ;;  %v1035_v36 = vpop.f32.mrb[34].mxu0  ;;  %v1047_v57 = vpop.f32.mrb[34].mxu1 }
 0x13e   :  { %795 = vst [vmem:[%s1779_s3 + $0x8] sm:$0xff] %v779_v53  ;;  %v787_v28 = vsel %vm755_vm2, %v713_v43, %v771_v51  ;;  %v778_v46 = vsel %vm746_vm3, %v668_v44, %v762_v52  ;;  %v683_v58 = vadd.f32 %v1035_v36, %v1692_v54  ;;  %v723_v59 = vadd.f32 %v1047_v57, %v578_v2  ;;  %v677_v60 = vpop.f32.mrb[35].mxu0  ;;  %v717_v35 = vpop.f32.mrb[35].mxu1 }
 0x13f   :  { %803 = vst [vmem:[%s1779_s3 + $0x48] sm:$0xff] %v787_v28  ;;  %794 = vst [vmem:[%s1779_s3] sm:$0xff] %v778_v46  ;;  %v786_v61 = vsel %vm754_vm4, %v708_v50, %v770_v55  ;;  %v678_v62 = vadd.f32 %v677_v60, %v1690_v45  ;;  %v718_v0 = vadd.f32 %v717_v35, %v1704_v56 }
 0x140   :  { %802 = vst [vmem:[%s1779_s3 + $0x40] sm:$0xff] %v786_v61  ;;  %vm749_vm5 = vcmp.ge.f32.partialorder %v683_v58, 0.0  ;;  %v765_v54 = vmul.f32 0.2, %v683_v58  ;;  %vm757_vm6 = vcmp.ge.f32.partialorder %v723_v59, 0.0  ;;  %v1038_v6 = vpop.f32.mrb[36].mxu0 }
 0x141   :  { %v773_v1 = vmul.f32 0.2, %v723_v59  ;;  %vm748_vm7 = vcmp.ge.f32.partialorder %v678_v62, 0.0  ;;  %v764_v2 = vmul.f32 0.2, %v678_v62  ;;  %vm756_vm8 = vcmp.ge.f32.partialorder %v718_v0, 0.0 }
 0x142   :  { %v772_v3 = vmul.f32 0.2, %v718_v0  ;;  %v781_v4 = vsel %vm749_vm5, %v683_v58, %v765_v54  ;;  %v1050_v7 = vpop.f32.mrb[36].mxu1  ;;  %v693_v9 = vadd.f32 %v1038_v6, %v1696_v8  ;;  %v687_v11 = vpop.f32.mrb[37].mxu0 }
 0x143   :  { %v789_v5 = vsel %vm757_vm6, %v723_v59, %v773_v1  ;;  %797 = vst [vmem:[%s1779_s3 + $0x18] sm:$0xff] %v781_v4  ;;  %v780_v45 = vsel %vm748_vm7, %v678_v62, %v764_v2  ;;  %v733_v10 = vadd.f32 %v1050_v7, %v1708_v22  ;;  %v727_v13 = vpop.f32.mrb[37].mxu1  ;;  %v688_v14 = vadd.f32 %v687_v11, %v1694_v63 }
 0x144   :  { %805 = vst [vmem:[%s1779_s3 + $0x58] sm:$0xff] %v789_v5  ;;  %v788_v56 = vsel %vm756_vm8, %v718_v0, %v772_v3  ;;  %796 = vst [vmem:[%s1779_s3 + $0x10] sm:$0xff] %v780_v45  ;;  %v728_v15 = vadd.f32 %v727_v13, %v1706_v12  ;;  %v1041_v17 = vpop.f32.mrb[38].mxu0  ;;  %vm751_vm9 = vcmp.ge.f32.partialorder %v693_v9, 0.0  ;;  %v767_v18 = vmul.f32 0.2, %v693_v9 }
 0x145   :  { %804 = vst [vmem:[%s1779_s3 + $0x50] sm:$0xff] %v788_v56  ;;  %vm759_vm10 = vcmp.ge.f32.partialorder %v733_v10, 0.0  ;;  %v775_v8 = vmul.f32 0.2, %v733_v10  ;;  %vm750_vm11 = vcmp.ge.f32.partialorder %v688_v14, 0.0  ;;  %v703_v23 = vadd.f32 %v1041_v17, %v1700_v25  ;;  %v1053_v24 = vpop.f32.mrb[38].mxu1 }
 0x146   :  { %v766_v19 = vmul.f32 0.2, %v688_v14  ;;  %vm758_vm12 = vcmp.ge.f32.partialorder %v728_v15, 0.0  ;;  %v774_v20 = vmul.f32 0.2, %v728_v15  ;;  %v783_v21 = vsel %vm751_vm9, %v693_v9, %v767_v18  ;;  %v697_v26 = vpop.f32.mrb[39].mxu0 }
 0x147   :  { %v791_v22 = vsel %vm759_vm10, %v733_v10, %v775_v8  ;;  %799 = vst [vmem:[%s1779_s3 + $0x28] sm:$0xff] %v783_v21  ;;  %v743_v27 = vadd.f32 %v1053_v24, %v1714_v48  ;;  %v698_v29 = vadd.f32 %v697_v26, %v1698_v16  ;;  %v737_v30 = vpop.f32.mrb[39].mxu1  ;;  %vm753_vm13 = vcmp.ge.f32.partialorder %v703_v23, 0.0 }
 0x148   :  { %807 = vst [vmem:[%s1779_s3 + $0x68] sm:$0xff] %v791_v22  ;;  %v782_v63 = vsel %vm750_vm11, %v688_v14, %v766_v19  ;;  %v790_v12 = vsel %vm758_vm12, %v728_v15, %v774_v20  ;;  %v769_v25 = vmul.f32 0.2, %v703_v23  ;;  %v738_v31 = vadd.f32 %v737_v30, %v1710_v33 }
 0x149   :  { %798 = vst [vmem:[%s1779_s3 + $0x20] sm:$0xff] %v782_v63  ;;  %806 = vst [vmem:[%s1779_s3 + $0x60] sm:$0xff] %v790_v12  ;;  %vm761_vm14 = vcmp.ge.f32.partialorder %v743_v27, 0.0  ;;  %v777_v32 = vmul.f32 0.2, %v743_v27  ;;  %vm752_vm15 = vcmp.ge.f32.partialorder %v698_v29, 0.0 }
 0x14a   :  { %v768_v34 = vmul.f32 0.2, %v698_v29  ;;  %v785_v37 = vsel %vm753_vm13, %v703_v23, %v769_v25  ;;  %vm760_vm0 = vcmp.ge.f32.partialorder %v738_v31, 0.0  ;;  %v776_v16 = vmul.f32 0.2, %v738_v31 }
 0x14b   :  { %801 = vst [vmem:[%s1779_s3 + $0x38] sm:$0xff] %v785_v37  ;;  %v793_v38 = vsel %vm761_vm14, %v743_v27, %v777_v32 }
 0x14c   :  { %v784_v39 = vsel %vm752_vm15, %v698_v29, %v768_v34  ;;  %809 = vst [vmem:[%s1779_s3 + $0x78] sm:$0xff] %v793_v38  ;;  %v792_v33 = vsel %vm760_vm0, %v738_v31, %v776_v16 }
 0x14d   :  { %800 = vst [vmem:[%s1779_s3 + $0x30] sm:$0xff] %v784_v39  ;;  %808 = vst [vmem:[%s1779_s3 + $0x70] sm:$0xff] %v792_v33 }

// kernel: contextnet_forward.15
= control target key start
LH: loop header
LB: loop body
LE: loop exit
PB: predicated region body
PF: predicated region fallthrough
CT: control target
= control target key end

     0   :  { %v1778_v3 = vmov 0   ;;  %s2849_s1 = inlined_call_operand.vmem [shape: f32[1152,128], index: 1, kind: input, shape index: {}]   ;;  %s2850_s0 = inlined_call_operand.vmem [shape: f32[128,1152], index: 0, kind: input, shape index: {}]   ;;  %s2851_s2 = inlined_call_operand.vmem [shape: f32[128,1], index: 2, kind: input, shape index: {}]   ;;  %s2852_s3 = inlined_call_operand.vmem [shape: f32[128,128], index: 3, kind: output, shape index: {}]  }
   0x1   :  { %v174_v0 = vld [vmem:[%s2849_s1 + $0x80] sm:$0xff]  ;;  %v175_v1 = vld [vmem:[%s2849_s1 + $0x88] sm:$0xff]  ;;  %1776 = vset.pattern.permute.xlu0 %v1778_v3  ;;  %1777 = vset.pattern.permute.xlu1 %v1778_v3  ;;  %v176_v12 = vld [vmem:[%s2849_s1 + $0x90] sm:$0xff] }
   0x2   :  { %v206_v2 = vld [vmem:[%s2849_s1 + $0x180] sm:$0xff]  ;;  %v1599_v4 = vpack.c.bf16 %v175_v1, %v174_v0  ;;  %v207_v5 = vld [vmem:[%s2849_s1 + $0x188] sm:$0xff]  ;;  %v177_v14 = vld [vmem:[%s2849_s1 + $0x98] sm:$0xff] }
   0x3   :  { %v158_v6 = vld [vmem:[%s2849_s1] sm:$0xff]  ;;  %v159_v7 = vld [vmem:[%s2849_s1 + $0x8] sm:$0xff]  ;;  %v1631_v8 = vpack.c.bf16 %v207_v5, %v206_v2  ;;  %v208_v15 = vld [vmem:[%s2849_s1 + $0x190] sm:$0xff]  ;;  %v1603_v17 = vpack.c.bf16 %v177_v14, %v176_v12 }
   0x4   :  { %v1601_v9 = vpack.c.bf16 %v159_v7, %v158_v6  ;;  %v190_v10 = vld [vmem:[%s2849_s1 + $0x100] sm:$0xff]  ;;  %v191_v11 = vld [vmem:[%s2849_s1 + $0x108] sm:$0xff]  ;;  %1600 = vmatprep.subr.bf16.mxu0 %v1599_v4  ;;  %v209_v16 = vld [vmem:[%s2849_s1 + $0x198] sm:$0xff] }
   0x5   :  { %v1633_v13 = vpack.c.bf16 %v191_v11, %v190_v10  ;;  %1632 = vmatprep.subr.bf16.mxu1 %v1631_v8  ;;  %v1635_v18 = vpack.c.bf16 %v209_v16, %v208_v15  ;;  %v160_v19 = vld [vmem:[%s2849_s1 + $0x10] sm:$0xff]  ;;  %v161_v20 = vld [vmem:[%s2849_s1 + $0x18] sm:$0xff]  ;;  %v178_v24 = vld [vmem:[%s2849_s1 + $0xa0] sm:$0xff] }
   0x6   :  { %1602 = vmatpush3.bf16.msra.mxu0 %v1601_v9  ;;  %v192_v21 = vld [vmem:[%s2849_s1 + $0x110] sm:$0xff]  ;;  %v1605_v22 = vpack.c.bf16 %v161_v20, %v160_v19  ;;  %v193_v23 = vld [vmem:[%s2849_s1 + $0x118] sm:$0xff]  ;;  %v179_v25 = vld [vmem:[%s2849_s1 + $0xa8] sm:$0xff] }
   0x7   :  { %1634 = vmatpush3.bf16.msra.mxu1 %v1633_v13  ;;  %1604 = vmatprep.subr.bf16.mxu0 %v1603_v17  ;;  %v1637_v26 = vpack.c.bf16 %v193_v23, %v192_v21  ;;  %v1607_v27 = vpack.c.bf16 %v179_v25, %v178_v24  ;;  %v210_v28 = vld [vmem:[%s2849_s1 + $0x1a0] sm:$0xff]  ;;  %v211_v29 = vld [vmem:[%s2849_s1 + $0x1a8] sm:$0xff]  ;;  %v180_v36 = vld [vmem:[%s2849_s1 + $0xb0] sm:$0xff] }
   0x8   :  { %1636 = vmatprep.subr.bf16.mxu1 %v1635_v18  ;;  %v162_v30 = vld [vmem:[%s2849_s1 + $0x20] sm:$0xff]  ;;  %v1639_v31 = vpack.c.bf16 %v211_v29, %v210_v28  ;;  %v163_v32 = vld [vmem:[%s2849_s1 + $0x28] sm:$0xff]  ;;  %v181_v37 = vld [vmem:[%s2849_s1 + $0xb8] sm:$0xff] }
   0x9   :  { %v194_v33 = vld [vmem:[%s2849_s1 + $0x120] sm:$0xff]  ;;  %v195_v34 = vld [vmem:[%s2849_s1 + $0x128] sm:$0xff]  ;;  %v1609_v35 = vpack.c.bf16 %v163_v32, %v162_v30  ;;  %v212_v38 = vld [vmem:[%s2849_s1 + $0x1b0] sm:$0xff]  ;;  %v1611_v40 = vpack.c.bf16 %v181_v37, %v180_v36 }
   0xa   :  { %1606 = vmatpush3.bf16.msra.mxu0 %v1605_v22  ;;  %v1641_v39 = vpack.c.bf16 %v195_v34, %v194_v33  ;;  %v213_v41 = vld [vmem:[%s2849_s1 + $0x1b8] sm:$0xff]  ;;  %v164_v42 = vld [vmem:[%s2849_s1 + $0x30] sm:$0xff]  ;;  %v182_v47 = vld [vmem:[%s2849_s1 + $0xc0] sm:$0xff] }
   0xb   :  { %1638 = vmatpush3.bf16.msra.mxu1 %v1637_v26  ;;  %1608 = vmatprep.subr.bf16.mxu0 %v1607_v27  ;;  %v165_v43 = vld [vmem:[%s2849_s1 + $0x38] sm:$0xff]  ;;  %v1643_v44 = vpack.c.bf16 %v213_v41, %v212_v38  ;;  %v196_v45 = vld [vmem:[%s2849_s1 + $0x130] sm:$0xff]  ;;  %v183_v48 = vld [vmem:[%s2849_s1 + $0xc8] sm:$0xff] }
   0xc   :  { %1640 = vmatprep.subr.bf16.mxu1 %v1639_v31  ;;  %v197_v46 = vld [vmem:[%s2849_s1 + $0x138] sm:$0xff]  ;;  %v214_v49 = vld [vmem:[%s2849_s1 + $0x1c0] sm:$0xff]  ;;  %v215_v50 = vld [vmem:[%s2849_s1 + $0x1c8] sm:$0xff]  ;;  %v1613_v51 = vpack.c.bf16 %v165_v43, %v164_v42  ;;  %v1615_v53 = vpack.c.bf16 %v183_v48, %v182_v47 }
   0xd   :  { %v1645_v52 = vpack.c.bf16 %v197_v46, %v196_v45  ;;  %v166_v54 = vld [vmem:[%s2849_s1 + $0x40] sm:$0xff]  ;;  %v167_v55 = vld [vmem:[%s2849_s1 + $0x48] sm:$0xff]  ;;  %v1647_v57 = vpack.c.bf16 %v215_v50, %v214_v49  ;;  %v184_v59 = vld [vmem:[%s2849_s1 + $0xd0] sm:$0xff] }
   0xe   :  { %1610 = vmatpush3.bf16.msra.mxu0 %v1609_v35  ;;  %v198_v56 = vld [vmem:[%s2849_s1 + $0x140] sm:$0xff]  ;;  %v199_v58 = vld [vmem:[%s2849_s1 + $0x148] sm:$0xff]  ;;  %v185_v60 = vld [vmem:[%s2849_s1 + $0xd8] sm:$0xff]  ;;  %v1617_v63 = vpack.c.bf16 %v167_v55, %v166_v54 }
   0xf   :  { %1642 = vmatpush3.bf16.msra.mxu1 %v1641_v39  ;;  %1612 = vmatprep.subr.bf16.mxu0 %v1611_v40  ;;  %v216_v61 = vld [vmem:[%s2849_s1 + $0x1d0] sm:$0xff]  ;;  %v217_v62 = vld [vmem:[%s2849_s1 + $0x1d8] sm:$0xff]  ;;  %v1649_v0 = vpack.c.bf16 %v199_v58, %v198_v56  ;;  %v1619_v1 = vpack.c.bf16 %v185_v60, %v184_v59  ;;  %v186_v7 = vld [vmem:[%s2849_s1 + $0xe0] sm:$0xff] }
  0x10   :  { %1644 = vmatprep.subr.bf16.mxu1 %v1643_v44  ;;  %v168_v2 = vld [vmem:[%s2849_s1 + $0x50] sm:$0xff]  ;;  %v169_v3 = vld [vmem:[%s2849_s1 + $0x58] sm:$0xff]  ;;  %v1651_v5 = vpack.c.bf16 %v217_v62, %v216_v61  ;;  %v187_v8 = vld [vmem:[%s2849_s1 + $0xe8] sm:$0xff] }
  0x11   :  { %v200_v4 = vld [vmem:[%s2849_s1 + $0x150] sm:$0xff]  ;;  %v201_v6 = vld [vmem:[%s2849_s1 + $0x158] sm:$0xff]  ;;  %v218_v9 = vld [vmem:[%s2849_s1 + $0x1e0] sm:$0xff]  ;;  %v1621_v11 = vpack.c.bf16 %v169_v3, %v168_v2  ;;  %v1623_v15 = vpack.c.bf16 %v187_v8, %v186_v7 }
  0x12   :  { %1614 = vmatpush3.bf16.msra.mxu0 %v1613_v51  ;;  %v219_v10 = vld [vmem:[%s2849_s1 + $0x1e8] sm:$0xff]  ;;  %v170_v12 = vld [vmem:[%s2849_s1 + $0x60] sm:$0xff]  ;;  %v1653_v14 = vpack.c.bf16 %v201_v6, %v200_v4  ;;  %v17_v18 = vld [vmem:[%s2850_s0 + $0x18] sm:$0xff] }
  0x13   :  { %1646 = vmatpush3.bf16.msra.mxu1 %v1645_v52  ;;  %1616 = vmatprep.subr.bf16.mxu0 %v1615_v53  ;;  %v171_v13 = vld [vmem:[%s2849_s1 + $0x68] sm:$0xff]  ;;  %v202_v16 = vld [vmem:[%s2849_s1 + $0x160] sm:$0xff]  ;;  %v1655_v19 = vpack.c.bf16 %v219_v10, %v218_v9  ;;  %v188_v21 = vld [vmem:[%s2849_s1 + $0xf0] sm:$0xff] }
  0x14   :  { %1648 = vmatprep.subr.bf16.mxu1 %v1647_v57  ;;  %v15_v17 = vld [vmem:[%s2850_s0 + $0x8] sm:$0xff]  ;;  %v189_v22 = vld [vmem:[%s2849_s1 + $0xf8] sm:$0xff]  ;;  %v220_v23 = vld [vmem:[%s2849_s1 + $0x1f0] sm:$0xff]  ;;  %607 = vmatprep.mubr.f32.mxu1 %v17_v18  ;;  %v1625_v25 = vpack.c.bf16 %v171_v13, %v170_v12 }
  0x15   :  { %v203_v20 = vld [vmem:[%s2849_s1 + $0x168] sm:$0xff]  ;;  %462 = vmatprep.mubr.f32.mxu0 %v15_v17  ;;  %v221_v24 = vld [vmem:[%s2849_s1 + $0x1f8] sm:$0xff]  ;;  %v1627_v27 = vpack.c.bf16 %v189_v22, %v188_v21  ;;  %v172_v28 = vld [vmem:[%s2849_s1 + $0x70] sm:$0xff] }
  0x16   :  { %1618 = vmatpush3.bf16.msra.mxu0 %v1617_v63  ;;  %v1657_v26 = vpack.c.bf16 %v203_v20, %v202_v16  ;;  %v173_v29 = vld [vmem:[%s2849_s1 + $0x78] sm:$0xff]  ;;  %v204_v30 = vld [vmem:[%s2849_s1 + $0x170] sm:$0xff]  ;;  %v1659_v31 = vpack.c.bf16 %v221_v24, %v220_v23  ;;  %v238_v33 = vld [vmem:[%s2849_s1 + $0x280] sm:$0xff] }
  0x17   :  { %1650 = vmatpush3.bf16.msra.mxu1 %v1649_v0  ;;  %1620 = vmatprep.subr.bf16.mxu0 %v1619_v1  ;;  %v205_v32 = vld [vmem:[%s2849_s1 + $0x178] sm:$0xff]  ;;  %v239_v34 = vld [vmem:[%s2849_s1 + $0x288] sm:$0xff]  ;;  %v270_v35 = vld [vmem:[%s2849_s1 + $0x380] sm:$0xff]  ;;  %v1629_v37 = vpack.c.bf16 %v173_v29, %v172_v28 }
  0x18   :  { %1652 = vmatprep.subr.bf16.mxu1 %v1651_v5  ;;  %v271_v36 = vld [vmem:[%s2849_s1 + $0x388] sm:$0xff]  ;;  %v1661_v38 = vpack.c.bf16 %v205_v32, %v204_v30  ;;  %v1663_v39 = vpack.c.bf16 %v239_v34, %v238_v33  ;;  %v222_v40 = vld [vmem:[%s2849_s1 + $0x200] sm:$0xff]  ;;  %v240_v45 = vld [vmem:[%s2849_s1 + $0x290] sm:$0xff] }
  0x19   :  { %v223_v41 = vld [vmem:[%s2849_s1 + $0x208] sm:$0xff]  ;;  %v1695_v42 = vpack.c.bf16 %v271_v36, %v270_v35  ;;  %v254_v43 = vld [vmem:[%s2849_s1 + $0x300] sm:$0xff]  ;;  %v241_v46 = vld [vmem:[%s2849_s1 + $0x298] sm:$0xff] }
  0x1a   :  { %1622 = vmatpush3.bf16.msra.mxu0 %v1621_v11  ;;  %v255_v44 = vld [vmem:[%s2849_s1 + $0x308] sm:$0xff]  ;;  %v14_v47 = vld [vmem:[%s2850_s0] sm:$0xff]  ;;  %v1665_v48 = vpack.c.bf16 %v223_v41, %v222_v40  ;;  %v272_v49 = vld [vmem:[%s2849_s1 + $0x390] sm:$0xff]  ;;  %v1667_v55 = vpack.c.bf16 %v241_v46, %v240_v45 }
  0x1b   :  { %1654 = vmatpush3.bf16.msra.mxu1 %v1653_v14  ;;  %1624 = vmatprep.subr.bf16.mxu0 %v1623_v15  ;;  %v273_v50 = vld [vmem:[%s2849_s1 + $0x398] sm:$0xff]  ;;  %v16_v51 = vld [vmem:[%s2850_s0 + $0x10] sm:$0xff]  ;;  %v1697_v52 = vpack.c.bf16 %v255_v44, %v254_v43  ;;  %v26_v54 = vld [vmem:[%s2850_s0 + $0x60] sm:$0xff] }
  0x1c   :  { %1656 = vmatprep.subr.bf16.mxu1 %v1655_v19  ;;  %v24_v53 = vld [vmem:[%s2850_s0 + $0x50] sm:$0xff]  ;;  %v225_v57 = vld [vmem:[%s2849_s1 + $0x218] sm:$0xff]  ;;  %v1699_v59 = vpack.c.bf16 %v273_v50, %v272_v49  ;;  %v242_v61 = vld [vmem:[%s2849_s1 + $0x2a0] sm:$0xff] }
  0x1d   :  { %v224_v56 = vld [vmem:[%s2849_s1 + $0x210] sm:$0xff]  ;;  %v257_v60 = vld [vmem:[%s2849_s1 + $0x318] sm:$0xff]  ;;  %v243_v62 = vld [vmem:[%s2849_s1 + $0x2a8] sm:$0xff] }
  0x1e   :  { %1626 = vmatpush3.bf16.msra.mxu0 %v1625_v25  ;;  %v256_v58 = vld [vmem:[%s2849_s1 + $0x310] sm:$0xff]  ;;  %v23_v63 = vld [vmem:[%s2850_s0 + $0x48] sm:$0xff]  ;;  %v274_v0 = vld [vmem:[%s2849_s1 + $0x3a0] sm:$0xff]  ;;  %v1669_v5 = vpack.c.bf16 %v225_v57, %v224_v56  ;;  %v1671_v7 = vpack.c.bf16 %v243_v62, %v242_v61 }
  0x1f   :  { %1658 = vmatpush3.bf16.msra.mxu1 %v1657_v26  ;;  %1628 = vmatprep.subr.bf16.mxu0 %v1627_v27  ;;  %v275_v1 = vld [vmem:[%s2849_s1 + $0x3a8] sm:$0xff]  ;;  %v25_v2 = vld [vmem:[%s2850_s0 + $0x58] sm:$0xff]  ;;  %v1701_v6 = vpack.c.bf16 %v257_v60, %v256_v58  ;;  %v226_v8 = vld [vmem:[%s2849_s1 + $0x220] sm:$0xff] }
  0x20   :  { %1660 = vmatprep.subr.bf16.mxu1 %v1659_v31  ;;  %v33_v3 = vld [vmem:[%s2850_s0 + $0x98] sm:$0xff]  ;;  %v35_v4 = vld [vmem:[%s2850_s0 + $0xa8] sm:$0xff]  ;;  %v258_v10 = vld [vmem:[%s2849_s1 + $0x320] sm:$0xff]  ;;  %v1703_v11 = vpack.c.bf16 %v275_v1, %v274_v0 }
  0x21   :  { %v227_v9 = vld [vmem:[%s2849_s1 + $0x228] sm:$0xff]  ;;  %v244_v13 = vld [vmem:[%s2849_s1 + $0x2b0] sm:$0xff]  ;;  %v245_v14 = vld [vmem:[%s2849_s1 + $0x2b8] sm:$0xff] }
  0x22   :  { %1630 = vmatpush3.bf16.msra.mxu0 %v1629_v37  ;;  %v259_v12 = vld [vmem:[%s2849_s1 + $0x328] sm:$0xff]  ;;  %v32_v15 = vld [vmem:[%s2850_s0 + $0x90] sm:$0xff]  ;;  %v277_v17 = vld [vmem:[%s2849_s1 + $0x3b8] sm:$0xff]  ;;  %v1673_v20 = vpack.c.bf16 %v227_v9, %v226_v8  ;;  %v1675_v23 = vpack.c.bf16 %v245_v14, %v244_v13 }
  0x23   :  { %1662 = vmatpush3.bf16.msra.mxu1 %v1661_v38  ;;  %1664 = vmatprep.subr.bf16.mxu0 %v1663_v39  ;;  %v276_v16 = vld [vmem:[%s2849_s1 + $0x3b0] sm:$0xff]  ;;  %v34_v18 = vld [vmem:[%s2850_s0 + $0xa0] sm:$0xff]  ;;  %v1705_v22 = vpack.c.bf16 %v259_v12, %v258_v10  ;;  %v229_v25 = vld [vmem:[%s2849_s1 + $0x238] sm:$0xff] }
  0x24   :  { %1696 = vmatprep.subr.bf16.mxu1 %v1695_v42  ;;  %v42_v19 = vld [vmem:[%s2850_s0 + $0xe0] sm:$0xff]  ;;  %v44_v21 = vld [vmem:[%s2850_s0 + $0xf0] sm:$0xff]  ;;  %v41_v26 = vld [vmem:[%s2850_s0 + $0xd8] sm:$0xff]  ;;  %v1707_v27 = vpack.c.bf16 %v277_v17, %v276_v16 }
  0x25   :  { %463 = vmatmul.mubr.f32.vlgmr.msra.gmra.mrb[0].mxu0 %v14_v47  ;;  %v228_v24 = vld [vmem:[%s2849_s1 + $0x230] sm:$0xff]  ;;  %v261_v29 = vld [vmem:[%s2849_s1 + $0x338] sm:$0xff]  ;;  %v246_v30 = vld [vmem:[%s2849_s1 + $0x2c0] sm:$0xff] }
  0x26   :  { %608 = vmatmul.mubr.f32.vlgmr.msra.gmra.mrb[0].mxu1 %v16_v51  ;;  %1666 = vmatpush3.bf16.msra.mxu0 %v1665_v48  ;;  %v260_v28 = vld [vmem:[%s2849_s1 + $0x330] sm:$0xff]  ;;  %v247_v31 = vld [vmem:[%s2849_s1 + $0x2c8] sm:$0xff]  ;;  %v278_v32 = vld [vmem:[%s2849_s1 + $0x3c0] sm:$0xff]  ;;  %v1677_v35 = vpack.c.bf16 %v229_v25, %v228_v24 }
  0x27   :  { %1698 = vmatpush3.bf16.msra.mxu1 %v1697_v52  ;;  %467 = vmatprep.mubr.f32.mxu0 %v24_v53  ;;  %v43_v33 = vld [vmem:[%s2850_s0 + $0xe8] sm:$0xff]  ;;  %v53_v37 = vld [vmem:[%s2850_s0 + $0x138] sm:$0xff]  ;;  %v1709_v38 = vpack.c.bf16 %v261_v29, %v260_v28  ;;  %v1679_v39 = vpack.c.bf16 %v247_v31, %v246_v30  ;;  %v230_v40 = vld [vmem:[%s2849_s1 + $0x240] sm:$0xff] }
  0x28   :  { %612 = vmatprep.mubr.f32.mxu1 %v26_v54  ;;  %1668 = vmatprep.subr.bf16.mxu0 %v1667_v55  ;;  %v51_v34 = vld [vmem:[%s2850_s0 + $0x128] sm:$0xff]  ;;  %v262_v43 = vld [vmem:[%s2849_s1 + $0x340] sm:$0xff]  ;;  %v52_v46 = vld [vmem:[%s2850_s0 + $0x130] sm:$0xff] }
  0x29   :  { %468 = vmatmul.mubr.f32.gmra.mrb[2].mxu0 %v23_v63  ;;  %1700 = vmatprep.subr.bf16.mxu1 %v1699_v59  ;;  %v279_v36 = vld [vmem:[%s2849_s1 + $0x3c8] sm:$0xff]  ;;  %v50_v45 = vld [vmem:[%s2850_s0 + $0x120] sm:$0xff]  ;;  %v60_v47 = vld [vmem:[%s2850_s0 + $0x170] sm:$0xff] }
  0x2a   :  { %613 = vmatmul.mubr.f32.gmra.mrb[2].mxu1 %v25_v2  ;;  %472 = vmatprep.mubr.f32.mxu0 %v33_v3  ;;  %v231_v41 = vld [vmem:[%s2849_s1 + $0x248] sm:$0xff]  ;;  %v1711_v42 = vpack.c.bf16 %v279_v36, %v278_v32  ;;  %v62_v48 = vld [vmem:[%s2850_s0 + $0x180] sm:$0xff]  ;;  %v248_v50 = vld [vmem:[%s2849_s1 + $0x2d0] sm:$0xff] }
  0x2b   :  { %617 = vmatprep.mubr.f32.mxu1 %v35_v4  ;;  %1670 = vmatpush3.bf16.msra.mxu0 %v1669_v5  ;;  %v263_v44 = vld [vmem:[%s2849_s1 + $0x348] sm:$0xff]  ;;  %v1681_v49 = vpack.c.bf16 %v231_v41, %v230_v40  ;;  %v249_v51 = vld [vmem:[%s2849_s1 + $0x2d8] sm:$0xff]  ;;  %v280_v54 = vld [vmem:[%s2849_s1 + $0x3d0] sm:$0xff] }
  0x2c   :  { %1702 = vmatpush3.bf16.msra.mxu1 %v1701_v6  ;;  %1672 = vmatprep.subr.bf16.mxu0 %v1671_v7  ;;  %v1713_v52 = vpack.c.bf16 %v263_v44, %v262_v43  ;;  %v1683_v53 = vpack.c.bf16 %v249_v51, %v248_v50  ;;  %v281_v55 = vld [vmem:[%s2849_s1 + $0x3d8] sm:$0xff]  ;;  %v232_v56 = vld [vmem:[%s2849_s1 + $0x250] sm:$0xff]  ;;  %v59_v61 = vld [vmem:[%s2850_s0 + $0x168] sm:$0xff] }
  0x2d   :  { %473 = vmatmul.mubr.f32.gmra.mrb[4].mxu0 %v32_v15  ;;  %1704 = vmatprep.subr.bf16.mxu1 %v1703_v11  ;;  %v1715_v57 = vpack.c.bf16 %v281_v55, %v280_v54  ;;  %v233_v58 = vld [vmem:[%s2849_s1 + $0x258] sm:$0xff]  ;;  %v264_v59 = vld [vmem:[%s2849_s1 + $0x350] sm:$0xff]  ;;  %v71_v1 = vld [vmem:[%s2850_s0 + $0x1c8] sm:$0xff] }
  0x2e   :  { %618 = vmatmul.mubr.f32.gmra.mrb[4].mxu1 %v34_v18  ;;  %477 = vmatprep.mubr.f32.mxu0 %v42_v19  ;;  %v265_v60 = vld [vmem:[%s2849_s1 + $0x358] sm:$0xff]  ;;  %v1685_v0 = vpack.c.bf16 %v233_v58, %v232_v56  ;;  %v68_v2 = vld [vmem:[%s2850_s0 + $0x1b0] sm:$0xff]  ;;  %v250_v4 = vld [vmem:[%s2849_s1 + $0x2e0] sm:$0xff] }
  0x2f   :  { %622 = vmatprep.mubr.f32.mxu1 %v44_v21  ;;  %1674 = vmatpush3.bf16.msra.mxu0 %v1673_v20  ;;  %v61_v62 = vld [vmem:[%s2850_s0 + $0x178] sm:$0xff]  ;;  %v1717_v3 = vpack.c.bf16 %v265_v60, %v264_v59  ;;  %v251_v5 = vld [vmem:[%s2849_s1 + $0x2e8] sm:$0xff]  ;;  %v282_v6 = vld [vmem:[%s2849_s1 + $0x3e0] sm:$0xff] }
  0x30   :  { %1706 = vmatpush3.bf16.msra.mxu1 %v1705_v22  ;;  %1676 = vmatprep.subr.bf16.mxu0 %v1675_v23  ;;  %v69_v63 = vld [vmem:[%s2850_s0 + $0x1b8] sm:$0xff]  ;;  %v283_v7 = vld [vmem:[%s2849_s1 + $0x3e8] sm:$0xff]  ;;  %v1687_v8 = vpack.c.bf16 %v251_v5, %v250_v4  ;;  %v234_v10 = vld [vmem:[%s2849_s1 + $0x260] sm:$0xff] }
  0x31   :  { %478 = vmatmul.mubr.f32.gmra.mrb[6].mxu0 %v41_v26  ;;  %1708 = vmatprep.subr.bf16.mxu1 %v1707_v27  ;;  %v1719_v9 = vpack.c.bf16 %v283_v7, %v282_v6  ;;  %v235_v11 = vld [vmem:[%s2849_s1 + $0x268] sm:$0xff]  ;;  %v266_v12 = vld [vmem:[%s2849_s1 + $0x360] sm:$0xff]  ;;  %v80_v17 = vld [vmem:[%s2850_s0 + $0x210] sm:$0xff] }
  0x32   :  { %623 = vmatmul.mubr.f32.gmra.mrb[6].mxu1 %v43_v33  ;;  %482 = vmatprep.mubr.f32.mxu0 %v51_v34  ;;  %v70_v13 = vld [vmem:[%s2850_s0 + $0x1c0] sm:$0xff]  ;;  %v1689_v15 = vpack.c.bf16 %v235_v11, %v234_v10  ;;  %v267_v16 = vld [vmem:[%s2849_s1 + $0x368] sm:$0xff]  ;;  %v77_v19 = vld [vmem:[%s2850_s0 + $0x1f8] sm:$0xff] }
  0x33   :  { %627 = vmatprep.mubr.f32.mxu1 %v53_v37  ;;  %1678 = vmatpush3.bf16.msra.mxu0 %v1677_v35  ;;  %v78_v14 = vld [vmem:[%s2850_s0 + $0x200] sm:$0xff]  ;;  %v1721_v18 = vpack.c.bf16 %v267_v16, %v266_v12  ;;  %v79_v20 = vld [vmem:[%s2850_s0 + $0x208] sm:$0xff]  ;;  %v252_v22 = vld [vmem:[%s2849_s1 + $0x2f0] sm:$0xff] }
  0x34   :  { %1710 = vmatpush3.bf16.msra.mxu1 %v1709_v38  ;;  %1680 = vmatprep.subr.bf16.mxu0 %v1679_v39  ;;  %v87_v21 = vld [vmem:[%s2850_s0 + $0x248] sm:$0xff]  ;;  %v253_v23 = vld [vmem:[%s2849_s1 + $0x2f8] sm:$0xff]  ;;  %v284_v24 = vld [vmem:[%s2849_s1 + $0x3f0] sm:$0xff] }
  0x35   :  { %483 = vmatmul.mubr.f32.gmra.mrb[8].mxu0 %v50_v45  ;;  %1712 = vmatprep.subr.bf16.mxu1 %v1711_v42  ;;  %v1691_v25 = vpack.c.bf16 %v253_v23, %v252_v22  ;;  %v285_v26 = vld [vmem:[%s2849_s1 + $0x3f8] sm:$0xff]  ;;  %v236_v27 = vld [vmem:[%s2849_s1 + $0x270] sm:$0xff]  ;;  %v86_v35 = vld [vmem:[%s2850_s0 + $0x240] sm:$0xff] }
  0x36   :  { %628 = vmatmul.mubr.f32.gmra.mrb[8].mxu1 %v52_v46  ;;  %487 = vmatprep.mubr.f32.mxu0 %v60_v47  ;;  %v237_v28 = vld [vmem:[%s2849_s1 + $0x278] sm:$0xff]  ;;  %v1723_v30 = vpack.c.bf16 %v285_v26, %v284_v24  ;;  %v268_v32 = vld [vmem:[%s2849_s1 + $0x370] sm:$0xff]  ;;  %v286_v38 = vld [vmem:[%s2849_s1 + $0x400] sm:$0xff] }
  0x37   :  { %632 = vmatprep.mubr.f32.mxu1 %v62_v48  ;;  %1682 = vmatpush3.bf16.msra.mxu0 %v1681_v49  ;;  %v89_v29 = vld [vmem:[%s2850_s0 + $0x258] sm:$0xff]  ;;  %v1693_v31 = vpack.c.bf16 %v237_v28, %v236_v27  ;;  %v88_v36 = vld [vmem:[%s2850_s0 + $0x250] sm:$0xff]  ;;  %v287_v39 = vld [vmem:[%s2849_s1 + $0x408] sm:$0xff] }
  0x38   :  { %1714 = vmatpush3.bf16.msra.mxu1 %v1713_v52  ;;  %1684 = vmatprep.subr.bf16.mxu0 %v1683_v53  ;;  %v269_v33 = vld [vmem:[%s2849_s1 + $0x378] sm:$0xff]  ;;  %v96_v37 = vld [vmem:[%s2850_s0 + $0x290] sm:$0xff]  ;;  %v98_v40 = vld [vmem:[%s2850_s0 + $0x2a0] sm:$0xff]  ;;  %v2303_v41 = vpack.c.bf16 %v287_v39, %v286_v38 }
  0x39   :  { %488 = vmatmul.mubr.f32.gmra.mrb[10].mxu0 %v59_v61  ;;  %1716 = vmatprep.subr.bf16.mxu1 %v1715_v57  ;;  %v1725_v34 = vpack.c.bf16 %v269_v33, %v268_v32  ;;  %v95_v42 = vld [vmem:[%s2850_s0 + $0x288] sm:$0xff]  ;;  %v97_v43 = vld [vmem:[%s2850_s0 + $0x298] sm:$0xff]  ;;  %v104_v46 = vld [vmem:[%s2850_s0 + $0x2d0] sm:$0xff] }
  0x3a   :  { %633 = vmatmul.mubr.f32.gmra.mrb[10].mxu1 %v61_v62  ;;  %492 = vmatprep.mubr.f32.mxu0 %v69_v63  ;;  %v105_v44 = vld [vmem:[%s2850_s0 + $0x2d8] sm:$0xff]  ;;  %v107_v45 = vld [vmem:[%s2850_s0 + $0x2e8] sm:$0xff]  ;;  %v106_v47 = vld [vmem:[%s2850_s0 + $0x2e0] sm:$0xff] }
  0x3b   :  { %637 = vmatprep.mubr.f32.mxu1 %v71_v1  ;;  %1686 = vmatpush3.bf16.msra.mxu0 %v1685_v0  ;;  %v114_v48 = vld [vmem:[%s2850_s0 + $0x320] sm:$0xff]  ;;  %v116_v49 = vld [vmem:[%s2850_s0 + $0x330] sm:$0xff]  ;;  %v113_v51 = vld [vmem:[%s2850_s0 + $0x318] sm:$0xff] }
  0x3c   :  { %1718 = vmatpush3.bf16.msra.mxu1 %v1717_v3  ;;  %1688 = vmatprep.subr.bf16.mxu0 %v1687_v8  ;;  %v302_v50 = vld [vmem:[%s2851_s2] sm:$0xff]  ;;  %v303_v52 = vld [vmem:[%s2851_s2 + $0x8] sm:$0xff]  ;;  %v125_v55 = vld [vmem:[%s2850_s0 + $0x378] sm:$0xff] }
  0x3d   :  { %493 = vmatmul.mubr.f32.gmra.mrb[12].mxu0 %v68_v2  ;;  %1720 = vmatprep.subr.bf16.mxu1 %v1719_v9  ;;  %v115_v53 = vld [vmem:[%s2850_s0 + $0x328] sm:$0xff]  ;;  %v304_v56 = vld [vmem:[%s2851_s2 + $0x10] sm:$0xff]  ;;  %v122_v57 = vld [vmem:[%s2850_s0 + $0x360] sm:$0xff] }
  0x3e   :  { %638 = vmatmul.mubr.f32.gmra.mrb[12].mxu1 %v70_v13  ;;  %497 = vmatprep.mubr.f32.mxu0 %v78_v14  ;;  %v123_v54 = vld [vmem:[%s2850_s0 + $0x368] sm:$0xff]  ;;  %v124_v58 = vld [vmem:[%s2850_s0 + $0x370] sm:$0xff]  ;;  %v134_v60 = vld [vmem:[%s2850_s0 + $0x3c0] sm:$0xff] }
  0x3f   :  { %642 = vmatprep.mubr.f32.mxu1 %v80_v17  ;;  %1690 = vmatpush3.bf16.msra.mxu0 %v1689_v15  ;;  %v132_v59 = vld [vmem:[%s2850_s0 + $0x3b0] sm:$0xff]  ;;  %v305_v61 = vld [vmem:[%s2851_s2 + $0x18] sm:$0xff]  ;;  %v306_v62 = vld [vmem:[%s2851_s2 + $0x20] sm:$0xff] }
  0x40   :  { %1722 = vmatpush3.bf16.msra.mxu1 %v1721_v18  ;;  %1692 = vmatprep.subr.bf16.mxu0 %v1691_v25  ;;  %v131_v63 = vld [vmem:[%s2850_s0 + $0x3a8] sm:$0xff]  ;;  %v133_v0 = vld [vmem:[%s2850_s0 + $0x3b8] sm:$0xff]  ;;  %v308_v4 = vld [vmem:[%s2851_s2 + $0x30] sm:$0xff] }
  0x41   :  { %498 = vmatmul.mubr.f32.gmra.mrb[14].mxu0 %v77_v19  ;;  %1724 = vmatprep.subr.bf16.mxu1 %v1723_v30  ;;  %v141_v1 = vld [vmem:[%s2850_s0 + $0x3f8] sm:$0xff]  ;;  %v143_v2 = vld [vmem:[%s2850_s0 + $0x408] sm:$0xff]  ;;  %v140_v5 = vld [vmem:[%s2850_s0 + $0x3f0] sm:$0xff] }
  0x42   :  { %643 = vmatmul.mubr.f32.gmra.mrb[14].mxu1 %v79_v20  ;;  %502 = vmatprep.mubr.f32.mxu0 %v87_v21  ;;  %v307_v3 = vld [vmem:[%s2851_s2 + $0x28] sm:$0xff]  ;;  %v142_v6 = vld [vmem:[%s2850_s0 + $0x400] sm:$0xff]  ;;  %v152_v8 = vld [vmem:[%s2850_s0 + $0x450] sm:$0xff] }
  0x43   :  { %647 = vmatprep.mubr.f32.mxu1 %v89_v29  ;;  %1694 = vmatpush3.bf16.msra.mxu0 %v1693_v31  ;;  %v150_v7 = vld [vmem:[%s2850_s0 + $0x440] sm:$0xff]  ;;  %v309_v9 = vld [vmem:[%s2851_s2 + $0x38] sm:$0xff]  ;;  %v151_v12 = vld [vmem:[%s2850_s0 + $0x448] sm:$0xff] }
  0x44   :  { %1726 = vmatpush3.bf16.msra.mxu1 %v1725_v34  ;;  %1728 = vmatprep.subr.bf16.mxu0 %v2303_v41  ;;  %v310_v10 = vld [vmem:[%s2851_s2 + $0x40] sm:$0xff]  ;;  %v149_v11 = vld [vmem:[%s2850_s0 + $0x438] sm:$0xff]  ;;  %v19_v13 = vld [vmem:[%s2850_s0 + $0x28] sm:$0xff] }
  0x45   :  { %503 = vmatmul.mubr.f32.gmra.mrb[16].mxu0 %v86_v35  ;;  %1759 = vmatprep.subr.bf16.mxu1 %v2303_v41  ;;  %v21_v14 = vld [vmem:[%s2850_s0 + $0x38] sm:$0xff]  ;;  %v311_v15 = vld [vmem:[%s2851_s2 + $0x48] sm:$0xff]  ;;  %v312_v16 = vld [vmem:[%s2851_s2 + $0x50] sm:$0xff] }
  0x46   :  { %648 = vmatmul.mubr.f32.gmra.mrb[16].mxu1 %v88_v36  ;;  %507 = vmatprep.mubr.f32.mxu0 %v96_v37  ;;  %v288_v17 = vld [vmem:[%s2849_s1 + $0x410] sm:$0xff]  ;;  %v289_v18 = vld [vmem:[%s2849_s1 + $0x418] sm:$0xff]  ;;  %v18_v19 = vld [vmem:[%s2850_s0 + $0x20] sm:$0xff] }
  0x47   :  { %652 = vmatprep.mubr.f32.mxu1 %v98_v40  ;;  %320 = vperm.xlu0 %1776, %v302_v50   ;;  %v20_v20 = vld [vmem:[%s2850_s0 + $0x30] sm:$0xff]  ;;  %v314_v21 = vld [vmem:[%s2851_s2 + $0x60] sm:$0xff]  ;;  %v1731_v23 = vpack.c.bf16 %v289_v18, %v288_v17  ;;  %v291_v26 = vld [vmem:[%s2849_s1 + $0x428] sm:$0xff] }
  0x48   :  { %330 = vperm.xlu1 %1777, %v304_v56   ;;  %v28_v22 = vld [vmem:[%s2850_s0 + $0x70] sm:$0xff]  ;;  %v30_v24 = vld [vmem:[%s2850_s0 + $0x80] sm:$0xff]  ;;  %v27_v27 = vld [vmem:[%s2850_s0 + $0x68] sm:$0xff] }
  0x49   :  { %508 = vmatmul.mubr.f32.gmra.mrb[18].mxu0 %v95_v42  ;;  %v290_v25 = vld [vmem:[%s2849_s1 + $0x420] sm:$0xff]  ;;  %v29_v28 = vld [vmem:[%s2850_s0 + $0x78] sm:$0xff]  ;;  %v39_v30 = vld [vmem:[%s2850_s0 + $0xc8] sm:$0xff] }
  0x4a   :  { %653 = vmatmul.mubr.f32.gmra.mrb[18].mxu1 %v97_v43  ;;  %512 = vmatprep.mubr.f32.mxu0 %v105_v44  ;;  %v37_v29 = vld [vmem:[%s2850_s0 + $0xb8] sm:$0xff]  ;;  %v1735_v31 = vpack.c.bf16 %v291_v26, %v290_v25  ;;  %v292_v32 = vld [vmem:[%s2849_s1 + $0x430] sm:$0xff]  ;;  %v38_v35 = vld [vmem:[%s2850_s0 + $0xc0] sm:$0xff] }
  0x4b   :  { %657 = vmatprep.mubr.f32.mxu1 %v107_v45  ;;  %325 = vperm.xlu0 %1776, %v303_v52   ;;  %v293_v33 = vld [vmem:[%s2849_s1 + $0x438] sm:$0xff]  ;;  %v36_v34 = vld [vmem:[%s2850_s0 + $0xb0] sm:$0xff]  ;;  %v46_v36 = vld [vmem:[%s2850_s0 + $0x100] sm:$0xff] }
  0x4c   :  { %335 = vperm.xlu1 %1777, %v305_v61   ;;  %v48_v37 = vld [vmem:[%s2850_s0 + $0x110] sm:$0xff]  ;;  %v1739_v38 = vpack.c.bf16 %v293_v33, %v292_v32  ;;  %v294_v39 = vld [vmem:[%s2849_s1 + $0x440] sm:$0xff]  ;;  %v295_v40 = vld [vmem:[%s2849_s1 + $0x448] sm:$0xff] }
  0x4d   :  { %513 = vmatmul.mubr.f32.gmra.mrb[20].mxu0 %v104_v46  ;;  %v47_v42 = vld [vmem:[%s2850_s0 + $0x108] sm:$0xff]  ;;  %v57_v44 = vld [vmem:[%s2850_s0 + $0x158] sm:$0xff]  ;;  %v1743_v45 = vpack.c.bf16 %v295_v40, %v294_v39  ;;  %v296_v46 = vld [vmem:[%s2849_s1 + $0x450] sm:$0xff] }
  0x4e   :  { %658 = vmatmul.mubr.f32.gmra.mrb[20].mxu1 %v106_v47  ;;  %517 = vmatprep.mubr.f32.mxu0 %v114_v48  ;;  %v55_v43 = vld [vmem:[%s2850_s0 + $0x148] sm:$0xff]  ;;  %v297_v47 = vld [vmem:[%s2849_s1 + $0x458] sm:$0xff]  ;;  %v54_v48 = vld [vmem:[%s2850_s0 + $0x140] sm:$0xff] }
  0x4f   :  { %662 = vmatprep.mubr.f32.mxu1 %v116_v49  ;;  %340 = vperm.xlu0 %1776, %v306_v62   ;;  %v56_v49 = vld [vmem:[%s2850_s0 + $0x150] sm:$0xff]  ;;  %v1747_v52 = vpack.c.bf16 %v297_v47, %v296_v46  ;;  %v65_v56 = vld [vmem:[%s2850_s0 + $0x198] sm:$0xff]  ;;  %v111_v17 = vld [vmem:[%s2850_s0 + $0x308] sm:$0xff] }
  0x50   :  { %345 = vperm.xlu1 %1777, %v307_v3   ;;  %v64_v50 = vld [vmem:[%s2850_s0 + $0x190] sm:$0xff]  ;;  %v301_v61 = vld [vmem:[%s2849_s1 + $0x478] sm:$0xff]  ;;  %v127_v25 = vld [vmem:[%s2850_s0 + $0x388] sm:$0xff] }
  0x51   :  { %518 = vmatmul.mubr.f32.gmra.mrb[22].mxu0 %v113_v51  ;;  %v66_v51 = vld [vmem:[%s2850_s0 + $0x1a0] sm:$0xff]  ;;  %v72_v62 = vld [vmem:[%s2850_s0 + $0x1d0] sm:$0xff]  ;;  %v81_v3 = vld [vmem:[%s2850_s0 + $0x218] sm:$0xff] }
  0x52   :  { %663 = vmatmul.mubr.f32.gmra.mrb[22].mxu1 %v115_v53  ;;  %522 = vmatprep.mubr.f32.mxu0 %v123_v54  ;;  %v298_v53 = vld [vmem:[%s2849_s1 + $0x460] sm:$0xff]  ;;  %v299_v54 = vld [vmem:[%s2849_s1 + $0x468] sm:$0xff]  ;;  %v317_v18 = vld [vmem:[%s2851_s2 + $0x78] sm:$0xff] }
  0x53   :  { %667 = vmatprep.mubr.f32.mxu1 %v125_v55  ;;  %350 = vperm.xlu0 %1776, %v308_v4   ;;  %v63_v55 = vld [vmem:[%s2850_s0 + $0x188] sm:$0xff]  ;;  %v129_v26 = vld [vmem:[%s2850_s0 + $0x398] sm:$0xff]  ;;  %v112_v46 = vld [vmem:[%s2850_s0 + $0x310] sm:$0xff] }
  0x54   :  { %355 = vperm.xlu1 %1777, %v309_v9   ;;  %v83_v4 = vld [vmem:[%s2850_s0 + $0x228] sm:$0xff]  ;;  %v316_v9 = vld [vmem:[%s2851_s2 + $0x70] sm:$0xff]  ;;  %v137_v32 = vld [vmem:[%s2850_s0 + $0x3d8] sm:$0xff] }
  0x55   :  { %523 = vmatmul.mubr.f32.gmra.mrb[24].mxu0 %v122_v57  ;;  %v73_v57 = vld [vmem:[%s2850_s0 + $0x1d8] sm:$0xff]  ;;  %v155_v40 = vld [vmem:[%s2850_s0 + $0x468] sm:$0xff] }
  0x56   :  { %668 = vmatmul.mubr.f32.gmra.mrb[24].mxu1 %v124_v58  ;;  %527 = vmatprep.mubr.f32.mxu0 %v132_v59  ;;  %v75_v58 = vld [vmem:[%s2850_s0 + $0x1e8] sm:$0xff]  ;;  %v1751_v59 = vpack.c.bf16 %v299_v54, %v298_v53  ;;  %v145_v33 = vld [vmem:[%s2850_s0 + $0x418] sm:$0xff]  ;;  %v76_v53 = vld [vmem:[%s2850_s0 + $0x1f0] sm:$0xff] }
  0x57   :  { %672 = vmatprep.mubr.f32.mxu1 %v134_v60  ;;  %360 = vperm.xlu0 %1776, %v310_v10   ;;  %v300_v60 = vld [vmem:[%s2849_s1 + $0x470] sm:$0xff]  ;;  %v153_v39 = vld [vmem:[%s2850_s0 + $0x458] sm:$0xff] }
  0x58   :  { %365 = vperm.xlu1 %1777, %v311_v15   ;;  %v92_v10 = vld [vmem:[%s2850_s0 + $0x270] sm:$0xff]  ;;  %v101_v15 = vld [vmem:[%s2850_s0 + $0x2b8] sm:$0xff] }
  0x59   :  { %528 = vmatmul.mubr.f32.gmra.mrb[26].mxu0 %v131_v63  ;;  %v74_v63 = vld [vmem:[%s2850_s0 + $0x1e0] sm:$0xff]  ;;  %v49_v47 = vld [vmem:[%s2850_s0 + $0x118] sm:$0xff]  ;;  %v148_v54 = vld [vmem:[%s2850_s0 + $0x430] sm:$0xff] }
  0x5a   :  { %673 = vmatmul.mubr.f32.gmra.mrb[26].mxu1 %v133_v0  ;;  %532 = vmatprep.mubr.f32.mxu0 %v141_v1  ;;  %v82_v0 = vld [vmem:[%s2850_s0 + $0x220] sm:$0xff]  ;;  %v84_v1 = vld [vmem:[%s2850_s0 + $0x230] sm:$0xff] }
  0x5b   :  { %677 = vmatprep.mubr.f32.mxu1 %v143_v2  ;;  %370 = vperm.xlu0 %1776, %v312_v16   ;;  %v1755_v2 = vpack.c.bf16 %v301_v61, %v300_v60  ;;  %v109_v16 = vld [vmem:[%s2850_s0 + $0x2f8] sm:$0xff] }
  0x5d   :  { %533 = vmatmul.mubr.f32.gmra.mrb[28].mxu0 %v140_v5  ;;  %v91_v5 = vld [vmem:[%s2850_s0 + $0x268] sm:$0xff] }
  0x5e   :  { %678 = vmatmul.mubr.f32.gmra.mrb[28].mxu1 %v142_v6  ;;  %537 = vmatprep.mubr.f32.mxu0 %v150_v7  ;;  %v93_v6 = vld [vmem:[%s2850_s0 + $0x278] sm:$0xff] }
  0x5f   :  { %682 = vmatprep.mubr.f32.mxu1 %v152_v8  ;;  %380 = vperm.xlu0 %1776, %v314_v21   ;;  %v313_v7 = vld [vmem:[%s2851_s2 + $0x58] sm:$0xff]  ;;  %v90_v8 = vld [vmem:[%s2850_s0 + $0x260] sm:$0xff] }
  0x60   :  { %375 = vperm.xlu1 %1777, %v313_v7   ;;  %v118_v21 = vld [vmem:[%s2850_s0 + $0x340] sm:$0xff] }
  0x61   :  { %538 = vmatmul.mubr.f32.gmra.mrb[30].mxu0 %v149_v11  ;;  %v100_v11 = vld [vmem:[%s2850_s0 + $0x2b0] sm:$0xff] }
  0x62   :  { %683 = vmatmul.mubr.f32.gmra.mrb[30].mxu1 %v151_v12  ;;  %752 = vmatprep.mubr.f32.mxu0 %v19_v13  ;;  %v102_v12 = vld [vmem:[%s2850_s0 + $0x2c0] sm:$0xff]  ;;  %v315_v13 = vld [vmem:[%s2851_s2 + $0x68] sm:$0xff] }
  0x63   :  { %897 = vmatprep.mubr.f32.mxu1 %v21_v14  ;;  %390 = vperm.xlu0 %1776, %v316_v9   ;;  %v99_v14 = vld [vmem:[%s2850_s0 + $0x2a8] sm:$0xff] }
  0x64   :  { %385 = vperm.xlu1 %1777, %v315_v13  }
  0x65   :  { %753 = vmatmul.mubr.f32.vlgmr.msra.gmra.mrb[32].mxu0 %v18_v19  ;;  %v108_v19 = vld [vmem:[%s2850_s0 + $0x2f0] sm:$0xff] }
  0x66   :  { %898 = vmatmul.mubr.f32.vlgmr.msra.gmra.mrb[32].mxu1 %v20_v20  ;;  %1730 = vmatpush3.bf16.msra.mxu0 %v2303_v41  ;;  %v110_v20 = vld [vmem:[%s2850_s0 + $0x300] sm:$0xff] }
  0x67   :  { %1767 = vmatpush3.bf16.msra.mxu1 %v2303_v41  ;;  %757 = vmatprep.mubr.f32.mxu0 %v28_v22  ;;  %v45_v41 = vld [vmem:[%s2850_s0 + $0xf8] sm:$0xff]  ;;  %v120_v22 = vld [vmem:[%s2850_s0 + $0x350] sm:$0xff] }
  0x68   :  { %902 = vmatprep.mubr.f32.mxu1 %v30_v24  ;;  %1732 = vmatprep.subr.bf16.mxu0 %v1731_v23  ;;  %v119_v24 = vld [vmem:[%s2850_s0 + $0x348] sm:$0xff] }
  0x69   :  { %758 = vmatmul.mubr.f32.gmra.mrb[34].mxu0 %v27_v27  ;;  %1760 = vmatprep.subr.bf16.mxu1 %v1731_v23  ;;  %v126_v27 = vld [vmem:[%s2850_s0 + $0x380] sm:$0xff] }
  0x6a   :  { %903 = vmatmul.mubr.f32.gmra.mrb[34].mxu1 %v29_v28  ;;  %762 = vmatprep.mubr.f32.mxu0 %v37_v29  ;;  %v128_v28 = vld [vmem:[%s2850_s0 + $0x390] sm:$0xff] }
  0x6b   :  { %907 = vmatprep.mubr.f32.mxu1 %v39_v30  ;;  %1734 = vmatpush3.bf16.msra.mxu0 %v1731_v23  ;;  %v136_v29 = vld [vmem:[%s2850_s0 + $0x3d0] sm:$0xff]  ;;  %v138_v30 = vld [vmem:[%s2850_s0 + $0x3e0] sm:$0xff] }
  0x6c   :  { %1768 = vmatpush3.bf16.msra.mxu1 %v1731_v23  ;;  %1736 = vmatprep.subr.bf16.mxu0 %v1735_v31  ;;  %v117_v23 = vld [vmem:[%s2850_s0 + $0x338] sm:$0xff] }
  0x6d   :  { %763 = vmatmul.mubr.f32.gmra.mrb[36].mxu0 %v36_v34  ;;  %1761 = vmatprep.subr.bf16.mxu1 %v1735_v31  ;;  %v147_v34 = vld [vmem:[%s2850_s0 + $0x428] sm:$0xff] }
  0x6e   :  { %908 = vmatmul.mubr.f32.gmra.mrb[36].mxu1 %v38_v35  ;;  %767 = vmatprep.mubr.f32.mxu0 %v46_v36  ;;  %v144_v35 = vld [vmem:[%s2850_s0 + $0x410] sm:$0xff]  ;;  %v146_v36 = vld [vmem:[%s2850_s0 + $0x420] sm:$0xff] }
  0x6f   :  { %912 = vmatprep.mubr.f32.mxu1 %v48_v37  ;;  %1738 = vmatpush3.bf16.msra.mxu0 %v1735_v31  ;;  %v154_v37 = vld [vmem:[%s2850_s0 + $0x460] sm:$0xff] }
  0x70   :  { %1769 = vmatpush3.bf16.msra.mxu1 %v1735_v31  ;;  %1740 = vmatprep.subr.bf16.mxu0 %v1739_v38  ;;  %v135_v31 = vld [vmem:[%s2850_s0 + $0x3c8] sm:$0xff] }
  0x71   :  { %768 = vmatmul.mubr.f32.gmra.mrb[38].mxu0 %v45_v41  ;;  %1762 = vmatprep.subr.bf16.mxu1 %v1739_v38  ;;  %v22_v41 = vld [vmem:[%s2850_s0 + $0x40] sm:$0xff] }
  0x72   :  { %913 = vmatmul.mubr.f32.gmra.mrb[38].mxu1 %v47_v42  ;;  %772 = vmatprep.mubr.f32.mxu0 %v55_v43  ;;  %v94_v42 = vld [vmem:[%s2850_s0 + $0x280] sm:$0xff]  ;;  %v31_v43 = vld [vmem:[%s2850_s0 + $0x88] sm:$0xff] }
  0x73   :  { %917 = vmatprep.mubr.f32.mxu1 %v57_v44  ;;  %1742 = vmatpush3.bf16.msra.mxu0 %v1739_v38  ;;  %v103_v44 = vld [vmem:[%s2850_s0 + $0x2c8] sm:$0xff] }
  0x74   :  { %1770 = vmatpush3.bf16.msra.mxu1 %v1739_v38  ;;  %1744 = vmatprep.subr.bf16.mxu0 %v1743_v45  ;;  %v156_v38 = vld [vmem:[%s2850_s0 + $0x470] sm:$0xff] }
  0x75   :  { %773 = vmatmul.mubr.f32.gmra.mrb[40].mxu0 %v54_v48  ;;  %1763 = vmatprep.subr.bf16.mxu1 %v1743_v45  ;;  %v121_v48 = vld [vmem:[%s2850_s0 + $0x358] sm:$0xff] }
  0x76   :  { %918 = vmatmul.mubr.f32.gmra.mrb[40].mxu1 %v56_v49  ;;  %777 = vmatprep.mubr.f32.mxu0 %v64_v50  ;;  %v58_v49 = vld [vmem:[%s2850_s0 + $0x160] sm:$0xff] }
  0x77   :  { %922 = vmatprep.mubr.f32.mxu1 %v66_v51  ;;  %1746 = vmatpush3.bf16.msra.mxu0 %v1743_v45  ;;  %v130_v50 = vld [vmem:[%s2850_s0 + $0x3a0] sm:$0xff]  ;;  %v67_v51 = vld [vmem:[%s2850_s0 + $0x1a8] sm:$0xff] }
  0x78   :  { %1771 = vmatpush3.bf16.msra.mxu1 %v1743_v45  ;;  %1748 = vmatprep.subr.bf16.mxu0 %v1747_v52  ;;  %v40_v45 = vld [vmem:[%s2850_s0 + $0xd0] sm:$0xff] }
  0x79   :  { %778 = vmatmul.mubr.f32.gmra.mrb[42].mxu0 %v63_v55  ;;  %1764 = vmatprep.subr.bf16.mxu1 %v1747_v52  ;;  %v85_v55 = vld [vmem:[%s2850_s0 + $0x238] sm:$0xff] }
  0x7a   :  { %923 = vmatmul.mubr.f32.gmra.mrb[42].mxu1 %v65_v56  ;;  %782 = vmatprep.mubr.f32.mxu0 %v73_v57  ;;  %v157_v56 = vld [vmem:[%s2850_s0 + $0x478] sm:$0xff] }
  0x7b   :  { %927 = vmatprep.mubr.f32.mxu1 %v75_v58  ;;  %1750 = vmatpush3.bf16.msra.mxu0 %v1747_v52 }
  0x7c   :  { %1772 = vmatpush3.bf16.msra.mxu1 %v1747_v52  ;;  %1752 = vmatprep.subr.bf16.mxu0 %v1751_v59  ;;  %v139_v52 = vld [vmem:[%s2850_s0 + $0x3e8] sm:$0xff] }
  0x7d   :  { %783 = vmatmul.mubr.f32.gmra.mrb[44].mxu0 %v72_v62  ;;  %1765 = vmatprep.subr.bf16.mxu1 %v1751_v59 }
  0x7e   :  { %928 = vmatmul.mubr.f32.gmra.mrb[44].mxu1 %v74_v63  ;;  %787 = vmatprep.mubr.f32.mxu0 %v82_v0 }
  0x7f   :  { %932 = vmatprep.mubr.f32.mxu1 %v84_v1  ;;  %1754 = vmatpush3.bf16.msra.mxu0 %v1751_v59 }
  0x80   :  { %1773 = vmatpush3.bf16.msra.mxu1 %v1751_v59  ;;  %1756 = vmatprep.subr.bf16.mxu0 %v1755_v2 }
  0x81   :  { %788 = vmatmul.mubr.f32.gmra.mrb[46].mxu0 %v81_v3  ;;  %1766 = vmatprep.subr.bf16.mxu1 %v1755_v2 }
  0x82   :  { %933 = vmatmul.mubr.f32.gmra.mrb[46].mxu1 %v83_v4  ;;  %792 = vmatprep.mubr.f32.mxu0 %v91_v5 }
  0x83   :  { %937 = vmatprep.mubr.f32.mxu1 %v93_v6  ;;  %1758 = vmatpush3.bf16.msra.mxu0 %v1755_v2 }
  0x84   :  { %1774 = vmatpush3.bf16.msra.mxu1 %v1755_v2  ;;  %395 = vperm.xlu1 %1777, %v317_v18  }
  0x85   :  { %793 = vmatmul.mubr.f32.gmra.mrb[48].mxu0 %v90_v8 }
  0x86   :  { %938 = vmatmul.mubr.f32.gmra.mrb[48].mxu1 %v92_v10  ;;  %797 = vmatprep.mubr.f32.mxu0 %v100_v11 }
  0x87   :  { %942 = vmatprep.mubr.f32.mxu1 %v102_v12 }
  0x89   :  { %798 = vmatmul.mubr.f32.gmra.mrb[50].mxu0 %v99_v14 }
  0x8a   :  { %943 = vmatmul.mubr.f32.gmra.mrb[50].mxu1 %v101_v15  ;;  %802 = vmatprep.mubr.f32.mxu0 %v109_v16 }
  0x8b   :  { %947 = vmatprep.mubr.f32.mxu1 %v111_v17 }
  0x8d   :  { %803 = vmatmul.mubr.f32.gmra.mrb[52].mxu0 %v108_v19 }
  0x8e   :  { %948 = vmatmul.mubr.f32.gmra.mrb[52].mxu1 %v110_v20  ;;  %807 = vmatprep.mubr.f32.mxu0 %v118_v21 }
  0x8f   :  { %952 = vmatprep.mubr.f32.mxu1 %v120_v22 }
  0x91   :  { %808 = vmatmul.mubr.f32.gmra.mrb[54].mxu0 %v117_v23 }
  0x92   :  { %953 = vmatmul.mubr.f32.gmra.mrb[54].mxu1 %v119_v24  ;;  %812 = vmatprep.mubr.f32.mxu0 %v127_v25 }
  0x93   :  { %957 = vmatprep.mubr.f32.mxu1 %v129_v26 }
  0x95   :  { %813 = vmatmul.mubr.f32.gmra.mrb[56].mxu0 %v126_v27 }
  0x96   :  { %958 = vmatmul.mubr.f32.gmra.mrb[56].mxu1 %v128_v28  ;;  %817 = vmatprep.mubr.f32.mxu0 %v136_v29 }
  0x97   :  { %962 = vmatprep.mubr.f32.mxu1 %v138_v30 }
  0x99   :  { %818 = vmatmul.mubr.f32.gmra.mrb[58].mxu0 %v135_v31 }
  0x9a   :  { %963 = vmatmul.mubr.f32.gmra.mrb[58].mxu1 %v137_v32  ;;  %822 = vmatprep.mubr.f32.mxu0 %v145_v33 }
  0x9b   :  { %967 = vmatprep.mubr.f32.mxu1 %v147_v34 }
  0x9d   :  { %823 = vmatmul.mubr.f32.gmra.mrb[60].mxu0 %v144_v35 }
  0x9e   :  { %968 = vmatmul.mubr.f32.gmra.mrb[60].mxu1 %v146_v36  ;;  %827 = vmatprep.mubr.f32.mxu0 %v154_v37 }
  0x9f   :  { %972 = vmatprep.mubr.f32.mxu1 %v156_v38 }
  0xa1   :  { %828 = vmatmul.mubr.f32.gmra.mrb[62].mxu0 %v153_v39 }
  0xa2   :  { %973 = vmatmul.mubr.f32.gmra.mrb[62].mxu1 %v155_v40  ;;  %1575 = vmatprep.mubr.f32.mxu0 %v22_v41 }
  0xa3   :  { %1587 = vmatprep.mubr.f32.mxu1 %v94_v42 }
  0xa5   :  { %1576 = vmatmul.mubr.f32.vlgmr.msra.gmra.mrb[64].mxu0 %v31_v43 }
  0xa6   :  { %1588 = vmatmul.mubr.f32.vlgmr.msra.gmra.mrb[64].mxu1 %v103_v44  ;;  %1578 = vmatprep.mubr.f32.mxu0 %v40_v45 }
  0xa7   :  { %1590 = vmatprep.mubr.f32.mxu1 %v112_v46 }
  0xa9   :  { %1579 = vmatmul.mubr.f32.gmra.mrb[66].mxu0 %v49_v47 }
  0xaa   :  { %1591 = vmatmul.mubr.f32.gmra.mrb[66].mxu1 %v121_v48  ;;  %1581 = vmatprep.mubr.f32.mxu0 %v58_v49 }
  0xab   :  { %1593 = vmatprep.mubr.f32.mxu1 %v130_v50 }
  0xad   :  { %1582 = vmatmul.mubr.f32.gmra.mrb[68].mxu0 %v67_v51 }
  0xae   :  { %1594 = vmatmul.mubr.f32.gmra.mrb[68].mxu1 %v139_v52  ;;  %1584 = vmatprep.mubr.f32.mxu0 %v76_v53 }
  0xaf   :  { %1596 = vmatprep.mubr.f32.mxu1 %v148_v54 }
  0xb1   :  { %1585 = vmatmul.mubr.f32.gmra.mrb[70].mxu0 %v85_v55 }
  0xb2   :  { %1597 = vmatmul.mubr.f32.gmra.mrb[70].mxu1 %v157_v56 }
  0xc6   :  { %v321_v57 = vpop.permute.xlu0 %320 }
  0xc7   :  { %v331_v8 = vpop.permute.xlu1 %330 }
  0xca   :  { %v326_v2 = vpop.permute.xlu0 %325 }
  0xcb   :  { %v336_v20 = vpop.permute.xlu1 %335 }
  0xce   :  { %v341_v29 = vpop.permute.xlu0 %340 }
  0xcf   :  { %v346_v38 = vpop.permute.xlu1 %345 }
  0xd2   :  { %v351_v47 = vpop.permute.xlu0 %350 }
  0xd3   :  { %v356_v56 = vpop.permute.xlu1 %355 }
  0xf8   :  { %v1223_v58 = vpop.f32.mrb[0].mxu0 }
  0xf9   :  { %v1303_v59 = vpop.f32.mrb[0].mxu1  ;;  %v1224_v60 = vpop.f32.mrb[1].mxu0 }
  0xfa   :  { %v1225_v61 = vadd.f32 %v1224_v60, %v1223_v58  ;;  %v1304_v62 = vpop.f32.mrb[1].mxu1 }
  0xfb   :  { %v1305_v63 = vadd.f32 %v1304_v62, %v1303_v59 }
  0xfc   :  { %v465_v0 = vadd.f32 %v1225_v61, %v321_v57  ;;  %v1226_v1 = vpop.f32.mrb[2].mxu0 }
  0xfd   :  { %v1306_v3 = vpop.f32.mrb[2].mxu1  ;;  %v1227_v4 = vpop.f32.mrb[3].mxu0 }
  0xfe   :  { %v2717_v5 = vadd.f32 %v1305_v63, %v465_v0  ;;  %v1228_v6 = vadd.f32 %v1227_v4, %v1226_v1  ;;  %v1307_v7 = vpop.f32.mrb[3].mxu1  ;;  %v361_v1 = vpop.permute.xlu0 %360 }
  0xff   :  { %v1308_v9 = vadd.f32 %v1307_v7, %v1306_v3 }
 0x100   :  { %v470_v10 = vadd.f32 %v1228_v6, %v326_v2  ;;  %v1229_v11 = vpop.f32.mrb[4].mxu0 }
 0x101   :  { %v1309_v12 = vpop.f32.mrb[4].mxu1  ;;  %v1230_v13 = vpop.f32.mrb[5].mxu0 }
 0x102   :  { %v2719_v14 = vadd.f32 %v1308_v9, %v470_v10  ;;  %v1231_v15 = vadd.f32 %v1230_v13, %v1229_v11  ;;  %v1310_v16 = vpop.f32.mrb[5].mxu1  ;;  %v366_v11 = vpop.permute.xlu1 %365 }
 0x103   :  { %v1311_v17 = vadd.f32 %v1310_v16, %v1309_v12 }
 0x104   :  { %v475_v18 = vadd.f32 %v1231_v15, %v331_v8  ;;  %v1232_v19 = vpop.f32.mrb[6].mxu0 }
 0x105   :  { %v1312_v21 = vpop.f32.mrb[6].mxu1  ;;  %v1233_v22 = vpop.f32.mrb[7].mxu0 }
 0x106   :  { %v2721_v23 = vadd.f32 %v1311_v17, %v475_v18  ;;  %v1234_v24 = vadd.f32 %v1233_v22, %v1232_v19  ;;  %v1313_v25 = vpop.f32.mrb[7].mxu1 }
 0x107   :  { %v1314_v26 = vadd.f32 %v1313_v25, %v1312_v21  ;;  %v371_v21 = vpop.permute.xlu0 %370 }
 0x108   :  { %v480_v27 = vadd.f32 %v1234_v24, %v336_v20  ;;  %v1235_v28 = vpop.f32.mrb[8].mxu0 }
 0x109   :  { %v1315_v30 = vpop.f32.mrb[8].mxu1  ;;  %v1236_v31 = vpop.f32.mrb[9].mxu0 }
 0x10a   :  { %v2723_v32 = vadd.f32 %v1314_v26, %v480_v27  ;;  %v1237_v33 = vadd.f32 %v1236_v31, %v1235_v28  ;;  %v1316_v34 = vpop.f32.mrb[9].mxu1  ;;  %v376_v31 = vpop.permute.xlu1 %375 }
 0x10b   :  { %v1317_v35 = vadd.f32 %v1316_v34, %v1315_v30 }
 0x10c   :  { %v485_v36 = vadd.f32 %v1237_v33, %v341_v29  ;;  %v1238_v37 = vpop.f32.mrb[10].mxu0 }
 0x10d   :  { %v1318_v39 = vpop.f32.mrb[10].mxu1  ;;  %v1239_v40 = vpop.f32.mrb[11].mxu0 }
 0x10e   :  { %v2725_v41 = vadd.f32 %v1317_v35, %v485_v36  ;;  %v1240_v42 = vadd.f32 %v1239_v40, %v1238_v37  ;;  %v1319_v43 = vpop.f32.mrb[11].mxu1 }
 0x10f   :  { %v1320_v44 = vadd.f32 %v1319_v43, %v1318_v39 }
 0x110   :  { %v490_v45 = vadd.f32 %v1240_v42, %v346_v38  ;;  %v1241_v46 = vpop.f32.mrb[12].mxu0  ;;  %v381_v42 = vpop.permute.xlu0 %380 }
 0x111   :  { %v1321_v48 = vpop.f32.mrb[12].mxu1  ;;  %v1242_v49 = vpop.f32.mrb[13].mxu0 }
 0x112   :  { %v2727_v50 = vadd.f32 %v1320_v44, %v490_v45  ;;  %v1243_v51 = vadd.f32 %v1242_v49, %v1241_v46  ;;  %v1322_v52 = vpop.f32.mrb[13].mxu1 }
 0x113   :  { %v1323_v53 = vadd.f32 %v1322_v52, %v1321_v48  ;;  %v386_v52 = vpop.permute.xlu1 %385 }
 0x114   :  { %v495_v54 = vadd.f32 %v1243_v51, %v351_v47  ;;  %v1244_v55 = vpop.f32.mrb[14].mxu0 }
 0x115   :  { %v1324_v57 = vpop.f32.mrb[14].mxu1  ;;  %v1245_v58 = vpop.f32.mrb[15].mxu0 }
 0x116   :  { %v2729_v59 = vadd.f32 %v1323_v53, %v495_v54  ;;  %v1246_v60 = vadd.f32 %v1245_v58, %v1244_v55  ;;  %v1325_v61 = vpop.f32.mrb[15].mxu1 }
 0x117   :  { %v1326_v62 = vadd.f32 %v1325_v61, %v1324_v57 }
 0x118   :  { %v500_v63 = vadd.f32 %v1246_v60, %v356_v56  ;;  %v1247_v0 = vpop.f32.mrb[16].mxu0 }
 0x119   :  { %v1327_v2 = vpop.f32.mrb[16].mxu1  ;;  %v1248_v3 = vpop.f32.mrb[17].mxu0 }
 0x11a   :  { %v2731_v4 = vadd.f32 %v1326_v62, %v500_v63  ;;  %v1249_v6 = vadd.f32 %v1248_v3, %v1247_v0  ;;  %v1328_v7 = vpop.f32.mrb[17].mxu1  ;;  %v391_v62 = vpop.permute.xlu0 %390 }
 0x11b   :  { %v1329_v8 = vadd.f32 %v1328_v7, %v1327_v2 }
 0x11c   :  { %v505_v9 = vadd.f32 %v1249_v6, %v361_v1  ;;  %v1250_v10 = vpop.f32.mrb[18].mxu0 }
 0x11d   :  { %v1330_v12 = vpop.f32.mrb[18].mxu1  ;;  %v1251_v13 = vpop.f32.mrb[19].mxu0 }
 0x11e   :  { %v2733_v15 = vadd.f32 %v1329_v8, %v505_v9  ;;  %v1252_v16 = vadd.f32 %v1251_v13, %v1250_v10  ;;  %v1331_v17 = vpop.f32.mrb[19].mxu1  ;;  %v396_v9 = vpop.permute.xlu1 %395 }
 0x11f   :  { %v1332_v18 = vadd.f32 %v1331_v17, %v1330_v12 }
 0x120   :  { %v510_v19 = vadd.f32 %v1252_v16, %v366_v11  ;;  %v1253_v20 = vpop.f32.mrb[20].mxu0 }
 0x121   :  { %v1333_v22 = vpop.f32.mrb[20].mxu1  ;;  %v1254_v24 = vpop.f32.mrb[21].mxu0 }
 0x122   :  { %v2735_v25 = vadd.f32 %v1332_v18, %v510_v19  ;;  %v1255_v26 = vadd.f32 %v1254_v24, %v1253_v20  ;;  %v1334_v27 = vpop.f32.mrb[21].mxu1 }
 0x123   :  { %v1335_v28 = vadd.f32 %v1334_v27, %v1333_v22 }
 0x124   :  { %v515_v29 = vadd.f32 %v1255_v26, %v371_v21  ;;  %v1256_v30 = vpop.f32.mrb[22].mxu0 }
 0x125   :  { %v1336_v33 = vpop.f32.mrb[22].mxu1  ;;  %v1257_v34 = vpop.f32.mrb[23].mxu0 }
 0x126   :  { %v2737_v35 = vadd.f32 %v1335_v28, %v515_v29  ;;  %v1258_v36 = vadd.f32 %v1257_v34, %v1256_v30  ;;  %v1337_v37 = vpop.f32.mrb[23].mxu1 }
 0x127   :  { %v1338_v38 = vadd.f32 %v1337_v37, %v1336_v33 }
 0x128   :  { %v520_v39 = vadd.f32 %v1258_v36, %v376_v31  ;;  %v1259_v40 = vpop.f32.mrb[24].mxu0 }
 0x129   :  { %v1339_v43 = vpop.f32.mrb[24].mxu1  ;;  %v1260_v44 = vpop.f32.mrb[25].mxu0 }
 0x12a   :  { %v2739_v45 = vadd.f32 %v1338_v38, %v520_v39  ;;  %v1261_v46 = vadd.f32 %v1260_v44, %v1259_v40  ;;  %v1340_v47 = vpop.f32.mrb[25].mxu1 }
 0x12b   :  { %v1341_v48 = vadd.f32 %v1340_v47, %v1339_v43 }
 0x12c   :  { %v525_v49 = vadd.f32 %v1261_v46, %v381_v42  ;;  %v1262_v51 = vpop.f32.mrb[26].mxu0 }
 0x12d   :  { %v1342_v53 = vpop.f32.mrb[26].mxu1  ;;  %v1263_v54 = vpop.f32.mrb[27].mxu0 }
 0x12e   :  { %v2741_v55 = vadd.f32 %v1341_v48, %v525_v49  ;;  %v1264_v56 = vadd.f32 %v1263_v54, %v1262_v51  ;;  %v1343_v57 = vpop.f32.mrb[27].mxu1 }
 0x12f   :  { %v1344_v58 = vadd.f32 %v1343_v57, %v1342_v53 }
 0x130   :  { %v530_v60 = vadd.f32 %v1264_v56, %v386_v52  ;;  %v1265_v61 = vpop.f32.mrb[28].mxu0 }
 0x131   :  { %v1345_v63 = vpop.f32.mrb[28].mxu1  ;;  %v1266_v0 = vpop.f32.mrb[29].mxu0 }
 0x132   :  { %v2743_v1 = vadd.f32 %v1344_v58, %v530_v60  ;;  %v1267_v2 = vadd.f32 %v1266_v0, %v1265_v61  ;;  %v1346_v3 = vpop.f32.mrb[29].mxu1 }
 0x133   :  { %v1347_v6 = vadd.f32 %v1346_v3, %v1345_v63 }
 0x134   :  { %v535_v7 = vadd.f32 %v1267_v2, %v391_v62  ;;  %v1268_v8 = vpop.f32.mrb[30].mxu0 }
 0x135   :  { %v1348_v10 = vpop.f32.mrb[30].mxu1  ;;  %v1269_v11 = vpop.f32.mrb[31].mxu0 }
 0x136   :  { %v2745_v12 = vadd.f32 %v1347_v6, %v535_v7  ;;  %v1270_v13 = vadd.f32 %v1269_v11, %v1268_v8  ;;  %v1349_v16 = vpop.f32.mrb[31].mxu1 }
 0x137   :  { %v1350_v17 = vadd.f32 %v1349_v16, %v1348_v10 }
 0x138   :  { %v540_v18 = vadd.f32 %v1270_v13, %v396_v9  ;;  %v1383_v19 = vpop.f32.mrb[32].mxu0 }
 0x139   :  { %v1463_v20 = vpop.f32.mrb[32].mxu1  ;;  %v1384_v21 = vpop.f32.mrb[33].mxu0 }
 0x13a   :  { %v2747_v22 = vadd.f32 %v1350_v17, %v540_v18  ;;  %v1385_v24 = vadd.f32 %v1384_v21, %v1383_v19  ;;  %v1464_v26 = vpop.f32.mrb[33].mxu1 }
 0x13b   :  { %v1465_v27 = vadd.f32 %v1464_v26, %v1463_v20 }
 0x13c   :  { %v755_v28 = vadd.f32 %v1385_v24, %v2717_v5  ;;  %v1386_v29 = vpop.f32.mrb[34].mxu0 }
 0x13d   :  { %v1466_v30 = vpop.f32.mrb[34].mxu1  ;;  %v1387_v31 = vpop.f32.mrb[35].mxu0 }
 0x13e   :  { %v1388_v33 = vadd.f32 %v1387_v31, %v1386_v29  ;;  %v1467_v34 = vpop.f32.mrb[35].mxu1  ;;  %v2750_v36 = vadd.f32 %v1465_v27, %v755_v28 }
 0x13f   :  { %v1468_v37 = vadd.f32 %v1467_v34, %v1466_v30 }
 0x140   :  { %v760_v38 = vadd.f32 %v1388_v33, %v2719_v14  ;;  %v1389_v39 = vpop.f32.mrb[36].mxu0 }
 0x141   :  { %v1469_v40 = vpop.f32.mrb[36].mxu1  ;;  %v1390_v42 = vpop.f32.mrb[37].mxu0 }
 0x142   :  { %v1391_v43 = vadd.f32 %v1390_v42, %v1389_v39  ;;  %v1470_v44 = vpop.f32.mrb[37].mxu1  ;;  %v2753_v46 = vadd.f32 %v1468_v37, %v760_v38 }
 0x143   :  { %v1471_v47 = vadd.f32 %v1470_v44, %v1469_v40 }
 0x144   :  { %v765_v5 = vadd.f32 %v1391_v43, %v2721_v23  ;;  %v1392_v48 = vpop.f32.mrb[38].mxu0 }
 0x145   :  { %v1472_v49 = vpop.f32.mrb[38].mxu1  ;;  %v1393_v51 = vpop.f32.mrb[39].mxu0 }
 0x146   :  { %v1394_v52 = vadd.f32 %v1393_v51, %v1392_v48  ;;  %v1473_v53 = vpop.f32.mrb[39].mxu1  ;;  %v2756_v54 = vadd.f32 %v1471_v47, %v765_v5 }
 0x147   :  { %v1474_v56 = vadd.f32 %v1473_v53, %v1472_v49 }
 0x148   :  { %v770_v14 = vadd.f32 %v1394_v52, %v2723_v32  ;;  %v1395_v57 = vpop.f32.mrb[40].mxu0 }
 0x149   :  { %v1475_v58 = vpop.f32.mrb[40].mxu1  ;;  %v1396_v60 = vpop.f32.mrb[41].mxu0 }
 0x14a   :  { %v1397_v61 = vadd.f32 %v1396_v60, %v1395_v57  ;;  %v1476_v62 = vpop.f32.mrb[41].mxu1  ;;  %v2759_v63 = vadd.f32 %v1474_v56, %v770_v14 }
 0x14b   :  { %v1477_v0 = vadd.f32 %v1476_v62, %v1475_v58 }
 0x14c   :  { %v775_v23 = vadd.f32 %v1397_v61, %v2725_v41  ;;  %v1398_v2 = vpop.f32.mrb[42].mxu0 }
 0x14d   :  { %v1478_v3 = vpop.f32.mrb[42].mxu1  ;;  %v1399_v6 = vpop.f32.mrb[43].mxu0 }
 0x14e   :  { %v1400_v7 = vadd.f32 %v1399_v6, %v1398_v2  ;;  %v1479_v8 = vpop.f32.mrb[43].mxu1  ;;  %v2762_v9 = vadd.f32 %v1477_v0, %v775_v23 }
 0x14f   :  { %v1480_v10 = vadd.f32 %v1479_v8, %v1478_v3 }
 0x150   :  { %v780_v32 = vadd.f32 %v1400_v7, %v2727_v50  ;;  %v1401_v11 = vpop.f32.mrb[44].mxu0 }
 0x151   :  { %v1481_v13 = vpop.f32.mrb[44].mxu1  ;;  %v1402_v16 = vpop.f32.mrb[45].mxu0 }
 0x152   :  { %v1403_v17 = vadd.f32 %v1402_v16, %v1401_v11  ;;  %v1482_v18 = vpop.f32.mrb[45].mxu1  ;;  %v2765_v19 = vadd.f32 %v1480_v10, %v780_v32 }
 0x153   :  { %v1483_v20 = vadd.f32 %v1482_v18, %v1481_v13 }
 0x154   :  { %v785_v41 = vadd.f32 %v1403_v17, %v2729_v59  ;;  %v1404_v21 = vpop.f32.mrb[46].mxu0 }
 0x155   :  { %v1484_v24 = vpop.f32.mrb[46].mxu1  ;;  %v1405_v26 = vpop.f32.mrb[47].mxu0 }
 0x156   :  { %v1406_v27 = vadd.f32 %v1405_v26, %v1404_v21  ;;  %v1485_v28 = vpop.f32.mrb[47].mxu1  ;;  %v2768_v29 = vadd.f32 %v1483_v20, %v785_v41 }
 0x157   :  { %v1486_v30 = vadd.f32 %v1485_v28, %v1484_v24 }
 0x158   :  { %v790_v50 = vadd.f32 %v1406_v27, %v2731_v4  ;;  %v1407_v31 = vpop.f32.mrb[48].mxu0 }
 0x159   :  { %v1487_v33 = vpop.f32.mrb[48].mxu1  ;;  %v1408_v34 = vpop.f32.mrb[49].mxu0 }
 0x15a   :  { %v1409_v37 = vadd.f32 %v1408_v34, %v1407_v31  ;;  %v1488_v38 = vpop.f32.mrb[49].mxu1  ;;  %v2771_v39 = vadd.f32 %v1486_v30, %v790_v50 }
 0x15b   :  { %v1489_v40 = vadd.f32 %v1488_v38, %v1487_v33 }
 0x15c   :  { %v795_v59 = vadd.f32 %v1409_v37, %v2733_v15  ;;  %v1410_v42 = vpop.f32.mrb[50].mxu0 }
 0x15d   :  { %v1490_v43 = vpop.f32.mrb[50].mxu1  ;;  %v1411_v44 = vpop.f32.mrb[51].mxu0 }
 0x15e   :  { %v1412_v47 = vadd.f32 %v1411_v44, %v1410_v42  ;;  %v1491_v5 = vpop.f32.mrb[51].mxu1  ;;  %v940_v48 = vadd.f32 %v1489_v40, %v795_v59 }
 0x15f   :  { %v1492_v49 = vadd.f32 %v1491_v5, %v1490_v43 }
 0x160   :  { %v800_v51 = vadd.f32 %v1412_v47, %v2735_v25  ;;  %v1413_v4 = vpop.f32.mrb[52].mxu0 }
 0x161   :  { %v1493_v52 = vpop.f32.mrb[52].mxu1  ;;  %v1414_v53 = vpop.f32.mrb[53].mxu0 }
 0x162   :  { %v1415_v56 = vadd.f32 %v1414_v53, %v1413_v4  ;;  %v1494_v14 = vpop.f32.mrb[53].mxu1  ;;  %v945_v57 = vadd.f32 %v1492_v49, %v800_v51 }
 0x163   :  { %v1495_v58 = vadd.f32 %v1494_v14, %v1493_v52 }
 0x164   :  { %v805_v60 = vadd.f32 %v1415_v56, %v2737_v35  ;;  %v1416_v61 = vpop.f32.mrb[54].mxu0 }
 0x165   :  { %v1496_v15 = vpop.f32.mrb[54].mxu1  ;;  %v1417_v62 = vpop.f32.mrb[55].mxu0 }
 0x166   :  { %v1418_v0 = vadd.f32 %v1417_v62, %v1416_v61  ;;  %v1497_v23 = vpop.f32.mrb[55].mxu1  ;;  %v2776_v2 = vadd.f32 %v1495_v58, %v805_v60 }
 0x167   :  { %v1498_v3 = vadd.f32 %v1497_v23, %v1496_v15 }
 0x168   :  { %v810_v6 = vadd.f32 %v1418_v0, %v2739_v45  ;;  %v1419_v25 = vpop.f32.mrb[56].mxu0 }
 0x169   :  { %v1499_v7 = vpop.f32.mrb[56].mxu1  ;;  %v1420_v8 = vpop.f32.mrb[57].mxu0 }
 0x16a   :  { %v1421_v10 = vadd.f32 %v1420_v8, %v1419_v25  ;;  %v1500_v32 = vpop.f32.mrb[57].mxu1  ;;  %v955_v11 = vadd.f32 %v1498_v3, %v810_v6 }
 0x16b   :  { %v1501_v13 = vadd.f32 %v1500_v32, %v1499_v7 }
 0x16c   :  { %v815_v16 = vadd.f32 %v1421_v10, %v2741_v55  ;;  %v1422_v35 = vpop.f32.mrb[58].mxu0 }
 0x16d   :  { %v1502_v17 = vpop.f32.mrb[58].mxu1  ;;  %v1423_v18 = vpop.f32.mrb[59].mxu0 }
 0x16e   :  { %v1424_v20 = vadd.f32 %v1423_v18, %v1422_v35  ;;  %v1503_v41 = vpop.f32.mrb[59].mxu1  ;;  %v2780_v21 = vadd.f32 %v1501_v13, %v815_v16 }
 0x16f   :  { %v1504_v24 = vadd.f32 %v1503_v41, %v1502_v17 }
 0x170   :  { %v820_v26 = vadd.f32 %v1424_v20, %v2743_v1  ;;  %v1425_v45 = vpop.f32.mrb[60].mxu0 }
 0x171   :  { %v1505_v27 = vpop.f32.mrb[60].mxu1  ;;  %v1426_v28 = vpop.f32.mrb[61].mxu0 }
 0x172   :  { %v1427_v30 = vadd.f32 %v1426_v28, %v1425_v45  ;;  %v1506_v50 = vpop.f32.mrb[61].mxu1  ;;  %v965_v31 = vadd.f32 %v1504_v24, %v820_v26 }
 0x173   :  { %v1507_v33 = vadd.f32 %v1506_v50, %v1505_v27 }
 0x174   :  { %v825_v34 = vadd.f32 %v1427_v30, %v2745_v12  ;;  %v1428_v55 = vpop.f32.mrb[62].mxu0 }
 0x175   :  { %v1508_v37 = vpop.f32.mrb[62].mxu1  ;;  %v1429_v38 = vpop.f32.mrb[63].mxu0 }
 0x176   :  { %v1430_v40 = vadd.f32 %v1429_v38, %v1428_v55  ;;  %v1509_v59 = vpop.f32.mrb[63].mxu1  ;;  %v2784_v42 = vadd.f32 %v1507_v33, %v825_v34 }
 0x177   :  { %v1510_v43 = vadd.f32 %v1509_v59, %v1508_v37 }
 0x178   :  { %v830_v44 = vadd.f32 %v1430_v40, %v2747_v22  ;;  %v1577_v1 = vpop.f32.mrb[64].mxu0 }
 0x179   :  { %v1050_v47 = vadd.f32 %v1577_v1, %v2753_v46  ;;  %v1589_v5 = vpop.f32.mrb[64].mxu1  ;;  %v1044_v49 = vpop.f32.mrb[65].mxu0 }
 0x17a   :  { %v1090_v51 = vadd.f32 %v1589_v5, %v945_v57  ;;  %v1045_v4 = vadd.f32 %v1044_v49, %v2750_v36  ;;  %v1084_v52 = vpop.f32.mrb[65].mxu1  ;;  %v2789_v12 = vadd.f32 %v1510_v43, %v830_v44 }
 0x17b   :  { %vm1124_vm0 = vcmp.ge.f32.partialorder %v1050_v47, 0.0  ;;  %v1140_v53 = vmul.f32 0.2, %v1050_v47  ;;  %v1085_v56 = vadd.f32 %v1084_v52, %v940_v48 }
 0x17c   :  { %vm1132_vm1 = vcmp.ge.f32.partialorder %v1090_v51, 0.0  ;;  %v1148_v14 = vmul.f32 0.2, %v1090_v51  ;;  %vm1123_vm2 = vcmp.ge.f32.partialorder %v1045_v4, 0.0  ;;  %v1139_v58 = vmul.f32 0.2, %v1045_v4 }
 0x17d   :  { %v1156_v60 = vsel %vm1124_vm0, %v1050_v47, %v1140_v53  ;;  %vm1131_vm3 = vcmp.ge.f32.partialorder %v1085_v56, 0.0  ;;  %v1147_v22 = vmul.f32 0.2, %v1085_v56  ;;  %v1580_v61 = vpop.f32.mrb[66].mxu0  ;;  %v1592_v46 = vpop.f32.mrb[66].mxu1 }
 0x17e   :  { %1172 = vst [vmem:[%s2852_s3 + $0x8] sm:$0xff] %v1156_v60  ;;  %v1164_v36 = vsel %vm1132_vm1, %v1090_v51, %v1148_v14  ;;  %v1155_v57 = vsel %vm1123_vm2, %v1045_v4, %v1139_v58  ;;  %v1060_v15 = vadd.f32 %v1580_v61, %v2759_v63  ;;  %v1100_v62 = vadd.f32 %v1592_v46, %v955_v11  ;;  %v1054_v0 = vpop.f32.mrb[67].mxu0  ;;  %v1094_v48 = vpop.f32.mrb[67].mxu1 }
 0x17f   :  { %1180 = vst [vmem:[%s2852_s3 + $0x48] sm:$0xff] %v1164_v36  ;;  %1171 = vst [vmem:[%s2852_s3] sm:$0xff] %v1155_v57  ;;  %v1163_v23 = vsel %vm1131_vm3, %v1085_v56, %v1147_v22  ;;  %v1055_v3 = vadd.f32 %v1054_v0, %v2756_v54  ;;  %v1095_v6 = vadd.f32 %v1094_v48, %v2776_v2 }
 0x180   :  { %1179 = vst [vmem:[%s2852_s3 + $0x40] sm:$0xff] %v1163_v23  ;;  %vm1126_vm4 = vcmp.ge.f32.partialorder %v1060_v15, 0.0  ;;  %v1142_v63 = vmul.f32 0.2, %v1060_v15  ;;  %vm1134_vm5 = vcmp.ge.f32.partialorder %v1100_v62, 0.0  ;;  %v1583_v11 = vpop.f32.mrb[68].mxu0 }
 0x181   :  { %v1150_v25 = vmul.f32 0.2, %v1100_v62  ;;  %vm1125_vm6 = vcmp.ge.f32.partialorder %v1055_v3, 0.0  ;;  %v1141_v7 = vmul.f32 0.2, %v1055_v3  ;;  %vm1133_vm7 = vcmp.ge.f32.partialorder %v1095_v6, 0.0 }
 0x182   :  { %v1149_v8 = vmul.f32 0.2, %v1095_v6  ;;  %v1158_v10 = vsel %vm1126_vm4, %v1060_v15, %v1142_v63  ;;  %v1595_v13 = vpop.f32.mrb[68].mxu1  ;;  %v1070_v16 = vadd.f32 %v1583_v11, %v2765_v19  ;;  %v1064_v17 = vpop.f32.mrb[69].mxu0 }
 0x183   :  { %v1166_v32 = vsel %vm1134_vm5, %v1100_v62, %v1150_v25  ;;  %1174 = vst [vmem:[%s2852_s3 + $0x18] sm:$0xff] %v1158_v10  ;;  %v1157_v54 = vsel %vm1125_vm6, %v1055_v3, %v1141_v7  ;;  %v1110_v35 = vadd.f32 %v1595_v13, %v965_v31  ;;  %v1104_v18 = vpop.f32.mrb[69].mxu1  ;;  %v1065_v20 = vadd.f32 %v1064_v17, %v2762_v9 }
 0x184   :  { %1182 = vst [vmem:[%s2852_s3 + $0x58] sm:$0xff] %v1166_v32  ;;  %v1165_v2 = vsel %vm1133_vm7, %v1095_v6, %v1149_v8  ;;  %1173 = vst [vmem:[%s2852_s3 + $0x10] sm:$0xff] %v1157_v54  ;;  %v1105_v41 = vadd.f32 %v1104_v18, %v2780_v21  ;;  %v1586_v24 = vpop.f32.mrb[70].mxu0  ;;  %vm1128_vm8 = vcmp.ge.f32.partialorder %v1070_v16, 0.0  ;;  %v1144_v26 = vmul.f32 0.2, %v1070_v16 }
 0x185   :  { %1181 = vst [vmem:[%s2852_s3 + $0x50] sm:$0xff] %v1165_v2  ;;  %vm1136_vm9 = vcmp.ge.f32.partialorder %v1110_v35, 0.0  ;;  %v1152_v19 = vmul.f32 0.2, %v1110_v35  ;;  %vm1127_vm10 = vcmp.ge.f32.partialorder %v1065_v20, 0.0  ;;  %v1080_v50 = vadd.f32 %v1586_v24, %v2771_v39  ;;  %v1598_v31 = vpop.f32.mrb[70].mxu1 }
 0x186   :  { %v1143_v45 = vmul.f32 0.2, %v1065_v20  ;;  %vm1135_vm11 = vcmp.ge.f32.partialorder %v1105_v41, 0.0  ;;  %v1151_v27 = vmul.f32 0.2, %v1105_v41  ;;  %v1160_v28 = vsel %vm1128_vm8, %v1070_v16, %v1144_v26  ;;  %v1074_v33 = vpop.f32.mrb[71].mxu0 }
 0x187   :  { %v1168_v30 = vsel %vm1136_vm9, %v1110_v35, %v1152_v19  ;;  %1176 = vst [vmem:[%s2852_s3 + $0x28] sm:$0xff] %v1160_v28  ;;  %v1120_v34 = vadd.f32 %v1598_v31, %v2789_v12  ;;  %v1075_v55 = vadd.f32 %v1074_v33, %v2768_v29  ;;  %v1114_v37 = vpop.f32.mrb[71].mxu1  ;;  %vm1130_vm12 = vcmp.ge.f32.partialorder %v1080_v50, 0.0 }
 0x188   :  { %1184 = vst [vmem:[%s2852_s3 + $0x68] sm:$0xff] %v1168_v30  ;;  %v1159_v9 = vsel %vm1127_vm10, %v1065_v20, %v1143_v45  ;;  %v1167_v21 = vsel %vm1135_vm11, %v1105_v41, %v1151_v27  ;;  %v1146_v39 = vmul.f32 0.2, %v1080_v50  ;;  %v1115_v38 = vadd.f32 %v1114_v37, %v2784_v42 }
 0x189   :  { %1175 = vst [vmem:[%s2852_s3 + $0x20] sm:$0xff] %v1159_v9  ;;  %1183 = vst [vmem:[%s2852_s3 + $0x60] sm:$0xff] %v1167_v21  ;;  %vm1138_vm13 = vcmp.ge.f32.partialorder %v1120_v34, 0.0  ;;  %v1154_v40 = vmul.f32 0.2, %v1120_v34  ;;  %vm1129_vm14 = vcmp.ge.f32.partialorder %v1075_v55, 0.0 }
 0x18a   :  { %v1145_v59 = vmul.f32 0.2, %v1075_v55  ;;  %v1162_v43 = vsel %vm1130_vm12, %v1080_v50, %v1146_v39  ;;  %vm1137_vm15 = vcmp.ge.f32.partialorder %v1115_v38, 0.0  ;;  %v1153_v29 = vmul.f32 0.2, %v1115_v38 }
 0x18b   :  { %1178 = vst [vmem:[%s2852_s3 + $0x38] sm:$0xff] %v1162_v43  ;;  %v1170_v44 = vsel %vm1138_vm13, %v1120_v34, %v1154_v40 }
 0x18c   :  { %v1161_v1 = vsel %vm1129_vm14, %v1075_v55, %v1145_v59  ;;  %1186 = vst [vmem:[%s2852_s3 + $0x78] sm:$0xff] %v1170_v44  ;;  %v1169_v42 = vsel %vm1137_vm15, %v1115_v38, %v1153_v29 }
 0x18d   :  { %1177 = vst [vmem:[%s2852_s3 + $0x30] sm:$0xff] %v1161_v1  ;;  %1185 = vst [vmem:[%s2852_s3 + $0x70] sm:$0xff] %v1169_v42 }

</bundles_post_ra>
